<compile_context>
chip_gen: v7x
topology: tpu7x:2x2x1
jax: 0.10.0
libtpu: 0.0.40
codegen_flags: <defaults>
</compile_context>

<pallas_src>
import jax
import jax.numpy as jnp
from jax.experimental import pallas as pl
from jax.experimental.pallas import tpu as pltpu

_BN_EPS = 1e-5

_LAYER_ORDER = ("conv1", "conv2", "conv3", "convB1", "convB2", "convB3", "convB_final")
_LAYER_POST = ("pool", "up", "pool", "up", "pool", "up", "none")
_LAYER_RELU = (True, True, True, True, True, True, False)


def _make_fused_kernel(cfgs, N, pool_ks, pool_st):
    """Builds the single fused auto-encoder forward kernel.

    Ref layout (all resident in VMEM):
      refs[0]                : x, flat NLC input, shape (N*L0, C0), f32
      refs[1+4s .. 4+4s]     : stage s conv weight (K, C_in, C_out) bf16,
                               bias (1, C_out), BN gamma (1, C_out),
                               BN beta (1, C_out), all f32
      refs[1+4S]             : output (N*L_final, C_final), f32
      refs[2+4S]             : single reusable f32 VMEM scratch
                               (max_rows, max_cols) shared by the padded conv
                               input, pool input and upsample output.
    """
    n_stages = len(cfgs)

    def kernel(*refs):
        x_ref = refs[0]
        o_ref = refs[1 + 4 * n_stages]
        scr = refs[2 + 4 * n_stages]

        y = x_ref[...]                                    # (N*L0, C0) f32
        for s, c in enumerate(cfgs):
            w_ref = refs[1 + 4 * s]                       # (K, C_in, C_out) bf16
            bias = refs[2 + 4 * s][...]                   # (1, C_out) f32
            gamma = refs[3 + 4 * s][...]
            beta = refs[4 + 4 * s][...]
            L, K, pad = c["L"], c["K"], c["pad"]
            C_in, C_out = c["C_in"], c["C_out"]
            NL = N * L
            Lp = L + 2 * pad                              # per-sample padded length
            Rpad = N * Lp                                 # padded rows in scratch
            inner = Rpad - 2 * pad                        # rows covered by tap reads

            # ---- Conv1d via zero-padded scratch (no roll / mask / where) ----
            scr[pl.ds(0, Rpad), pl.ds(0, C_in)] = jnp.zeros((Rpad, C_in), jnp.float32)
            for n in range(N):
                scr[pl.ds(n * Lp + pad, L), pl.ds(0, C_in)] = y[n * L:(n + 1) * L, :]

            acc = jnp.zeros((inner, C_out), jnp.float32)
            for k in range(K):
                # Tap k is a single contiguous sublane-offset load; bf16 MXU
                # operands, f32 accumulation.
                xk = scr[pl.ds(k, inner), pl.ds(0, C_in)].astype(jnp.bfloat16)
                acc = acc + jnp.dot(xk, w_ref[k],
                                    preferred_element_type=jnp.float32)

            # Drop the inter-sample garbage rows -> (N*L, C_out).
            if N == 1:
                acc = acc[0:L, :]
            else:
                acc = jnp.concatenate(
                    [acc[n * Lp:n * Lp + L, :] for n in range(N)], axis=0)
            acc = acc + bias

            # ---- BatchNorm1d (training-mode batch stats over N and L) ------
            inv_cnt = jnp.float32(1.0 / NL)
            mean = jnp.sum(acc, axis=0, keepdims=True) * inv_cnt
            cen = acc - mean
            var = jnp.sum(cen * cen, axis=0, keepdims=True) * inv_cnt
            yn = cen * (gamma * jax.lax.rsqrt(var + _BN_EPS)) + beta
            if c["do_relu"]:
                yn = jnp.maximum(yn, 0.0)

            # ---- MaxPool1d / Upsample(nearest, x2) -------------------------
            if c["post"] == "pool":
                scr[pl.ds(0, NL), pl.ds(0, C_out)] = yn
                L_out = (L - pool_ks) // pool_st + 1
                if pool_ks == pool_st and L % pool_st == 0:
                    # Windows never cross sample boundaries: pool_ks global
                    # strided reads over the whole flat (N*L) axis.
                    rows = N * L_out
                    m = scr[pl.ds(0, rows, stride=pool_st), pl.ds(0, C_out)]
                    for kk in range(1, pool_ks):
                        m = jnp.maximum(
                            m, scr[pl.ds(kk, rows, stride=pool_st),
                                   pl.ds(0, C_out)])
                    y = m
                else:
                    # Fallback: per-sample strided windows (general ks/st).
                    pieces = []
                    for n in range(N):
                        base = n * L
                        m = scr[pl.ds(base, L_out, stride=pool_st),
                                pl.ds(0, C_out)]
                        for kk in range(1, pool_ks):
                            m = jnp.maximum(
                                m, scr[pl.ds(base + kk, L_out, stride=pool_st),
                                       pl.ds(0, C_out)])
                        pieces.append(m)
                    y = pieces[0] if N == 1 else jnp.concatenate(pieces, axis=0)
            elif c["post"] == "up":
                # Nearest x2: two sublane-strided stores (even rows, odd rows)
                # then one contiguous read back.  O(NL*C), no selection matrix.
                scr[pl.ds(0, NL, stride=2), pl.ds(0, C_out)] = yn
                scr[pl.ds(1, NL, stride=2), pl.ds(0, C_out)] = yn
                y = scr[pl.ds(0, 2 * NL), pl.ds(0, C_out)]
            else:
                y = yn

        o_ref[...] = y.astype(o_ref.dtype)   # single full-block store

    return kernel


def _vmem_padded_bytes(shape, dtype):
    """Rough (8,128)/(16,128)-tile-padded VMEM footprint of one array."""
    item = jnp.dtype(dtype).itemsize
    sub = 8 * max(1, 4 // item)          # 8 rows/tile f32, 16 rows/tile bf16
    if len(shape) == 0:
        return 4 * 1024
    if len(shape) == 1:
        lead, rows, cols = 1, 1, shape[0]
    else:
        rows, cols = shape[-2], shape[-1]
        lead = 1
        for d in shape[:-2]:
            lead *= d
    rows_p = -(-rows // sub) * sub
    cols_p = -(-cols // 128) * 128
    return lead * rows_p * cols_p * item


def auto_encoder_forward(x_ncl, params, *, pool_ks, pool_st):
    """Mirrors auto_encoder.forward (training-mode BatchNorm statistics).

    x_ncl: (N, C, L) like PyTorch; returns (N, C, L).
    TODO(synk): BN running-stat updates and the module's `self.output`
    (pre-bn3 conv3 activation) attribute side effect are not emitted; neither
    affects the returned tensor.
    """
    N, C0, L0 = x_ncl.shape

    # Single layout change at the boundary: NCL -> flat (N*L, C).
    x_flat = jnp.transpose(x_ncl, (0, 2, 1)).reshape(N * L0, C0).astype(jnp.float32)

    flat_args = [x_flat]
    cfgs = []
    L = L0
    cur_c = C0
    scr_rows, scr_cols = 8, 1
    for name, post, do_relu in zip(_LAYER_ORDER, _LAYER_POST, _LAYER_RELU):
        w, b, g, be = params[name]
        C_out, C_in, K = w.shape
        assert C_in == cur_c, f"{name}: channel mismatch ({C_in} vs {cur_c})"
        assert K % 2 == 1, (
            f"{name}: same-padding length preservation requires odd kernel size")
        pad = (K - 1) // 2
        flat_args += [
            # bf16 MXU operands (f32 accumulation stays in-kernel).
            jnp.transpose(w, (2, 1, 0)).astype(jnp.bfloat16),   # (K, C_in, C_out)
            b.reshape(1, C_out).astype(jnp.float32),
            g.reshape(1, C_out).astype(jnp.float32),
            be.reshape(1, C_out).astype(jnp.float32),
        ]
        cfgs.append(dict(L=L, K=K, pad=pad, C_in=C_in, C_out=C_out,
                         do_relu=do_relu, post=post))
        # Size of the single reusable scratch (max over all per-stage uses).
        scr_rows = max(scr_rows, N * (L + 2 * pad))
        scr_cols = max(scr_cols, C_in)
        if post == "pool":
            scr_rows = max(scr_rows, N * L)
            scr_cols = max(scr_cols, C_out)
            L = (L - pool_ks) // pool_st + 1
        elif post == "up":
            scr_rows = max(scr_rows, 2 * N * L)
            scr_cols = max(scr_cols, C_out)
            L = 2 * L
        cur_c = C_out
    scr_rows = -(-scr_rows // 8) * 8

    C_final = cfgs[-1]["C_out"]
    out_shape = jax.ShapeDtypeStruct((N * L, C_final), jnp.float32)
    kernel = _make_fused_kernel(cfgs, N, pool_ks, pool_st)
    vmem = pl.BlockSpec(memory_space=pltpu.MemorySpace.VMEM)

    # Explicit scoped-VMEM budget from the padded resident footprint.
    total_bytes = sum(_vmem_padded_bytes(a.shape, a.dtype) for a in flat_args)
    total_bytes += _vmem_padded_bytes(out_shape.shape, out_shape.dtype)
    total_bytes += _vmem_padded_bytes((scr_rows, scr_cols), jnp.float32)
    vmem_limit = min(32 << 20, max(4 << 20, 2 * total_bytes + (1 << 20)))

    out_flat = pl.pallas_call(
        kernel,
        out_shape=out_shape,
        in_specs=[vmem] * len(flat_args),
        out_specs=vmem,
        scratch_shapes=[pltpu.VMEM((scr_rows, scr_cols), jnp.float32)],
        compiler_params=pltpu.CompilerParams(vmem_limit_bytes=int(vmem_limit)),
    )(*flat_args)

    # Single layout change back: flat (N*L, C) -> NCL.
    return jnp.transpose(out_flat.reshape(N, L, C_final), (0, 2, 1))


def _init_layer(key, c_in, c_out, ks):
    kw, kb, kg, kbe = jax.random.split(key, 4)
    fan_in = c_in * ks
    w = jax.random.normal(kw, (c_out, c_in, ks), jnp.float32) / jnp.sqrt(float(fan_in))
    b = 0.1 * jax.random.normal(kb, (c_out,), jnp.float32)
    gamma = 1.0 + 0.1 * jax.random.normal(kg, (c_out,), jnp.float32)
    beta = 0.1 * jax.random.normal(kbe, (c_out,), jnp.float32)
    return (w, b, gamma, beta)


def init_params(key, channel_dim, k1, s1, k2, s2, k3, s3):
    keys = jax.random.split(key, 7)
    return {
        "conv1":       _init_layer(keys[0], channel_dim, k1, s1),
        "conv2":       _init_layer(keys[1], k1, k2, s2),
        "conv3":       _init_layer(keys[2], k2, k3, s3),
        "convB1":      _init_layer(keys[3], k3, k2, s3),
        "convB2":      _init_layer(keys[4], k2, k1, s2),
        "convB3":      _init_layer(keys[5], k1, channel_dim, s1),
        "convB_final": _init_layer(keys[6], channel_dim, channel_dim, s1),
    }


if __name__ == "__main__":
    # Hyperparameters (constructor args of auto_encoder), kept small.
    channel_dim = 4
    conv1_kernel_num, conv1_kernel_size = 8, 3
    conv2_kernel_num, conv2_kernel_size = 16, 5
    conv3_kernel_num, conv3_kernel_size = 32, 3
    maxpool_kernel_size, max_pool_stride = 2, 2
    window_size = 16           # sequence length L
    batch = 2

    key = jax.random.PRNGKey(0)
    k_params, k_x = jax.random.split(key)
    params = init_params(k_params, channel_dim,
                         conv1_kernel_num, conv1_kernel_size,
                         conv2_kernel_num, conv2_kernel_size,
                         conv3_kernel_num, conv3_kernel_size)

    x = jax.random.normal(k_x, (batch, channel_dim, window_size), jnp.float32)

    out = auto_encoder_forward(x, params,
                               pool_ks=maxpool_kernel_size,
                               pool_st=max_pool_stride)
    out = jax.block_until_ready(out)

    assert out.shape == (batch, channel_dim, window_size), out.shape
    assert bool(jnp.all(jnp.isfinite(out)))
    print("KERNEL_OK")
</pallas_src>

<mosaic_0001>
module attributes {stable_mosaic.version = 11 : i64} {
  func.func @kernel(%arg0: memref<32x4xf32, #tpu.memory_space<vmem>>, %arg1: memref<3x4x8xbf16, #tpu.memory_space<vmem>>, %arg2: memref<1x8xf32, #tpu.memory_space<vmem>>, %arg3: memref<1x8xf32, #tpu.memory_space<vmem>>, %arg4: memref<1x8xf32, #tpu.memory_space<vmem>>, %arg5: memref<5x8x16xbf16, #tpu.memory_space<vmem>>, %arg6: memref<1x16xf32, #tpu.memory_space<vmem>>, %arg7: memref<1x16xf32, #tpu.memory_space<vmem>>, %arg8: memref<1x16xf32, #tpu.memory_space<vmem>>, %arg9: memref<3x16x32xbf16, #tpu.memory_space<vmem>>, %arg10: memref<1x32xf32, #tpu.memory_space<vmem>>, %arg11: memref<1x32xf32, #tpu.memory_space<vmem>>, %arg12: memref<1x32xf32, #tpu.memory_space<vmem>>, %arg13: memref<3x32x16xbf16, #tpu.memory_space<vmem>>, %arg14: memref<1x16xf32, #tpu.memory_space<vmem>>, %arg15: memref<1x16xf32, #tpu.memory_space<vmem>>, %arg16: memref<1x16xf32, #tpu.memory_space<vmem>>, %arg17: memref<5x16x8xbf16, #tpu.memory_space<vmem>>, %arg18: memref<1x8xf32, #tpu.memory_space<vmem>>, %arg19: memref<1x8xf32, #tpu.memory_space<vmem>>, %arg20: memref<1x8xf32, #tpu.memory_space<vmem>>, %arg21: memref<3x8x4xbf16, #tpu.memory_space<vmem>>, %arg22: memref<1x4xf32, #tpu.memory_space<vmem>>, %arg23: memref<1x4xf32, #tpu.memory_space<vmem>>, %arg24: memref<1x4xf32, #tpu.memory_space<vmem>>, %arg25: memref<3x4x4xbf16, #tpu.memory_space<vmem>>, %arg26: memref<1x4xf32, #tpu.memory_space<vmem>>, %arg27: memref<1x4xf32, #tpu.memory_space<vmem>>, %arg28: memref<1x4xf32, #tpu.memory_space<vmem>>, %arg29: memref<32x4xf32, #tpu.memory_space<vmem>>, %arg30: memref<40x32xf32, #tpu.memory_space<vmem>>) attributes {dimension_semantics = [], scalar_prefetch = 0 : i64, scratch_operands = 1 : i64, tpu.core_type = #tpu.core_type<tc>} {
    %c0 = arith.constant 0 : index
    %c0_0 = arith.constant 0 : index
    %0 = vector.load %arg0[%c0, %c0_0] : memref<32x4xf32, #tpu.memory_space<vmem>>, vector<32x4xf32>
    %c0_1 = arith.constant 0 : index
    %c0_2 = arith.constant 0 : index
    %1 = vector.load %arg2[%c0_1, %c0_2] : memref<1x8xf32, #tpu.memory_space<vmem>>, vector<1x8xf32>
    %c0_3 = arith.constant 0 : index
    %c0_4 = arith.constant 0 : index
    %2 = vector.load %arg3[%c0_3, %c0_4] : memref<1x8xf32, #tpu.memory_space<vmem>>, vector<1x8xf32>
    %c0_5 = arith.constant 0 : index
    %c0_6 = arith.constant 0 : index
    %3 = vector.load %arg4[%c0_5, %c0_6] : memref<1x8xf32, #tpu.memory_space<vmem>>, vector<1x8xf32>
    %cst = arith.constant 0.000000e+00 : f32
    %4 = vector.broadcast %cst : f32 to vector<36x4xf32>
    %c0_7 = arith.constant 0 : index
    %c0_8 = arith.constant 0 : index
    %5 = vector.load %arg30[%c0_7, %c0_8] : memref<40x32xf32, #tpu.memory_space<vmem>>, vector<36x4xf32>
    tpu.vector_store %arg30[%c0_7, %c0_8], %4 {strides = array<i32>} : memref<40x32xf32, #tpu.memory_space<vmem>>, vector<36x4xf32>,
    %6 = vector.extract_strided_slice %0 {offsets = [0, 0], sizes = [16, 4], strides = [1, 1]} : vector<32x4xf32> to vector<16x4xf32>
    %c1 = arith.constant 1 : index
    %c0_9 = arith.constant 0 : index
    %7 = vector.load %arg30[%c1, %c0_9] : memref<40x32xf32, #tpu.memory_space<vmem>>, vector<16x4xf32>
    tpu.vector_store %arg30[%c1, %c0_9], %6 {strides = array<i32>} : memref<40x32xf32, #tpu.memory_space<vmem>>, vector<16x4xf32>,
    %8 = vector.extract_strided_slice %0 {offsets = [16, 0], sizes = [16, 4], strides = [1, 1]} : vector<32x4xf32> to vector<16x4xf32>
    %c19 = arith.constant 19 : index
    %c0_10 = arith.constant 0 : index
    %9 = vector.load %arg30[%c19, %c0_10] : memref<40x32xf32, #tpu.memory_space<vmem>>, vector<16x4xf32>
    tpu.vector_store %arg30[%c19, %c0_10], %8 {strides = array<i32>} : memref<40x32xf32, #tpu.memory_space<vmem>>, vector<16x4xf32>,
    %cst_11 = arith.constant 0.000000e+00 : f32
    %10 = vector.broadcast %cst_11 : f32 to vector<34x8xf32>
    %c0_12 = arith.constant 0 : index
    %c0_13 = arith.constant 0 : index
    %11 = vector.load %arg30[%c0_12, %c0_13] : memref<40x32xf32, #tpu.memory_space<vmem>>, vector<34x4xf32>
    %12 = arith.truncf %11 : vector<34x4xf32> to vector<34x4xbf16>
    %c0_14 = arith.constant 0 : index
    %c0_15 = arith.constant 0 : index
    %c0_16 = arith.constant 0 : index
    %13 = vector.load %arg1[%c0_14, %c0_15, %c0_16] : memref<3x4x8xbf16, #tpu.memory_space<vmem>>, vector<1x4x8xbf16>
    %14 = vector.shape_cast %13 : vector<1x4x8xbf16> to vector<4x8xbf16>
    %cst_17 = arith.constant dense<0.000000e+00> : vector<34x8xf32>
    %15 = tpu.matmul %12, %14, %cst_17 {dimension_numbers = #tpu.dot_dimension_numbers<[1], [0], [0], [1], [0, 0, 1, 1], [], []>} : vector<34x4xbf16>, vector<4x8xbf16>, vector<34x8xf32> -> vector<34x8xf32>
    %16 = arith.addf %10, %15 : vector<34x8xf32>
    %c1_18 = arith.constant 1 : index
    %c0_19 = arith.constant 0 : index
    %17 = vector.load %arg30[%c1_18, %c0_19] : memref<40x32xf32, #tpu.memory_space<vmem>>, vector<34x4xf32>
    %18 = arith.truncf %17 : vector<34x4xf32> to vector<34x4xbf16>
    %c1_20 = arith.constant 1 : index
    %c0_21 = arith.constant 0 : index
    %c0_22 = arith.constant 0 : index
    %19 = vector.load %arg1[%c1_20, %c0_21, %c0_22] : memref<3x4x8xbf16, #tpu.memory_space<vmem>>, vector<1x4x8xbf16>
    %20 = vector.shape_cast %19 : vector<1x4x8xbf16> to vector<4x8xbf16>
    %cst_23 = arith.constant dense<0.000000e+00> : vector<34x8xf32>
    %21 = tpu.matmul %18, %20, %cst_23 {dimension_numbers = #tpu.dot_dimension_numbers<[1], [0], [0], [1], [0, 0, 1, 1], [], []>} : vector<34x4xbf16>, vector<4x8xbf16>, vector<34x8xf32> -> vector<34x8xf32>
    %22 = arith.addf %16, %21 : vector<34x8xf32>
    %c2 = arith.constant 2 : index
    %c0_24 = arith.constant 0 : index
    %23 = vector.load %arg30[%c2, %c0_24] : memref<40x32xf32, #tpu.memory_space<vmem>>, vector<34x4xf32>
    %24 = arith.truncf %23 : vector<34x4xf32> to vector<34x4xbf16>
    %c2_25 = arith.constant 2 : index
    %c0_26 = arith.constant 0 : index
    %c0_27 = arith.constant 0 : index
    %25 = vector.load %arg1[%c2_25, %c0_26, %c0_27] : memref<3x4x8xbf16, #tpu.memory_space<vmem>>, vector<1x4x8xbf16>
    %26 = vector.shape_cast %25 : vector<1x4x8xbf16> to vector<4x8xbf16>
    %cst_28 = arith.constant dense<0.000000e+00> : vector<34x8xf32>
    %27 = tpu.matmul %24, %26, %cst_28 {dimension_numbers = #tpu.dot_dimension_numbers<[1], [0], [0], [1], [0, 0, 1, 1], [], []>} : vector<34x4xbf16>, vector<4x8xbf16>, vector<34x8xf32> -> vector<34x8xf32>
    %28 = arith.addf %22, %27 : vector<34x8xf32>
    %29 = vector.extract_strided_slice %28 {offsets = [0, 0], sizes = [16, 8], strides = [1, 1]} : vector<34x8xf32> to vector<16x8xf32>
    %30 = vector.extract_strided_slice %28 {offsets = [18, 0], sizes = [16, 8], strides = [1, 1]} : vector<34x8xf32> to vector<16x8xf32>
    %31 = tpu.concatenate %29, %30 in 0 : vector<16x8xf32>, vector<16x8xf32> -> vector<32x8xf32>
    %32 = vector.broadcast %1 : vector<1x8xf32> to vector<32x8xf32>
    %33 = arith.addf %31, %32 : vector<32x8xf32>
    %cst_29 = arith.constant dense<0.000000e+00> : vector<8xf32>
    %34 = vector.multi_reduction <add>, %33, %cst_29 [0] : vector<32x8xf32> to vector<8xf32>
    %35 = vector.shape_cast %34 : vector<8xf32> to vector<1x8xf32>
    %cst_30 = arith.constant 3.125000e-02 : f32
    %36 = vector.broadcast %cst_30 : f32 to vector<1x8xf32>
    %37 = arith.mulf %35, %36 : vector<1x8xf32>
    %38 = vector.broadcast %37 : vector<1x8xf32> to vector<32x8xf32>
    %39 = arith.subf %33, %38 : vector<32x8xf32>
    %40 = arith.mulf %39, %39 : vector<32x8xf32>
    %cst_31 = arith.constant dense<0.000000e+00> : vector<8xf32>
    %41 = vector.multi_reduction <add>, %40, %cst_31 [0] : vector<32x8xf32> to vector<8xf32>
    %42 = vector.shape_cast %41 : vector<8xf32> to vector<1x8xf32>
    %cst_32 = arith.constant 3.125000e-02 : f32
    %43 = vector.broadcast %cst_32 : f32 to vector<1x8xf32>
    %44 = arith.mulf %42, %43 : vector<1x8xf32>
    %cst_33 = arith.constant 9.99999974E-6 : f32
    %45 = vector.broadcast %cst_33 : f32 to vector<1x8xf32>
    %46 = arith.addf %44, %45 : vector<1x8xf32>
    %47 = math.rsqrt %46 : vector<1x8xf32>
    %48 = arith.mulf %2, %47 : vector<1x8xf32>
    %49 = vector.broadcast %48 : vector<1x8xf32> to vector<32x8xf32>
    %50 = arith.mulf %39, %49 : vector<32x8xf32>
    %51 = vector.broadcast %3 : vector<1x8xf32> to vector<32x8xf32>
    %52 = arith.addf %50, %51 : vector<32x8xf32>
    %cst_34 = arith.constant 0.000000e+00 : f32
    %53 = vector.broadcast %cst_34 : f32 to vector<32x8xf32>
    %54 = arith.maximumf %52, %53 : vector<32x8xf32>
    %c0_35 = arith.constant 0 : index
    %c0_36 = arith.constant 0 : index
    %55 = vector.load %arg30[%c0_35, %c0_36] : memref<40x32xf32, #tpu.memory_space<vmem>>, vector<32x8xf32>
    tpu.vector_store %arg30[%c0_35, %c0_36], %54 {strides = array<i32>} : memref<40x32xf32, #tpu.memory_space<vmem>>, vector<32x8xf32>,
    %c0_37 = arith.constant 0 : index
    %c0_38 = arith.constant 0 : index
    %56 = tpu.strided_load %arg30[%c0_37, %c0_38] {strides = array<i32: 2, 1>} : memref<40x32xf32, #tpu.memory_space<vmem>>, vector<16x8xf32>
    %c1_39 = arith.constant 1 : index
    %c0_40 = arith.constant 0 : index
    %57 = tpu.strided_load %arg30[%c1_39, %c0_40] {strides = array<i32: 2, 1>} : memref<40x32xf32, #tpu.memory_space<vmem>>, vector<16x8xf32>
    %58 = arith.maximumf %56, %57 : vector<16x8xf32>
    %c0_41 = arith.constant 0 : index
    %c0_42 = arith.constant 0 : index
    %59 = vector.load %arg6[%c0_41, %c0_42] : memref<1x16xf32, #tpu.memory_space<vmem>>, vector<1x16xf32>
    %c0_43 = arith.constant 0 : index
    %c0_44 = arith.constant 0 : index
    %60 = vector.load %arg7[%c0_43, %c0_44] : memref<1x16xf32, #tpu.memory_space<vmem>>, vector<1x16xf32>
    %c0_45 = arith.constant 0 : index
    %c0_46 = arith.constant 0 : index
    %61 = vector.load %arg8[%c0_45, %c0_46] : memref<1x16xf32, #tpu.memory_space<vmem>>, vector<1x16xf32>
    %cst_47 = arith.constant 0.000000e+00 : f32
    %62 = vector.broadcast %cst_47 : f32 to vector<24x8xf32>
    %c0_48 = arith.constant 0 : index
    %c0_49 = arith.constant 0 : index
    %63 = vector.load %arg30[%c0_48, %c0_49] : memref<40x32xf32, #tpu.memory_space<vmem>>, vector<24x8xf32>
    tpu.vector_store %arg30[%c0_48, %c0_49], %62 {strides = array<i32>} : memref<40x32xf32, #tpu.memory_space<vmem>>, vector<24x8xf32>,
    %64 = vector.extract_strided_slice %58 {offsets = [0, 0], sizes = [8, 8], strides = [1, 1]} : vector<16x8xf32> to vector<8x8xf32>
    %c2_50 = arith.constant 2 : index
    %c0_51 = arith.constant 0 : index
    %65 = vector.load %arg30[%c2_50, %c0_51] : memref<40x32xf32, #tpu.memory_space<vmem>>, vector<8x8xf32>
    tpu.vector_store %arg30[%c2_50, %c0_51], %64 {strides = array<i32>} : memref<40x32xf32, #tpu.memory_space<vmem>>, vector<8x8xf32>,
    %66 = vector.extract_strided_slice %58 {offsets = [8, 0], sizes = [8, 8], strides = [1, 1]} : vector<16x8xf32> to vector<8x8xf32>
    %c14 = arith.constant 14 : index
    %c0_52 = arith.constant 0 : index
    %67 = vector.load %arg30[%c14, %c0_52] : memref<40x32xf32, #tpu.memory_space<vmem>>, vector<8x8xf32>
    tpu.vector_store %arg30[%c14, %c0_52], %66 {strides = array<i32>} : memref<40x32xf32, #tpu.memory_space<vmem>>, vector<8x8xf32>,
    %cst_53 = arith.constant 0.000000e+00 : f32
    %68 = vector.broadcast %cst_53 : f32 to vector<20x16xf32>
    %c0_54 = arith.constant 0 : index
    %c0_55 = arith.constant 0 : index
    %69 = vector.load %arg30[%c0_54, %c0_55] : memref<40x32xf32, #tpu.memory_space<vmem>>, vector<20x8xf32>
    %70 = arith.truncf %69 : vector<20x8xf32> to vector<20x8xbf16>
    %c0_56 = arith.constant 0 : index
    %c0_57 = arith.constant 0 : index
    %c0_58 = arith.constant 0 : index
    %71 = vector.load %arg5[%c0_56, %c0_57, %c0_58] : memref<5x8x16xbf16, #tpu.memory_space<vmem>>, vector<1x8x16xbf16>
    %72 = vector.shape_cast %71 : vector<1x8x16xbf16> to vector<8x16xbf16>
    %cst_59 = arith.constant dense<0.000000e+00> : vector<20x16xf32>
    %73 = tpu.matmul %70, %72, %cst_59 {dimension_numbers = #tpu.dot_dimension_numbers<[1], [0], [0], [1], [0, 0, 1, 1], [], []>} : vector<20x8xbf16>, vector<8x16xbf16>, vector<20x16xf32> -> vector<20x16xf32>
    %74 = arith.addf %68, %73 : vector<20x16xf32>
    %c1_60 = arith.constant 1 : index
    %c0_61 = arith.constant 0 : index
    %75 = vector.load %arg30[%c1_60, %c0_61] : memref<40x32xf32, #tpu.memory_space<vmem>>, vector<20x8xf32>
    %76 = arith.truncf %75 : vector<20x8xf32> to vector<20x8xbf16>
    %c1_62 = arith.constant 1 : index
    %c0_63 = arith.constant 0 : index
    %c0_64 = arith.constant 0 : index
    %77 = vector.load %arg5[%c1_62, %c0_63, %c0_64] : memref<5x8x16xbf16, #tpu.memory_space<vmem>>, vector<1x8x16xbf16>
    %78 = vector.shape_cast %77 : vector<1x8x16xbf16> to vector<8x16xbf16>
    %cst_65 = arith.constant dense<0.000000e+00> : vector<20x16xf32>
    %79 = tpu.matmul %76, %78, %cst_65 {dimension_numbers = #tpu.dot_dimension_numbers<[1], [0], [0], [1], [0, 0, 1, 1], [], []>} : vector<20x8xbf16>, vector<8x16xbf16>, vector<20x16xf32> -> vector<20x16xf32>
    %80 = arith.addf %74, %79 : vector<20x16xf32>
    %c2_66 = arith.constant 2 : index
    %c0_67 = arith.constant 0 : index
    %81 = vector.load %arg30[%c2_66, %c0_67] : memref<40x32xf32, #tpu.memory_space<vmem>>, vector<20x8xf32>
    %82 = arith.truncf %81 : vector<20x8xf32> to vector<20x8xbf16>
    %c2_68 = arith.constant 2 : index
    %c0_69 = arith.constant 0 : index
    %c0_70 = arith.constant 0 : index
    %83 = vector.load %arg5[%c2_68, %c0_69, %c0_70] : memref<5x8x16xbf16, #tpu.memory_space<vmem>>, vector<1x8x16xbf16>
    %84 = vector.shape_cast %83 : vector<1x8x16xbf16> to vector<8x16xbf16>
    %cst_71 = arith.constant dense<0.000000e+00> : vector<20x16xf32>
    %85 = tpu.matmul %82, %84, %cst_71 {dimension_numbers = #tpu.dot_dimension_numbers<[1], [0], [0], [1], [0, 0, 1, 1], [], []>} : vector<20x8xbf16>, vector<8x16xbf16>, vector<20x16xf32> -> vector<20x16xf32>
    %86 = arith.addf %80, %85 : vector<20x16xf32>
    %c3 = arith.constant 3 : index
    %c0_72 = arith.constant 0 : index
    %87 = vector.load %arg30[%c3, %c0_72] : memref<40x32xf32, #tpu.memory_space<vmem>>, vector<20x8xf32>
    %88 = arith.truncf %87 : vector<20x8xf32> to vector<20x8xbf16>
    %c3_73 = arith.constant 3 : index
    %c0_74 = arith.constant 0 : index
    %c0_75 = arith.constant 0 : index
    %89 = vector.load %arg5[%c3_73, %c0_74, %c0_75] : memref<5x8x16xbf16, #tpu.memory_space<vmem>>, vector<1x8x16xbf16>
    %90 = vector.shape_cast %89 : vector<1x8x16xbf16> to vector<8x16xbf16>
    %cst_76 = arith.constant dense<0.000000e+00> : vector<20x16xf32>
    %91 = tpu.matmul %88, %90, %cst_76 {dimension_numbers = #tpu.dot_dimension_numbers<[1], [0], [0], [1], [0, 0, 1, 1], [], []>} : vector<20x8xbf16>, vector<8x16xbf16>, vector<20x16xf32> -> vector<20x16xf32>
    %92 = arith.addf %86, %91 : vector<20x16xf32>
    %c4 = arith.constant 4 : index
    %c0_77 = arith.constant 0 : index
    %93 = vector.load %arg30[%c4, %c0_77] : memref<40x32xf32, #tpu.memory_space<vmem>>, vector<20x8xf32>
    %94 = arith.truncf %93 : vector<20x8xf32> to vector<20x8xbf16>
    %c4_78 = arith.constant 4 : index
    %c0_79 = arith.constant 0 : index
    %c0_80 = arith.constant 0 : index
    %95 = vector.load %arg5[%c4_78, %c0_79, %c0_80] : memref<5x8x16xbf16, #tpu.memory_space<vmem>>, vector<1x8x16xbf16>
    %96 = vector.shape_cast %95 : vector<1x8x16xbf16> to vector<8x16xbf16>
    %cst_81 = arith.constant dense<0.000000e+00> : vector<20x16xf32>
    %97 = tpu.matmul %94, %96, %cst_81 {dimension_numbers = #tpu.dot_dimension_numbers<[1], [0], [0], [1], [0, 0, 1, 1], [], []>} : vector<20x8xbf16>, vector<8x16xbf16>, vector<20x16xf32> -> vector<20x16xf32>
    %98 = arith.addf %92, %97 : vector<20x16xf32>
    %99 = vector.extract_strided_slice %98 {offsets = [0, 0], sizes = [8, 16], strides = [1, 1]} : vector<20x16xf32> to vector<8x16xf32>
    %100 = vector.extract_strided_slice %98 {offsets = [12, 0], sizes = [8, 16], strides = [1, 1]} : vector<20x16xf32> to vector<8x16xf32>
    %101 = tpu.concatenate %99, %100 in 0 : vector<8x16xf32>, vector<8x16xf32> -> vector<16x16xf32>
    %102 = vector.broadcast %59 : vector<1x16xf32> to vector<16x16xf32>
    %103 = arith.addf %101, %102 : vector<16x16xf32>
    %cst_82 = arith.constant dense<0.000000e+00> : vector<16xf32>
    %104 = vector.multi_reduction <add>, %103, %cst_82 [0] : vector<16x16xf32> to vector<16xf32>
    %105 = vector.shape_cast %104 : vector<16xf32> to vector<1x16xf32>
    %cst_83 = arith.constant 6.250000e-02 : f32
    %106 = vector.broadcast %cst_83 : f32 to vector<1x16xf32>
    %107 = arith.mulf %105, %106 : vector<1x16xf32>
    %108 = vector.broadcast %107 : vector<1x16xf32> to vector<16x16xf32>
    %109 = arith.subf %103, %108 : vector<16x16xf32>
    %110 = arith.mulf %109, %109 : vector<16x16xf32>
    %cst_84 = arith.constant dense<0.000000e+00> : vector<16xf32>
    %111 = vector.multi_reduction <add>, %110, %cst_84 [0] : vector<16x16xf32> to vector<16xf32>
    %112 = vector.shape_cast %111 : vector<16xf32> to vector<1x16xf32>
    %cst_85 = arith.constant 6.250000e-02 : f32
    %113 = vector.broadcast %cst_85 : f32 to vector<1x16xf32>
    %114 = arith.mulf %112, %113 : vector<1x16xf32>
    %cst_86 = arith.constant 9.99999974E-6 : f32
    %115 = vector.broadcast %cst_86 : f32 to vector<1x16xf32>
    %116 = arith.addf %114, %115 : vector<1x16xf32>
    %117 = math.rsqrt %116 : vector<1x16xf32>
    %118 = arith.mulf %60, %117 : vector<1x16xf32>
    %119 = vector.broadcast %118 : vector<1x16xf32> to vector<16x16xf32>
    %120 = arith.mulf %109, %119 : vector<16x16xf32>
    %121 = vector.broadcast %61 : vector<1x16xf32> to vector<16x16xf32>
    %122 = arith.addf %120, %121 : vector<16x16xf32>
    %cst_87 = arith.constant 0.000000e+00 : f32
    %123 = vector.broadcast %cst_87 : f32 to vector<16x16xf32>
    %124 = arith.maximumf %122, %123 : vector<16x16xf32>
    %c0_88 = arith.constant 0 : index
    %c0_89 = arith.constant 0 : index
    %125 = tpu.strided_load %arg30[%c0_88, %c0_89] {strides = array<i32: 2, 1>} : memref<40x32xf32, #tpu.memory_space<vmem>>, vector<16x16xf32>
    tpu.strided_store %arg30[%c0_88, %c0_89], %124 {strides = array<i32: 2, 1>} : memref<40x32xf32, #tpu.memory_space<vmem>>, vector<16x16xf32>
    %c1_90 = arith.constant 1 : index
    %c0_91 = arith.constant 0 : index
    %126 = tpu.strided_load %arg30[%c1_90, %c0_91] {strides = array<i32: 2, 1>} : memref<40x32xf32, #tpu.memory_space<vmem>>, vector<16x16xf32>
    tpu.strided_store %arg30[%c1_90, %c0_91], %124 {strides = array<i32: 2, 1>} : memref<40x32xf32, #tpu.memory_space<vmem>>, vector<16x16xf32>
    %c0_92 = arith.constant 0 : index
    %c0_93 = arith.constant 0 : index
    %127 = vector.load %arg30[%c0_92, %c0_93] : memref<40x32xf32, #tpu.memory_space<vmem>>, vector<32x16xf32>
    %c0_94 = arith.constant 0 : index
    %c0_95 = arith.constant 0 : index
    %128 = vector.load %arg10[%c0_94, %c0_95] : memref<1x32xf32, #tpu.memory_space<vmem>>, vector<1x32xf32>
    %c0_96 = arith.constant 0 : index
    %c0_97 = arith.constant 0 : index
    %129 = vector.load %arg11[%c0_96, %c0_97] : memref<1x32xf32, #tpu.memory_space<vmem>>, vector<1x32xf32>
    %c0_98 = arith.constant 0 : index
    %c0_99 = arith.constant 0 : index
    %130 = vector.load %arg12[%c0_98, %c0_99] : memref<1x32xf32, #tpu.memory_space<vmem>>, vector<1x32xf32>
    %cst_100 = arith.constant 0.000000e+00 : f32
    %131 = vector.broadcast %cst_100 : f32 to vector<36x16xf32>
    %c0_101 = arith.constant 0 : index
    %c0_102 = arith.constant 0 : index
    %132 = vector.load %arg30[%c0_101, %c0_102] : memref<40x32xf32, #tpu.memory_space<vmem>>, vector<36x16xf32>
    tpu.vector_store %arg30[%c0_101, %c0_102], %131 {strides = array<i32>} : memref<40x32xf32, #tpu.memory_space<vmem>>, vector<36x16xf32>,
    %133 = vector.extract_strided_slice %127 {offsets = [0, 0], sizes = [16, 16], strides = [1, 1]} : vector<32x16xf32> to vector<16x16xf32>
    %c1_103 = arith.constant 1 : index
    %c0_104 = arith.constant 0 : index
    %134 = vector.load %arg30[%c1_103, %c0_104] : memref<40x32xf32, #tpu.memory_space<vmem>>, vector<16x16xf32>
    tpu.vector_store %arg30[%c1_103, %c0_104], %133 {strides = array<i32>} : memref<40x32xf32, #tpu.memory_space<vmem>>, vector<16x16xf32>,
    %135 = vector.extract_strided_slice %127 {offsets = [16, 0], sizes = [16, 16], strides = [1, 1]} : vector<32x16xf32> to vector<16x16xf32>
    %c19_105 = arith.constant 19 : index
    %c0_106 = arith.constant 0 : index
    %136 = vector.load %arg30[%c19_105, %c0_106] : memref<40x32xf32, #tpu.memory_space<vmem>>, vector<16x16xf32>
    tpu.vector_store %arg30[%c19_105, %c0_106], %135 {strides = array<i32>} : memref<40x32xf32, #tpu.memory_space<vmem>>, vector<16x16xf32>,
    %cst_107 = arith.constant 0.000000e+00 : f32
    %137 = vector.broadcast %cst_107 : f32 to vector<34x32xf32>
    %c0_108 = arith.constant 0 : index
    %c0_109 = arith.constant 0 : index
    %138 = vector.load %arg30[%c0_108, %c0_109] : memref<40x32xf32, #tpu.memory_space<vmem>>, vector<34x16xf32>
    %139 = arith.truncf %138 : vector<34x16xf32> to vector<34x16xbf16>
    %c0_110 = arith.constant 0 : index
    %c0_111 = arith.constant 0 : index
    %c0_112 = arith.constant 0 : index
    %140 = vector.load %arg9[%c0_110, %c0_111, %c0_112] : memref<3x16x32xbf16, #tpu.memory_space<vmem>>, vector<1x16x32xbf16>
    %141 = vector.shape_cast %140 : vector<1x16x32xbf16> to vector<16x32xbf16>
    %cst_113 = arith.constant dense<0.000000e+00> : vector<34x32xf32>
    %142 = tpu.matmul %139, %141, %cst_113 {dimension_numbers = #tpu.dot_dimension_numbers<[1], [0], [0], [1], [0, 0, 1, 1], [], []>} : vector<34x16xbf16>, vector<16x32xbf16>, vector<34x32xf32> -> vector<34x32xf32>
    %143 = arith.addf %137, %142 : vector<34x32xf32>
    %c1_114 = arith.constant 1 : index
    %c0_115 = arith.constant 0 : index
    %144 = vector.load %arg30[%c1_114, %c0_115] : memref<40x32xf32, #tpu.memory_space<vmem>>, vector<34x16xf32>
    %145 = arith.truncf %144 : vector<34x16xf32> to vector<34x16xbf16>
    %c1_116 = arith.constant 1 : index
    %c0_117 = arith.constant 0 : index
    %c0_118 = arith.constant 0 : index
    %146 = vector.load %arg9[%c1_116, %c0_117, %c0_118] : memref<3x16x32xbf16, #tpu.memory_space<vmem>>, vector<1x16x32xbf16>
    %147 = vector.shape_cast %146 : vector<1x16x32xbf16> to vector<16x32xbf16>
    %cst_119 = arith.constant dense<0.000000e+00> : vector<34x32xf32>
    %148 = tpu.matmul %145, %147, %cst_119 {dimension_numbers = #tpu.dot_dimension_numbers<[1], [0], [0], [1], [0, 0, 1, 1], [], []>} : vector<34x16xbf16>, vector<16x32xbf16>, vector<34x32xf32> -> vector<34x32xf32>
    %149 = arith.addf %143, %148 : vector<34x32xf32>
    %c2_120 = arith.constant 2 : index
    %c0_121 = arith.constant 0 : index
    %150 = vector.load %arg30[%c2_120, %c0_121] : memref<40x32xf32, #tpu.memory_space<vmem>>, vector<34x16xf32>
    %151 = arith.truncf %150 : vector<34x16xf32> to vector<34x16xbf16>
    %c2_122 = arith.constant 2 : index
    %c0_123 = arith.constant 0 : index
    %c0_124 = arith.constant 0 : index
    %152 = vector.load %arg9[%c2_122, %c0_123, %c0_124] : memref<3x16x32xbf16, #tpu.memory_space<vmem>>, vector<1x16x32xbf16>
    %153 = vector.shape_cast %152 : vector<1x16x32xbf16> to vector<16x32xbf16>
    %cst_125 = arith.constant dense<0.000000e+00> : vector<34x32xf32>
    %154 = tpu.matmul %151, %153, %cst_125 {dimension_numbers = #tpu.dot_dimension_numbers<[1], [0], [0], [1], [0, 0, 1, 1], [], []>} : vector<34x16xbf16>, vector<16x32xbf16>, vector<34x32xf32> -> vector<34x32xf32>
    %155 = arith.addf %149, %154 : vector<34x32xf32>
    %156 = vector.extract_strided_slice %155 {offsets = [0, 0], sizes = [16, 32], strides = [1, 1]} : vector<34x32xf32> to vector<16x32xf32>
    %157 = vector.extract_strided_slice %155 {offsets = [18, 0], sizes = [16, 32], strides = [1, 1]} : vector<34x32xf32> to vector<16x32xf32>
    %158 = tpu.concatenate %156, %157 in 0 : vector<16x32xf32>, vector<16x32xf32> -> vector<32x32xf32>
    %159 = vector.broadcast %128 : vector<1x32xf32> to vector<32x32xf32>
    %160 = arith.addf %158, %159 : vector<32x32xf32>
    %cst_126 = arith.constant dense<0.000000e+00> : vector<32xf32>
    %161 = vector.multi_reduction <add>, %160, %cst_126 [0] : vector<32x32xf32> to vector<32xf32>
    %162 = vector.shape_cast %161 : vector<32xf32> to vector<1x32xf32>
    %cst_127 = arith.constant 3.125000e-02 : f32
    %163 = vector.broadcast %cst_127 : f32 to vector<1x32xf32>
    %164 = arith.mulf %162, %163 : vector<1x32xf32>
    %165 = vector.broadcast %164 : vector<1x32xf32> to vector<32x32xf32>
    %166 = arith.subf %160, %165 : vector<32x32xf32>
    %167 = arith.mulf %166, %166 : vector<32x32xf32>
    %cst_128 = arith.constant dense<0.000000e+00> : vector<32xf32>
    %168 = vector.multi_reduction <add>, %167, %cst_128 [0] : vector<32x32xf32> to vector<32xf32>
    %169 = vector.shape_cast %168 : vector<32xf32> to vector<1x32xf32>
    %cst_129 = arith.constant 3.125000e-02 : f32
    %170 = vector.broadcast %cst_129 : f32 to vector<1x32xf32>
    %171 = arith.mulf %169, %170 : vector<1x32xf32>
    %cst_130 = arith.constant 9.99999974E-6 : f32
    %172 = vector.broadcast %cst_130 : f32 to vector<1x32xf32>
    %173 = arith.addf %171, %172 : vector<1x32xf32>
    %174 = math.rsqrt %173 : vector<1x32xf32>
    %175 = arith.mulf %129, %174 : vector<1x32xf32>
    %176 = vector.broadcast %175 : vector<1x32xf32> to vector<32x32xf32>
    %177 = arith.mulf %166, %176 : vector<32x32xf32>
    %178 = vector.broadcast %130 : vector<1x32xf32> to vector<32x32xf32>
    %179 = arith.addf %177, %178 : vector<32x32xf32>
    %cst_131 = arith.constant 0.000000e+00 : f32
    %180 = vector.broadcast %cst_131 : f32 to vector<32x32xf32>
    %181 = arith.maximumf %179, %180 : vector<32x32xf32>
    %c0_132 = arith.constant 0 : index
    %c0_133 = arith.constant 0 : index
    %182 = vector.load %arg30[%c0_132, %c0_133] : memref<40x32xf32, #tpu.memory_space<vmem>>, vector<32x32xf32>
    tpu.vector_store %arg30[%c0_132, %c0_133], %181 {strides = array<i32>} : memref<40x32xf32, #tpu.memory_space<vmem>>, vector<32x32xf32>,
    %c0_134 = arith.constant 0 : index
    %c0_135 = arith.constant 0 : index
    %183 = tpu.strided_load %arg30[%c0_134, %c0_135] {strides = array<i32: 2, 1>} : memref<40x32xf32, #tpu.memory_space<vmem>>, vector<16x32xf32>
    %c1_136 = arith.constant 1 : index
    %c0_137 = arith.constant 0 : index
    %184 = tpu.strided_load %arg30[%c1_136, %c0_137] {strides = array<i32: 2, 1>} : memref<40x32xf32, #tpu.memory_space<vmem>>, vector<16x32xf32>
    %185 = arith.maximumf %183, %184 : vector<16x32xf32>
    %c0_138 = arith.constant 0 : index
    %c0_139 = arith.constant 0 : index
    %186 = vector.load %arg14[%c0_138, %c0_139] : memref<1x16xf32, #tpu.memory_space<vmem>>, vector<1x16xf32>
    %c0_140 = arith.constant 0 : index
    %c0_141 = arith.constant 0 : index
    %187 = vector.load %arg15[%c0_140, %c0_141] : memref<1x16xf32, #tpu.memory_space<vmem>>, vector<1x16xf32>
    %c0_142 = arith.constant 0 : index
    %c0_143 = arith.constant 0 : index
    %188 = vector.load %arg16[%c0_142, %c0_143] : memref<1x16xf32, #tpu.memory_space<vmem>>, vector<1x16xf32>
    %cst_144 = arith.constant 0.000000e+00 : f32
    %189 = vector.broadcast %cst_144 : f32 to vector<20x32xf32>
    %c0_145 = arith.constant 0 : index
    %c0_146 = arith.constant 0 : index
    %190 = vector.load %arg30[%c0_145, %c0_146] : memref<40x32xf32, #tpu.memory_space<vmem>>, vector<20x32xf32>
    tpu.vector_store %arg30[%c0_145, %c0_146], %189 {strides = array<i32>} : memref<40x32xf32, #tpu.memory_space<vmem>>, vector<20x32xf32>,
    %191 = vector.extract_strided_slice %185 {offsets = [0, 0], sizes = [8, 32], strides = [1, 1]} : vector<16x32xf32> to vector<8x32xf32>
    %c1_147 = arith.constant 1 : index
    %c0_148 = arith.constant 0 : index
    %192 = vector.load %arg30[%c1_147, %c0_148] : memref<40x32xf32, #tpu.memory_space<vmem>>, vector<8x32xf32>
    tpu.vector_store %arg30[%c1_147, %c0_148], %191 {strides = array<i32>} : memref<40x32xf32, #tpu.memory_space<vmem>>, vector<8x32xf32>,
    %193 = vector.extract_strided_slice %185 {offsets = [8, 0], sizes = [8, 32], strides = [1, 1]} : vector<16x32xf32> to vector<8x32xf32>
    %c11 = arith.constant 11 : index
    %c0_149 = arith.constant 0 : index
    %194 = vector.load %arg30[%c11, %c0_149] : memref<40x32xf32, #tpu.memory_space<vmem>>, vector<8x32xf32>
    tpu.vector_store %arg30[%c11, %c0_149], %193 {strides = array<i32>} : memref<40x32xf32, #tpu.memory_space<vmem>>, vector<8x32xf32>,
    %cst_150 = arith.constant 0.000000e+00 : f32
    %195 = vector.broadcast %cst_150 : f32 to vector<18x16xf32>
    %c0_151 = arith.constant 0 : index
    %c0_152 = arith.constant 0 : index
    %196 = vector.load %arg30[%c0_151, %c0_152] : memref<40x32xf32, #tpu.memory_space<vmem>>, vector<18x32xf32>
    %197 = arith.truncf %196 : vector<18x32xf32> to vector<18x32xbf16>
    %c0_153 = arith.constant 0 : index
    %c0_154 = arith.constant 0 : index
    %c0_155 = arith.constant 0 : index
    %198 = vector.load %arg13[%c0_153, %c0_154, %c0_155] : memref<3x32x16xbf16, #tpu.memory_space<vmem>>, vector<1x32x16xbf16>
    %199 = vector.shape_cast %198 : vector<1x32x16xbf16> to vector<32x16xbf16>
    %cst_156 = arith.constant dense<0.000000e+00> : vector<18x16xf32>
    %200 = tpu.matmul %197, %199, %cst_156 {dimension_numbers = #tpu.dot_dimension_numbers<[1], [0], [0], [1], [0, 0, 1, 1], [], []>} : vector<18x32xbf16>, vector<32x16xbf16>, vector<18x16xf32> -> vector<18x16xf32>
    %201 = arith.addf %195, %200 : vector<18x16xf32>
    %c1_157 = arith.constant 1 : index
    %c0_158 = arith.constant 0 : index
    %202 = vector.load %arg30[%c1_157, %c0_158] : memref<40x32xf32, #tpu.memory_space<vmem>>, vector<18x32xf32>
    %203 = arith.truncf %202 : vector<18x32xf32> to vector<18x32xbf16>
    %c1_159 = arith.constant 1 : index
    %c0_160 = arith.constant 0 : index
    %c0_161 = arith.constant 0 : index
    %204 = vector.load %arg13[%c1_159, %c0_160, %c0_161] : memref<3x32x16xbf16, #tpu.memory_space<vmem>>, vector<1x32x16xbf16>
    %205 = vector.shape_cast %204 : vector<1x32x16xbf16> to vector<32x16xbf16>
    %cst_162 = arith.constant dense<0.000000e+00> : vector<18x16xf32>
    %206 = tpu.matmul %203, %205, %cst_162 {dimension_numbers = #tpu.dot_dimension_numbers<[1], [0], [0], [1], [0, 0, 1, 1], [], []>} : vector<18x32xbf16>, vector<32x16xbf16>, vector<18x16xf32> -> vector<18x16xf32>
    %207 = arith.addf %201, %206 : vector<18x16xf32>
    %c2_163 = arith.constant 2 : index
    %c0_164 = arith.constant 0 : index
    %208 = vector.load %arg30[%c2_163, %c0_164] : memref<40x32xf32, #tpu.memory_space<vmem>>, vector<18x32xf32>
    %209 = arith.truncf %208 : vector<18x32xf32> to vector<18x32xbf16>
    %c2_165 = arith.constant 2 : index
    %c0_166 = arith.constant 0 : index
    %c0_167 = arith.constant 0 : index
    %210 = vector.load %arg13[%c2_165, %c0_166, %c0_167] : memref<3x32x16xbf16, #tpu.memory_space<vmem>>, vector<1x32x16xbf16>
    %211 = vector.shape_cast %210 : vector<1x32x16xbf16> to vector<32x16xbf16>
    %cst_168 = arith.constant dense<0.000000e+00> : vector<18x16xf32>
    %212 = tpu.matmul %209, %211, %cst_168 {dimension_numbers = #tpu.dot_dimension_numbers<[1], [0], [0], [1], [0, 0, 1, 1], [], []>} : vector<18x32xbf16>, vector<32x16xbf16>, vector<18x16xf32> -> vector<18x16xf32>
    %213 = arith.addf %207, %212 : vector<18x16xf32>
    %214 = vector.extract_strided_slice %213 {offsets = [0, 0], sizes = [8, 16], strides = [1, 1]} : vector<18x16xf32> to vector<8x16xf32>
    %215 = vector.extract_strided_slice %213 {offsets = [10, 0], sizes = [8, 16], strides = [1, 1]} : vector<18x16xf32> to vector<8x16xf32>
    %216 = tpu.concatenate %214, %215 in 0 : vector<8x16xf32>, vector<8x16xf32> -> vector<16x16xf32>
    %217 = vector.broadcast %186 : vector<1x16xf32> to vector<16x16xf32>
    %218 = arith.addf %216, %217 : vector<16x16xf32>
    %cst_169 = arith.constant dense<0.000000e+00> : vector<16xf32>
    %219 = vector.multi_reduction <add>, %218, %cst_169 [0] : vector<16x16xf32> to vector<16xf32>
    %220 = vector.shape_cast %219 : vector<16xf32> to vector<1x16xf32>
    %cst_170 = arith.constant 6.250000e-02 : f32
    %221 = vector.broadcast %cst_170 : f32 to vector<1x16xf32>
    %222 = arith.mulf %220, %221 : vector<1x16xf32>
    %223 = vector.broadcast %222 : vector<1x16xf32> to vector<16x16xf32>
    %224 = arith.subf %218, %223 : vector<16x16xf32>
    %225 = arith.mulf %224, %224 : vector<16x16xf32>
    %cst_171 = arith.constant dense<0.000000e+00> : vector<16xf32>
    %226 = vector.multi_reduction <add>, %225, %cst_171 [0] : vector<16x16xf32> to vector<16xf32>
    %227 = vector.shape_cast %226 : vector<16xf32> to vector<1x16xf32>
    %cst_172 = arith.constant 6.250000e-02 : f32
    %228 = vector.broadcast %cst_172 : f32 to vector<1x16xf32>
    %229 = arith.mulf %227, %228 : vector<1x16xf32>
    %cst_173 = arith.constant 9.99999974E-6 : f32
    %230 = vector.broadcast %cst_173 : f32 to vector<1x16xf32>
    %231 = arith.addf %229, %230 : vector<1x16xf32>
    %232 = math.rsqrt %231 : vector<1x16xf32>
    %233 = arith.mulf %187, %232 : vector<1x16xf32>
    %234 = vector.broadcast %233 : vector<1x16xf32> to vector<16x16xf32>
    %235 = arith.mulf %224, %234 : vector<16x16xf32>
    %236 = vector.broadcast %188 : vector<1x16xf32> to vector<16x16xf32>
    %237 = arith.addf %235, %236 : vector<16x16xf32>
    %cst_174 = arith.constant 0.000000e+00 : f32
    %238 = vector.broadcast %cst_174 : f32 to vector<16x16xf32>
    %239 = arith.maximumf %237, %238 : vector<16x16xf32>
    %c0_175 = arith.constant 0 : index
    %c0_176 = arith.constant 0 : index
    %240 = tpu.strided_load %arg30[%c0_175, %c0_176] {strides = array<i32: 2, 1>} : memref<40x32xf32, #tpu.memory_space<vmem>>, vector<16x16xf32>
    tpu.strided_store %arg30[%c0_175, %c0_176], %239 {strides = array<i32: 2, 1>} : memref<40x32xf32, #tpu.memory_space<vmem>>, vector<16x16xf32>
    %c1_177 = arith.constant 1 : index
    %c0_178 = arith.constant 0 : index
    %241 = tpu.strided_load %arg30[%c1_177, %c0_178] {strides = array<i32: 2, 1>} : memref<40x32xf32, #tpu.memory_space<vmem>>, vector<16x16xf32>
    tpu.strided_store %arg30[%c1_177, %c0_178], %239 {strides = array<i32: 2, 1>} : memref<40x32xf32, #tpu.memory_space<vmem>>, vector<16x16xf32>
    %c0_179 = arith.constant 0 : index
    %c0_180 = arith.constant 0 : index
    %242 = vector.load %arg30[%c0_179, %c0_180] : memref<40x32xf32, #tpu.memory_space<vmem>>, vector<32x16xf32>
    %c0_181 = arith.constant 0 : index
    %c0_182 = arith.constant 0 : index
    %243 = vector.load %arg18[%c0_181, %c0_182] : memref<1x8xf32, #tpu.memory_space<vmem>>, vector<1x8xf32>
    %c0_183 = arith.constant 0 : index
    %c0_184 = arith.constant 0 : index
    %244 = vector.load %arg19[%c0_183, %c0_184] : memref<1x8xf32, #tpu.memory_space<vmem>>, vector<1x8xf32>
    %c0_185 = arith.constant 0 : index
    %c0_186 = arith.constant 0 : index
    %245 = vector.load %arg20[%c0_185, %c0_186] : memref<1x8xf32, #tpu.memory_space<vmem>>, vector<1x8xf32>
    %cst_187 = arith.constant 0.000000e+00 : f32
    %246 = vector.broadcast %cst_187 : f32 to vector<40x16xf32>
    %c0_188 = arith.constant 0 : index
    %c0_189 = arith.constant 0 : index
    %247 = vector.load %arg30[%c0_188, %c0_189] : memref<40x32xf32, #tpu.memory_space<vmem>>, vector<40x16xf32>
    tpu.vector_store %arg30[%c0_188, %c0_189], %246 {strides = array<i32>} : memref<40x32xf32, #tpu.memory_space<vmem>>, vector<40x16xf32>,
    %248 = vector.extract_strided_slice %242 {offsets = [0, 0], sizes = [16, 16], strides = [1, 1]} : vector<32x16xf32> to vector<16x16xf32>
    %c2_190 = arith.constant 2 : index
    %c0_191 = arith.constant 0 : index
    %249 = vector.load %arg30[%c2_190, %c0_191] : memref<40x32xf32, #tpu.memory_space<vmem>>, vector<16x16xf32>
    tpu.vector_store %arg30[%c2_190, %c0_191], %248 {strides = array<i32>} : memref<40x32xf32, #tpu.memory_space<vmem>>, vector<16x16xf32>,
    %250 = vector.extract_strided_slice %242 {offsets = [16, 0], sizes = [16, 16], strides = [1, 1]} : vector<32x16xf32> to vector<16x16xf32>
    %c22 = arith.constant 22 : index
    %c0_192 = arith.constant 0 : index
    %251 = vector.load %arg30[%c22, %c0_192] : memref<40x32xf32, #tpu.memory_space<vmem>>, vector<16x16xf32>
    tpu.vector_store %arg30[%c22, %c0_192], %250 {strides = array<i32>} : memref<40x32xf32, #tpu.memory_space<vmem>>, vector<16x16xf32>,
    %cst_193 = arith.constant 0.000000e+00 : f32
    %252 = vector.broadcast %cst_193 : f32 to vector<36x8xf32>
    %c0_194 = arith.constant 0 : index
    %c0_195 = arith.constant 0 : index
    %253 = vector.load %arg30[%c0_194, %c0_195] : memref<40x32xf32, #tpu.memory_space<vmem>>, vector<36x16xf32>
    %254 = arith.truncf %253 : vector<36x16xf32> to vector<36x16xbf16>
    %c0_196 = arith.constant 0 : index
    %c0_197 = arith.constant 0 : index
    %c0_198 = arith.constant 0 : index
    %255 = vector.load %arg17[%c0_196, %c0_197, %c0_198] : memref<5x16x8xbf16, #tpu.memory_space<vmem>>, vector<1x16x8xbf16>
    %256 = vector.shape_cast %255 : vector<1x16x8xbf16> to vector<16x8xbf16>
    %cst_199 = arith.constant dense<0.000000e+00> : vector<36x8xf32>
    %257 = tpu.matmul %254, %256, %cst_199 {dimension_numbers = #tpu.dot_dimension_numbers<[1], [0], [0], [1], [0, 0, 1, 1], [], []>} : vector<36x16xbf16>, vector<16x8xbf16>, vector<36x8xf32> -> vector<36x8xf32>
    %258 = arith.addf %252, %257 : vector<36x8xf32>
    %c1_200 = arith.constant 1 : index
    %c0_201 = arith.constant 0 : index
    %259 = vector.load %arg30[%c1_200, %c0_201] : memref<40x32xf32, #tpu.memory_space<vmem>>, vector<36x16xf32>
    %260 = arith.truncf %259 : vector<36x16xf32> to vector<36x16xbf16>
    %c1_202 = arith.constant 1 : index
    %c0_203 = arith.constant 0 : index
    %c0_204 = arith.constant 0 : index
    %261 = vector.load %arg17[%c1_202, %c0_203, %c0_204] : memref<5x16x8xbf16, #tpu.memory_space<vmem>>, vector<1x16x8xbf16>
    %262 = vector.shape_cast %261 : vector<1x16x8xbf16> to vector<16x8xbf16>
    %cst_205 = arith.constant dense<0.000000e+00> : vector<36x8xf32>
    %263 = tpu.matmul %260, %262, %cst_205 {dimension_numbers = #tpu.dot_dimension_numbers<[1], [0], [0], [1], [0, 0, 1, 1], [], []>} : vector<36x16xbf16>, vector<16x8xbf16>, vector<36x8xf32> -> vector<36x8xf32>
    %264 = arith.addf %258, %263 : vector<36x8xf32>
    %c2_206 = arith.constant 2 : index
    %c0_207 = arith.constant 0 : index
    %265 = vector.load %arg30[%c2_206, %c0_207] : memref<40x32xf32, #tpu.memory_space<vmem>>, vector<36x16xf32>
    %266 = arith.truncf %265 : vector<36x16xf32> to vector<36x16xbf16>
    %c2_208 = arith.constant 2 : index
    %c0_209 = arith.constant 0 : index
    %c0_210 = arith.constant 0 : index
    %267 = vector.load %arg17[%c2_208, %c0_209, %c0_210] : memref<5x16x8xbf16, #tpu.memory_space<vmem>>, vector<1x16x8xbf16>
    %268 = vector.shape_cast %267 : vector<1x16x8xbf16> to vector<16x8xbf16>
    %cst_211 = arith.constant dense<0.000000e+00> : vector<36x8xf32>
    %269 = tpu.matmul %266, %268, %cst_211 {dimension_numbers = #tpu.dot_dimension_numbers<[1], [0], [0], [1], [0, 0, 1, 1], [], []>} : vector<36x16xbf16>, vector<16x8xbf16>, vector<36x8xf32> -> vector<36x8xf32>
    %270 = arith.addf %264, %269 : vector<36x8xf32>
    %c3_212 = arith.constant 3 : index
    %c0_213 = arith.constant 0 : index
    %271 = vector.load %arg30[%c3_212, %c0_213] : memref<40x32xf32, #tpu.memory_space<vmem>>, vector<36x16xf32>
    %272 = arith.truncf %271 : vector<36x16xf32> to vector<36x16xbf16>
    %c3_214 = arith.constant 3 : index
    %c0_215 = arith.constant 0 : index
    %c0_216 = arith.constant 0 : index
    %273 = vector.load %arg17[%c3_214, %c0_215, %c0_216] : memref<5x16x8xbf16, #tpu.memory_space<vmem>>, vector<1x16x8xbf16>
    %274 = vector.shape_cast %273 : vector<1x16x8xbf16> to vector<16x8xbf16>
    %cst_217 = arith.constant dense<0.000000e+00> : vector<36x8xf32>
    %275 = tpu.matmul %272, %274, %cst_217 {dimension_numbers = #tpu.dot_dimension_numbers<[1], [0], [0], [1], [0, 0, 1, 1], [], []>} : vector<36x16xbf16>, vector<16x8xbf16>, vector<36x8xf32> -> vector<36x8xf32>
    %276 = arith.addf %270, %275 : vector<36x8xf32>
    %c4_218 = arith.constant 4 : index
    %c0_219 = arith.constant 0 : index
    %277 = vector.load %arg30[%c4_218, %c0_219] : memref<40x32xf32, #tpu.memory_space<vmem>>, vector<36x16xf32>
    %278 = arith.truncf %277 : vector<36x16xf32> to vector<36x16xbf16>
    %c4_220 = arith.constant 4 : index
    %c0_221 = arith.constant 0 : index
    %c0_222 = arith.constant 0 : index
    %279 = vector.load %arg17[%c4_220, %c0_221, %c0_222] : memref<5x16x8xbf16, #tpu.memory_space<vmem>>, vector<1x16x8xbf16>
    %280 = vector.shape_cast %279 : vector<1x16x8xbf16> to vector<16x8xbf16>
    %cst_223 = arith.constant dense<0.000000e+00> : vector<36x8xf32>
    %281 = tpu.matmul %278, %280, %cst_223 {dimension_numbers = #tpu.dot_dimension_numbers<[1], [0], [0], [1], [0, 0, 1, 1], [], []>} : vector<36x16xbf16>, vector<16x8xbf16>, vector<36x8xf32> -> vector<36x8xf32>
    %282 = arith.addf %276, %281 : vector<36x8xf32>
    %283 = vector.extract_strided_slice %282 {offsets = [0, 0], sizes = [16, 8], strides = [1, 1]} : vector<36x8xf32> to vector<16x8xf32>
    %284 = vector.extract_strided_slice %282 {offsets = [20, 0], sizes = [16, 8], strides = [1, 1]} : vector<36x8xf32> to vector<16x8xf32>
    %285 = tpu.concatenate %283, %284 in 0 : vector<16x8xf32>, vector<16x8xf32> -> vector<32x8xf32>
    %286 = vector.broadcast %243 : vector<1x8xf32> to vector<32x8xf32>
    %287 = arith.addf %285, %286 : vector<32x8xf32>
    %cst_224 = arith.constant dense<0.000000e+00> : vector<8xf32>
    %288 = vector.multi_reduction <add>, %287, %cst_224 [0] : vector<32x8xf32> to vector<8xf32>
    %289 = vector.shape_cast %288 : vector<8xf32> to vector<1x8xf32>
    %cst_225 = arith.constant 3.125000e-02 : f32
    %290 = vector.broadcast %cst_225 : f32 to vector<1x8xf32>
    %291 = arith.mulf %289, %290 : vector<1x8xf32>
    %292 = vector.broadcast %291 : vector<1x8xf32> to vector<32x8xf32>
    %293 = arith.subf %287, %292 : vector<32x8xf32>
    %294 = arith.mulf %293, %293 : vector<32x8xf32>
    %cst_226 = arith.constant dense<0.000000e+00> : vector<8xf32>
    %295 = vector.multi_reduction <add>, %294, %cst_226 [0] : vector<32x8xf32> to vector<8xf32>
    %296 = vector.shape_cast %295 : vector<8xf32> to vector<1x8xf32>
    %cst_227 = arith.constant 3.125000e-02 : f32
    %297 = vector.broadcast %cst_227 : f32 to vector<1x8xf32>
    %298 = arith.mulf %296, %297 : vector<1x8xf32>
    %cst_228 = arith.constant 9.99999974E-6 : f32
    %299 = vector.broadcast %cst_228 : f32 to vector<1x8xf32>
    %300 = arith.addf %298, %299 : vector<1x8xf32>
    %301 = math.rsqrt %300 : vector<1x8xf32>
    %302 = arith.mulf %244, %301 : vector<1x8xf32>
    %303 = vector.broadcast %302 : vector<1x8xf32> to vector<32x8xf32>
    %304 = arith.mulf %293, %303 : vector<32x8xf32>
    %305 = vector.broadcast %245 : vector<1x8xf32> to vector<32x8xf32>
    %306 = arith.addf %304, %305 : vector<32x8xf32>
    %cst_229 = arith.constant 0.000000e+00 : f32
    %307 = vector.broadcast %cst_229 : f32 to vector<32x8xf32>
    %308 = arith.maximumf %306, %307 : vector<32x8xf32>
    %c0_230 = arith.constant 0 : index
    %c0_231 = arith.constant 0 : index
    %309 = vector.load %arg30[%c0_230, %c0_231] : memref<40x32xf32, #tpu.memory_space<vmem>>, vector<32x8xf32>
    tpu.vector_store %arg30[%c0_230, %c0_231], %308 {strides = array<i32>} : memref<40x32xf32, #tpu.memory_space<vmem>>, vector<32x8xf32>,
    %c0_232 = arith.constant 0 : index
    %c0_233 = arith.constant 0 : index
    %310 = tpu.strided_load %arg30[%c0_232, %c0_233] {strides = array<i32: 2, 1>} : memref<40x32xf32, #tpu.memory_space<vmem>>, vector<16x8xf32>
    %c1_234 = arith.constant 1 : index
    %c0_235 = arith.constant 0 : index
    %311 = tpu.strided_load %arg30[%c1_234, %c0_235] {strides = array<i32: 2, 1>} : memref<40x32xf32, #tpu.memory_space<vmem>>, vector<16x8xf32>
    %312 = arith.maximumf %310, %311 : vector<16x8xf32>
    %c0_236 = arith.constant 0 : index
    %c0_237 = arith.constant 0 : index
    %313 = vector.load %arg22[%c0_236, %c0_237] : memref<1x4xf32, #tpu.memory_space<vmem>>, vector<1x4xf32>
    %c0_238 = arith.constant 0 : index
    %c0_239 = arith.constant 0 : index
    %314 = vector.load %arg23[%c0_238, %c0_239] : memref<1x4xf32, #tpu.memory_space<vmem>>, vector<1x4xf32>
    %c0_240 = arith.constant 0 : index
    %c0_241 = arith.constant 0 : index
    %315 = vector.load %arg24[%c0_240, %c0_241] : memref<1x4xf32, #tpu.memory_space<vmem>>, vector<1x4xf32>
    %cst_242 = arith.constant 0.000000e+00 : f32
    %316 = vector.broadcast %cst_242 : f32 to vector<20x8xf32>
    %c0_243 = arith.constant 0 : index
    %c0_244 = arith.constant 0 : index
    %317 = vector.load %arg30[%c0_243, %c0_244] : memref<40x32xf32, #tpu.memory_space<vmem>>, vector<20x8xf32>
    tpu.vector_store %arg30[%c0_243, %c0_244], %316 {strides = array<i32>} : memref<40x32xf32, #tpu.memory_space<vmem>>, vector<20x8xf32>,
    %318 = vector.extract_strided_slice %312 {offsets = [0, 0], sizes = [8, 8], strides = [1, 1]} : vector<16x8xf32> to vector<8x8xf32>
    %c1_245 = arith.constant 1 : index
    %c0_246 = arith.constant 0 : index
    %319 = vector.load %arg30[%c1_245, %c0_246] : memref<40x32xf32, #tpu.memory_space<vmem>>, vector<8x8xf32>
    tpu.vector_store %arg30[%c1_245, %c0_246], %318 {strides = array<i32>} : memref<40x32xf32, #tpu.memory_space<vmem>>, vector<8x8xf32>,
    %320 = vector.extract_strided_slice %312 {offsets = [8, 0], sizes = [8, 8], strides = [1, 1]} : vector<16x8xf32> to vector<8x8xf32>
    %c11_247 = arith.constant 11 : index
    %c0_248 = arith.constant 0 : index
    %321 = vector.load %arg30[%c11_247, %c0_248] : memref<40x32xf32, #tpu.memory_space<vmem>>, vector<8x8xf32>
    tpu.vector_store %arg30[%c11_247, %c0_248], %320 {strides = array<i32>} : memref<40x32xf32, #tpu.memory_space<vmem>>, vector<8x8xf32>,
    %cst_249 = arith.constant 0.000000e+00 : f32
    %322 = vector.broadcast %cst_249 : f32 to vector<18x4xf32>
    %c0_250 = arith.constant 0 : index
    %c0_251 = arith.constant 0 : index
    %323 = vector.load %arg30[%c0_250, %c0_251] : memref<40x32xf32, #tpu.memory_space<vmem>>, vector<18x8xf32>
    %324 = arith.truncf %323 : vector<18x8xf32> to vector<18x8xbf16>
    %c0_252 = arith.constant 0 : index
    %c0_253 = arith.constant 0 : index
    %c0_254 = arith.constant 0 : index
    %325 = vector.load %arg21[%c0_252, %c0_253, %c0_254] : memref<3x8x4xbf16, #tpu.memory_space<vmem>>, vector<1x8x4xbf16>
    %326 = vector.shape_cast %325 : vector<1x8x4xbf16> to vector<8x4xbf16>
    %cst_255 = arith.constant dense<0.000000e+00> : vector<18x4xf32>
    %327 = tpu.matmul %324, %326, %cst_255 {dimension_numbers = #tpu.dot_dimension_numbers<[1], [0], [0], [1], [0, 0, 1, 1], [], []>} : vector<18x8xbf16>, vector<8x4xbf16>, vector<18x4xf32> -> vector<18x4xf32>
    %328 = arith.addf %322, %327 : vector<18x4xf32>
    %c1_256 = arith.constant 1 : index
    %c0_257 = arith.constant 0 : index
    %329 = vector.load %arg30[%c1_256, %c0_257] : memref<40x32xf32, #tpu.memory_space<vmem>>, vector<18x8xf32>
    %330 = arith.truncf %329 : vector<18x8xf32> to vector<18x8xbf16>
    %c1_258 = arith.constant 1 : index
    %c0_259 = arith.constant 0 : index
    %c0_260 = arith.constant 0 : index
    %331 = vector.load %arg21[%c1_258, %c0_259, %c0_260] : memref<3x8x4xbf16, #tpu.memory_space<vmem>>, vector<1x8x4xbf16>
    %332 = vector.shape_cast %331 : vector<1x8x4xbf16> to vector<8x4xbf16>
    %cst_261 = arith.constant dense<0.000000e+00> : vector<18x4xf32>
    %333 = tpu.matmul %330, %332, %cst_261 {dimension_numbers = #tpu.dot_dimension_numbers<[1], [0], [0], [1], [0, 0, 1, 1], [], []>} : vector<18x8xbf16>, vector<8x4xbf16>, vector<18x4xf32> -> vector<18x4xf32>
    %334 = arith.addf %328, %333 : vector<18x4xf32>
    %c2_262 = arith.constant 2 : index
    %c0_263 = arith.constant 0 : index
    %335 = vector.load %arg30[%c2_262, %c0_263] : memref<40x32xf32, #tpu.memory_space<vmem>>, vector<18x8xf32>
    %336 = arith.truncf %335 : vector<18x8xf32> to vector<18x8xbf16>
    %c2_264 = arith.constant 2 : index
    %c0_265 = arith.constant 0 : index
    %c0_266 = arith.constant 0 : index
    %337 = vector.load %arg21[%c2_264, %c0_265, %c0_266] : memref<3x8x4xbf16, #tpu.memory_space<vmem>>, vector<1x8x4xbf16>
    %338 = vector.shape_cast %337 : vector<1x8x4xbf16> to vector<8x4xbf16>
    %cst_267 = arith.constant dense<0.000000e+00> : vector<18x4xf32>
    %339 = tpu.matmul %336, %338, %cst_267 {dimension_numbers = #tpu.dot_dimension_numbers<[1], [0], [0], [1], [0, 0, 1, 1], [], []>} : vector<18x8xbf16>, vector<8x4xbf16>, vector<18x4xf32> -> vector<18x4xf32>
    %340 = arith.addf %334, %339 : vector<18x4xf32>
    %341 = vector.extract_strided_slice %340 {offsets = [0, 0], sizes = [8, 4], strides = [1, 1]} : vector<18x4xf32> to vector<8x4xf32>
    %342 = vector.extract_strided_slice %340 {offsets = [10, 0], sizes = [8, 4], strides = [1, 1]} : vector<18x4xf32> to vector<8x4xf32>
    %343 = tpu.concatenate %341, %342 in 0 : vector<8x4xf32>, vector<8x4xf32> -> vector<16x4xf32>
    %344 = vector.broadcast %313 : vector<1x4xf32> to vector<16x4xf32>
    %345 = arith.addf %343, %344 : vector<16x4xf32>
    %cst_268 = arith.constant dense<0.000000e+00> : vector<4xf32>
    %346 = vector.multi_reduction <add>, %345, %cst_268 [0] : vector<16x4xf32> to vector<4xf32>
    %347 = vector.shape_cast %346 : vector<4xf32> to vector<1x4xf32>
    %cst_269 = arith.constant 6.250000e-02 : f32
    %348 = vector.broadcast %cst_269 : f32 to vector<1x4xf32>
    %349 = arith.mulf %347, %348 : vector<1x4xf32>
    %350 = vector.broadcast %349 : vector<1x4xf32> to vector<16x4xf32>
    %351 = arith.subf %345, %350 : vector<16x4xf32>
    %352 = arith.mulf %351, %351 : vector<16x4xf32>
    %cst_270 = arith.constant dense<0.000000e+00> : vector<4xf32>
    %353 = vector.multi_reduction <add>, %352, %cst_270 [0] : vector<16x4xf32> to vector<4xf32>
    %354 = vector.shape_cast %353 : vector<4xf32> to vector<1x4xf32>
    %cst_271 = arith.constant 6.250000e-02 : f32
    %355 = vector.broadcast %cst_271 : f32 to vector<1x4xf32>
    %356 = arith.mulf %354, %355 : vector<1x4xf32>
    %cst_272 = arith.constant 9.99999974E-6 : f32
    %357 = vector.broadcast %cst_272 : f32 to vector<1x4xf32>
    %358 = arith.addf %356, %357 : vector<1x4xf32>
    %359 = math.rsqrt %358 : vector<1x4xf32>
    %360 = arith.mulf %314, %359 : vector<1x4xf32>
    %361 = vector.broadcast %360 : vector<1x4xf32> to vector<16x4xf32>
    %362 = arith.mulf %351, %361 : vector<16x4xf32>
    %363 = vector.broadcast %315 : vector<1x4xf32> to vector<16x4xf32>
    %364 = arith.addf %362, %363 : vector<16x4xf32>
    %cst_273 = arith.constant 0.000000e+00 : f32
    %365 = vector.broadcast %cst_273 : f32 to vector<16x4xf32>
    %366 = arith.maximumf %364, %365 : vector<16x4xf32>
    %c0_274 = arith.constant 0 : index
    %c0_275 = arith.constant 0 : index
    %367 = tpu.strided_load %arg30[%c0_274, %c0_275] {strides = array<i32: 2, 1>} : memref<40x32xf32, #tpu.memory_space<vmem>>, vector<16x4xf32>
    tpu.strided_store %arg30[%c0_274, %c0_275], %366 {strides = array<i32: 2, 1>} : memref<40x32xf32, #tpu.memory_space<vmem>>, vector<16x4xf32>
    %c1_276 = arith.constant 1 : index
    %c0_277 = arith.constant 0 : index
    %368 = tpu.strided_load %arg30[%c1_276, %c0_277] {strides = array<i32: 2, 1>} : memref<40x32xf32, #tpu.memory_space<vmem>>, vector<16x4xf32>
    tpu.strided_store %arg30[%c1_276, %c0_277], %366 {strides = array<i32: 2, 1>} : memref<40x32xf32, #tpu.memory_space<vmem>>, vector<16x4xf32>
    %c0_278 = arith.constant 0 : index
    %c0_279 = arith.constant 0 : index
    %369 = vector.load %arg30[%c0_278, %c0_279] : memref<40x32xf32, #tpu.memory_space<vmem>>, vector<32x4xf32>
    %c0_280 = arith.constant 0 : index
    %c0_281 = arith.constant 0 : index
    %370 = vector.load %arg26[%c0_280, %c0_281] : memref<1x4xf32, #tpu.memory_space<vmem>>, vector<1x4xf32>
    %c0_282 = arith.constant 0 : index
    %c0_283 = arith.constant 0 : index
    %371 = vector.load %arg27[%c0_282, %c0_283] : memref<1x4xf32, #tpu.memory_space<vmem>>, vector<1x4xf32>
    %c0_284 = arith.constant 0 : index
    %c0_285 = arith.constant 0 : index
    %372 = vector.load %arg28[%c0_284, %c0_285] : memref<1x4xf32, #tpu.memory_space<vmem>>, vector<1x4xf32>
    %cst_286 = arith.constant 0.000000e+00 : f32
    %373 = vector.broadcast %cst_286 : f32 to vector<36x4xf32>
    %c0_287 = arith.constant 0 : index
    %c0_288 = arith.constant 0 : index
    %374 = vector.load %arg30[%c0_287, %c0_288] : memref<40x32xf32, #tpu.memory_space<vmem>>, vector<36x4xf32>
    tpu.vector_store %arg30[%c0_287, %c0_288], %373 {strides = array<i32>} : memref<40x32xf32, #tpu.memory_space<vmem>>, vector<36x4xf32>,
    %375 = vector.extract_strided_slice %369 {offsets = [0, 0], sizes = [16, 4], strides = [1, 1]} : vector<32x4xf32> to vector<16x4xf32>
    %c1_289 = arith.constant 1 : index
    %c0_290 = arith.constant 0 : index
    %376 = vector.load %arg30[%c1_289, %c0_290] : memref<40x32xf32, #tpu.memory_space<vmem>>, vector<16x4xf32>
    tpu.vector_store %arg30[%c1_289, %c0_290], %375 {strides = array<i32>} : memref<40x32xf32, #tpu.memory_space<vmem>>, vector<16x4xf32>,
    %377 = vector.extract_strided_slice %369 {offsets = [16, 0], sizes = [16, 4], strides = [1, 1]} : vector<32x4xf32> to vector<16x4xf32>
    %c19_291 = arith.constant 19 : index
    %c0_292 = arith.constant 0 : index
    %378 = vector.load %arg30[%c19_291, %c0_292] : memref<40x32xf32, #tpu.memory_space<vmem>>, vector<16x4xf32>
    tpu.vector_store %arg30[%c19_291, %c0_292], %377 {strides = array<i32>} : memref<40x32xf32, #tpu.memory_space<vmem>>, vector<16x4xf32>,
    %cst_293 = arith.constant 0.000000e+00 : f32
    %379 = vector.broadcast %cst_293 : f32 to vector<34x4xf32>
    %c0_294 = arith.constant 0 : index
    %c0_295 = arith.constant 0 : index
    %380 = vector.load %arg30[%c0_294, %c0_295] : memref<40x32xf32, #tpu.memory_space<vmem>>, vector<34x4xf32>
    %381 = arith.truncf %380 : vector<34x4xf32> to vector<34x4xbf16>
    %c0_296 = arith.constant 0 : index
    %c0_297 = arith.constant 0 : index
    %c0_298 = arith.constant 0 : index
    %382 = vector.load %arg25[%c0_296, %c0_297, %c0_298] : memref<3x4x4xbf16, #tpu.memory_space<vmem>>, vector<1x4x4xbf16>
    %383 = vector.shape_cast %382 : vector<1x4x4xbf16> to vector<4x4xbf16>
    %cst_299 = arith.constant dense<0.000000e+00> : vector<34x4xf32>
    %384 = tpu.matmul %381, %383, %cst_299 {dimension_numbers = #tpu.dot_dimension_numbers<[1], [0], [0], [1], [0, 0, 1, 1], [], []>} : vector<34x4xbf16>, vector<4x4xbf16>, vector<34x4xf32> -> vector<34x4xf32>
    %385 = arith.addf %379, %384 : vector<34x4xf32>
    %c1_300 = arith.constant 1 : index
    %c0_301 = arith.constant 0 : index
    %386 = vector.load %arg30[%c1_300, %c0_301] : memref<40x32xf32, #tpu.memory_space<vmem>>, vector<34x4xf32>
    %387 = arith.truncf %386 : vector<34x4xf32> to vector<34x4xbf16>
    %c1_302 = arith.constant 1 : index
    %c0_303 = arith.constant 0 : index
    %c0_304 = arith.constant 0 : index
    %388 = vector.load %arg25[%c1_302, %c0_303, %c0_304] : memref<3x4x4xbf16, #tpu.memory_space<vmem>>, vector<1x4x4xbf16>
    %389 = vector.shape_cast %388 : vector<1x4x4xbf16> to vector<4x4xbf16>
    %cst_305 = arith.constant dense<0.000000e+00> : vector<34x4xf32>
    %390 = tpu.matmul %387, %389, %cst_305 {dimension_numbers = #tpu.dot_dimension_numbers<[1], [0], [0], [1], [0, 0, 1, 1], [], []>} : vector<34x4xbf16>, vector<4x4xbf16>, vector<34x4xf32> -> vector<34x4xf32>
    %391 = arith.addf %385, %390 : vector<34x4xf32>
    %c2_306 = arith.constant 2 : index
    %c0_307 = arith.constant 0 : index
    %392 = vector.load %arg30[%c2_306, %c0_307] : memref<40x32xf32, #tpu.memory_space<vmem>>, vector<34x4xf32>
    %393 = arith.truncf %392 : vector<34x4xf32> to vector<34x4xbf16>
    %c2_308 = arith.constant 2 : index
    %c0_309 = arith.constant 0 : index
    %c0_310 = arith.constant 0 : index
    %394 = vector.load %arg25[%c2_308, %c0_309, %c0_310] : memref<3x4x4xbf16, #tpu.memory_space<vmem>>, vector<1x4x4xbf16>
    %395 = vector.shape_cast %394 : vector<1x4x4xbf16> to vector<4x4xbf16>
    %cst_311 = arith.constant dense<0.000000e+00> : vector<34x4xf32>
    %396 = tpu.matmul %393, %395, %cst_311 {dimension_numbers = #tpu.dot_dimension_numbers<[1], [0], [0], [1], [0, 0, 1, 1], [], []>} : vector<34x4xbf16>, vector<4x4xbf16>, vector<34x4xf32> -> vector<34x4xf32>
    %397 = arith.addf %391, %396 : vector<34x4xf32>
    %398 = vector.extract_strided_slice %397 {offsets = [0, 0], sizes = [16, 4], strides = [1, 1]} : vector<34x4xf32> to vector<16x4xf32>
    %399 = vector.extract_strided_slice %397 {offsets = [18, 0], sizes = [16, 4], strides = [1, 1]} : vector<34x4xf32> to vector<16x4xf32>
    %400 = tpu.concatenate %398, %399 in 0 : vector<16x4xf32>, vector<16x4xf32> -> vector<32x4xf32>
    %401 = vector.broadcast %370 : vector<1x4xf32> to vector<32x4xf32>
    %402 = arith.addf %400, %401 : vector<32x4xf32>
    %cst_312 = arith.constant dense<0.000000e+00> : vector<4xf32>
    %403 = vector.multi_reduction <add>, %402, %cst_312 [0] : vector<32x4xf32> to vector<4xf32>
    %404 = vector.shape_cast %403 : vector<4xf32> to vector<1x4xf32>
    %cst_313 = arith.constant 3.125000e-02 : f32
    %405 = vector.broadcast %cst_313 : f32 to vector<1x4xf32>
    %406 = arith.mulf %404, %405 : vector<1x4xf32>
    %407 = vector.broadcast %406 : vector<1x4xf32> to vector<32x4xf32>
    %408 = arith.subf %402, %407 : vector<32x4xf32>
    %409 = arith.mulf %408, %408 : vector<32x4xf32>
    %cst_314 = arith.constant dense<0.000000e+00> : vector<4xf32>
    %410 = vector.multi_reduction <add>, %409, %cst_314 [0] : vector<32x4xf32> to vector<4xf32>
    %411 = vector.shape_cast %410 : vector<4xf32> to vector<1x4xf32>
    %cst_315 = arith.constant 3.125000e-02 : f32
    %412 = vector.broadcast %cst_315 : f32 to vector<1x4xf32>
    %413 = arith.mulf %411, %412 : vector<1x4xf32>
    %cst_316 = arith.constant 9.99999974E-6 : f32
    %414 = vector.broadcast %cst_316 : f32 to vector<1x4xf32>
    %415 = arith.addf %413, %414 : vector<1x4xf32>
    %416 = math.rsqrt %415 : vector<1x4xf32>
    %417 = arith.mulf %371, %416 : vector<1x4xf32>
    %418 = vector.broadcast %417 : vector<1x4xf32> to vector<32x4xf32>
    %419 = arith.mulf %408, %418 : vector<32x4xf32>
    %420 = vector.broadcast %372 : vector<1x4xf32> to vector<32x4xf32>
    %421 = arith.addf %419, %420 : vector<32x4xf32>
    %c0_317 = arith.constant 0 : index
    %c0_318 = arith.constant 0 : index
    %422 = vector.load %arg29[%c0_317, %c0_318] : memref<32x4xf32, #tpu.memory_space<vmem>>, vector<32x4xf32>
    tpu.vector_store %arg29[%c0_317, %c0_318], %421 {strides = array<i32>} : memref<32x4xf32, #tpu.memory_space<vmem>>, vector<32x4xf32>,
    return
  }
}

</mosaic_0001>

<bundles_post_ra>
// kernel: tpu_custom_call.1
= control target key start
LH: loop header
LB: loop body
LE: loop exit
PB: predicated region body
PF: predicated region fallthrough
CT: control target
= control target key end

     0   :  { %vm130_vm0 = vcmask 31744   ;;  %v3340_v0 = vmov 0.0   ;;  %s3341_s3 = smov 1   ;;  %vm3342_vm1 = vmmov 0   ;;  %vm135_vm2 = vcmask 27648   ;;  %s3343_s10 = smov 5   ;;  %s3861_s0 = inlined_call_operand.smem [shape: u32[30], index: -1, kind: input, shape index: {}] }
   0x1   :  { %2925 = vmatprep.subr.bf16.mxu0 %v3340_v0  ;;  %s3380_s6 = sld [smem:[%s3861_s0 + %s3341_s3]]   ;;  %2927 = vmatprep.mubr.msk.bf16.mxu0 %vm3342_vm1, %v3340_v0  ;;  %131 = vst.msk [vmem:[#allocation2] sm:$0xff] %vm130_vm0, %v3340_v0  ;;  %132 = vst.msk [vmem:[#allocation2 + $0x8] sm:$0xff] %vm130_vm0, %v3340_v0  ;;  %vm169_vm3 = vcmask 1041408   ;;  %vm890_vm4 = vcmask 125952   ;;  %vm505_vm5 = vcmask 1043456   ;;  %s3344_s14 = smov 2  }
   0x2   :  { %s1_s9 = sld [smem:[%s3861_s0]]   ;;  %133 = vst.msk [vmem:[#allocation2 + $0x10] sm:$0xff] %vm130_vm0, %v3340_v0  ;;  %134 = vst.msk [vmem:[#allocation2 + $0x18] sm:$0xff] %vm130_vm0, %v3340_v0  ;;  %vm401_vm6 = vcmask 64512   ;;  %vm383_vm7 = vcmask 1045504   ;;  %s3345_s18 = smov 3   ;;  %vm829_vm8 = vcmask 130048  }
   0x3   :  { %136 = vst.msk [vmem:[#allocation2 + $0x20] sm:$0xf] %vm135_vm2, %v3340_v0  ;;  %s3438_s13 = sld [smem:[%s3861_s0 + %s3343_s10]]   ;;  %s3346_s22 = smov 4   ;;  %vm1166_vm9 = vcmask 261120   ;;  %vm1245_vm10 = vcmask 257024   ;;  %vm2080_vm11 = vcmask 60416  }
   0x4   :  { %s2683_s17 = sld [smem:[%s3861_s0 + %s3344_s14]]   ;;  %s3347_s26 = smov 9  }
   0x5   :  { %s2684_s21 = sld [smem:[%s3861_s0 + %s3345_s18]]   ;;  %s3348_s30 = smov 6  }
   0x6   :  { %s2685_s25 = sld [smem:[%s3861_s0 + %s3346_s22]]   ;;  %s3349_s4 = smov 7  }
   0x7   :  { %v2711_v1 = vld [vmem:[%s3380_s6 + $0x2] sm:$0x3]  ;;  %v149_v7 = vld [vmem:[%s3380_s6] sm:$0x3]  ;;  %v2718_v22 = vld [vmem:[%s3380_s6 + $0x4] sm:$0x3]  ;;  %s3509_s29 = sld [smem:[%s3861_s0 + %s3347_s26]]  }
   0x8   :  { %v123_v2 = vld [vmem:[%s1_s9] sm:$0xff]  ;;  %v124_v3 = vld [vmem:[%s1_s9 + $0x8] sm:$0xff]  ;;  %v171_v4 = vsel %vm169_vm3, %v2711_v1, 0  ;;  %v125_v5 = vld [vmem:[%s1_s9 + $0x10] sm:$0xff]  ;;  %v239_v11 = vsel %vm169_vm3, %v149_v7, 0  ;;  %v317_v24 = vsel %vm169_vm3, %v2718_v22, 0  ;;  %s2687_s3 = sld [smem:[%s3861_s0 + %s3348_s30]]  }
   0x9   :  { %v126_v6 = vld [vmem:[%s1_s9 + $0x18] sm:$0xff]  ;;  %137 = vst.msk [vmem:[#allocation2 + $0x1] sm:$0xff] %vm130_vm0, %v123_v2  ;;  %138 = vst.msk [vmem:[#allocation2 + $0x9] sm:$0xff] %vm130_vm0, %v124_v3  ;;  %2926 = vmatpush3.bf16.msra.mxu0 %v171_v4  ;;  %v2724_v39 = vld [vmem:[%s3438_s13 + $0x4] sm:$0xf]  ;;  %s2688_s7 = sld [smem:[%s3861_s0 + %s3349_s4]]   ;;  %s3350_s8 = smov 8  }
   0xa   :  { %139 = vst.msk [vmem:[#allocation2 + $0x13] sm:$0xff] %vm130_vm0, %v125_v5  ;;  %140 = vst.msk [vmem:[#allocation2 + $0x1b] sm:$0xff] %vm130_vm0, %v126_v6  ;;  %2939 = vmatprep.subr.bf16.mxu0 %v3340_v0  ;;  %3273 = vmatprep.subr.msk.bf16.mxu1 %vm505_vm5, %v2724_v39  ;;  %v507_v41 = vsel %vm505_vm5, %v2724_v39, 0  ;;  %v3444_v47 = vld [vmem:[%s3438_s13] sm:$0xf]  ;;  %s2689_s11 = sld [smem:[%s3861_s0 + %s3350_s8]]   ;;  %s3351_s12 = smov 13  }
   0xb   :  { %2968 = vmatpush3.bf16.msra.mxu1 %v507_v41  ;;  %v2722_v48 = vld [vmem:[%s2683_s17] ss:$0 sm:$0xff]  ;;  %s3573_s15 = sld [smem:[%s3861_s0 + %s3351_s12]]   ;;  %s3352_s16 = smov 10  }
   0xc   :  { %3274 = vmatprep.subr.msk.bf16.mxu1 %vm505_vm5, %v3444_v47  ;;  %s2691_s19 = sld [smem:[%s3861_s0 + %s3352_s16]]   ;;  %s3353_s20 = smov 11  }
   0xd   :  { %s2692_s23 = sld [smem:[%s3861_s0 + %s3353_s20]]   ;;  %s3354_s24 = smov 12  }
   0xe   :  { %s2693_s27 = sld [smem:[%s3861_s0 + %s3354_s24]]   ;;  %s3355_s28 = smov 17  }
   0xf   :  { %s3628_s1 = sld [smem:[%s3861_s0 + %s3355_s28]]   ;;  %s3356_s2 = smov 14  }
  0x10   :  { %v150_v8 = vld [vmem:[#allocation2 + $0x1] sm:$0xff]  ;;  %v151_v9 = vld [vmem:[#allocation2 + $0x9] sm:$0xff]  ;;  %s2695_s5 = sld [smem:[%s3861_s0 + %s3356_s2]]   ;;  %s3357_s6 = smov 15  }
  0x11   :  { %v155_v10 = vpack.c.bf16 %v151_v9, %v150_v8  ;;  %v152_v12 = vld [vmem:[#allocation2 + $0x11] sm:$0xff]  ;;  %v153_v13 = vld [vmem:[#allocation2 + $0x19] sm:$0xff]  ;;  %v154_v14 = vld [vmem:[#allocation2 + $0x21] sm:$0x3]  ;;  %s2696_s9 = sld [smem:[%s3861_s0 + %s3357_s6]]   ;;  %s3358_s10 = smov 16  }
  0x12   :  { %v145_v15 = vld [vmem:[#allocation2 + $0x20] sm:$0x3]  ;;  %v301_v17 = vld [vmem:[#allocation2 + $0x22] sm:$0x3]  ;;  %v156_v18 = vpack.c.bf16 %v153_v13, %v152_v12  ;;  %v157_v19 = vpack.c.bf16 %v154_v14, %v154_v14  ;;  %v142_v21 = vld [vmem:[#allocation2 + $0x8] sm:$0xff]  ;;  %s3359_s14 = smov 21  }
  0x13   :  { %2928 = vmatmul.mubr.msk.bf16.vlgmr.msra.gmra.mrb[0].mxu0 %vm130_vm0, %v155_v10  ;;  %v300_v16 = vld [vmem:[#allocation2 + $0x1a] sm:$0xff]  ;;  %v143_v25 = vld [vmem:[#allocation2 + $0x10] sm:$0xff]  ;;  %v148_v28 = vpack.c.bf16 %v145_v15, %v145_v15  ;;  %v297_v30 = vld [vmem:[#allocation2 + $0x2] sm:$0xff]  ;;  %v304_v34 = vpack.c.bf16 %v301_v17, %v301_v17  ;;  %s3714_s17 = sld [smem:[%s3861_s0 + %s3359_s14]]   ;;  %s3360_s18 = smov 18  }
  0x14   :  { %2940 = vmatpush3.bf16.msra.mxu0 %v239_v11  ;;  %2931 = vmatprep.mubr.msk.bf16.mxu0 %vm3342_vm1, %v3340_v0  ;;  %891 = vst.msk [vmem:[#allocation2 + $0x20] sm:$0xf] %vm890_vm4, %v3340_v0  ;;  %v141_v20 = vld [vmem:[#allocation2] sm:$0xff]  ;;  %v144_v26 = vld [vmem:[#allocation2 + $0x18] sm:$0xff]  ;;  %v298_v29 = vld [vmem:[#allocation2 + $0xa] sm:$0xff]  ;;  %s3361_s22 = smov 19  }
  0x15   :  { %2953 = vmatprep.subr.bf16.mxu0 %v3340_v0  ;;  %v146_v23 = vpack.c.bf16 %v142_v21, %v141_v20  ;;  %v147_v27 = vpack.c.bf16 %v144_v26, %v143_v25  ;;  %v302_v31 = vpack.c.bf16 %v298_v29, %v297_v30  ;;  %v299_v32 = vld [vmem:[#allocation2 + $0x12] sm:$0xff]  ;;  %s3362_s26 = smov 20   ;;  %s3363_s30 = smov 25  }
  0x16   :  { %v303_v33 = vpack.c.bf16 %v300_v16, %v299_v32  ;;  %s3364_s4 = smov 22   ;;  %s3365_s8 = smov 23  }
  0x17   :  { %s3366_s12 = smov 24   ;;  %s3367_s16 = smov 26  }
  0x18   :  { %s3368_s20 = smov 27   ;;  %s3369_s24 = smov 28  }
  0x19   :  { %s3370_s28 = smov 29  }
  0x1b   :  { %2932 = vmatmul.mubr.msk.bf16.gmra.mrb[4].mxu0 %vm130_vm0, %v156_v18 }
  0x1c   :  { %2935 = vmatprep.mubr.msk.bf16.mxu0 %vm3342_vm1, %v3340_v0 }
  0x23   :  { %2936 = vmatmul.mubr.msk.bf16.gmra.mrb[8].mxu0 %vm130_vm0, %v157_v19 }
  0x24   :  { %2941 = vmatprep.mubr.msk.bf16.mxu0 %vm3342_vm1, %v3340_v0 }
  0x2b   :  { %2942 = vmatmul.mubr.msk.bf16.vlgmr.msra.gmra.mrb[12].mxu0 %vm130_vm0, %v146_v23 }
  0x2c   :  { %2954 = vmatpush3.bf16.msra.mxu0 %v317_v24  ;;  %2945 = vmatprep.mubr.msk.bf16.mxu0 %vm3342_vm1, %v3340_v0 }
  0x33   :  { %2946 = vmatmul.mubr.msk.bf16.gmra.mrb[4].mxu0 %vm130_vm0, %v147_v27 }
  0x34   :  { %2949 = vmatprep.mubr.msk.bf16.mxu0 %vm3342_vm1, %v3340_v0 }
  0x3b   :  { %2950 = vmatmul.mubr.msk.bf16.gmra.mrb[8].mxu0 %vm130_vm0, %v148_v28 }
  0x3c   :  { %2955 = vmatprep.mubr.msk.bf16.mxu0 %vm3342_vm1, %v3340_v0 }
  0x43   :  { %2956 = vmatmul.mubr.msk.bf16.vlgmr.msra.gmra.mrb[16].mxu0 %vm130_vm0, %v302_v31 }
  0x44   :  { %2959 = vmatprep.mubr.msk.bf16.mxu0 %vm3342_vm1, %v3340_v0 }
  0x4b   :  { %2960 = vmatmul.mubr.msk.bf16.gmra.mrb[4].mxu0 %vm130_vm0, %v303_v33 }
  0x4c   :  { %2963 = vmatprep.mubr.msk.bf16.mxu0 %vm3342_vm1, %v3340_v0 }
  0x53   :  { %2964 = vmatmul.mubr.msk.bf16.gmra.mrb[8].mxu0 %vm130_vm0, %v304_v34 }
  0xe6   :  { %v207_v35 = vpop.f32.mrb[0].mxu0 }
  0xe7   :  { %v2929_v36 = vpop.f32.mrb[1].mxu0 }
  0xe8   :  { %v210_v37 = vpop.f32.mrb[2].mxu0 }
  0xe9   :  { %v2930_v38 = vpop.f32.mrb[3].mxu0 }
  0xfe   :  { %v275_v40 = vpop.f32.mrb[12].mxu0 }
  0xff   :  { %v276_v42 = vadd.f32 %v275_v40, %v207_v35  ;;  %v2943_v43 = vpop.f32.mrb[13].mxu0 }
 0x100   :  { %v278_v44 = vpop.f32.mrb[14].mxu0 }
 0x101   :  { %v279_v45 = vadd.f32 %v278_v44, %v210_v37  ;;  %v2944_v46 = vpop.f32.mrb[15].mxu0 }
 0x102   :  { %v442_v46 = vlaneseq }
 0x116   :  { %v353_v49 = vpop.f32.mrb[16].mxu0 }
 0x117   :  { %v375_v50 = vadd.f32 %v353_v49, %v276_v42  ;;  %v2957_v51 = vpop.f32.mrb[17].mxu0  ;;  %v128_v49 = vld [vmem:[%s2684_s21] sm:$0x1]  ;;  %s2699_s21 = sld [smem:[%s3861_s0 + %s3360_s18]]  }
 0x118   :  { %v356_v52 = vpop.f32.mrb[18].mxu0 }
 0x119   :  { %v397_v53 = vadd.f32 %v2722_v48, %v375_v50  ;;  %v376_v54 = vadd.f32 %v356_v52, %v279_v45  ;;  %v2958_v55 = vpop.f32.mrb[19].mxu0 }
 0x11b   :  { %v398_v56 = vadd.f32 %v2722_v48, %v376_v54  ;;  %v402_v57 = vsel %vm401_vm6, %v397_v53, 0.0  ;;  %v2723_v54 = vld [vmem:[%s2685_s25] ss:$0 sm:$0xff]  ;;  %s2700_s25 = sld [smem:[%s3861_s0 + %s3361_s22]]  }
 0x11d   :  { %v403_v58 = vsel %vm401_vm6, %v398_v56, 0.0 }
 0x11e   :  { %v404_v59 = vadd.f32 %v403_v58, %v402_v57  ;;  %v361_v60 = vpop.f32.mrb[4].mxu0 }
 0x11f   :  { %v2961_v61 = vpop.f32.mrb[5].mxu0  ;;  %v384_v63 = vrot.slane %v361_v60, 2 }
 0x120   :  { %v364_v62 = vpop.f32.mrb[6].mxu0 }
 0x121   :  { %v385_v1 = vrot.slane %v364_v62, 2  ;;  %v2962_v2 = vpop.f32.mrb[7].mxu0 }
 0x123   :  { %v386_v3 = vsel %vm383_vm7, %v384_v63, %v385_v1 }
 0x124   :  { %v399_v4 = vadd.f32 %v2722_v48, %v386_v3 }
 0x126   :  { %v405_v5 = vsel %vm401_vm6, %v399_v4, 0.0  ;;  %v369_v6 = vpop.f32.mrb[8].mxu0 }
 0x127   :  { %v406_v7 = vadd.f32 %v405_v5, %v404_v59  ;;  %v387_v8 = vrot.slane %v369_v6, 2  ;;  %v2965_v9 = vpop.f32.mrb[9].mxu0 }
 0x128   :  { %v372_v10 = vpop.f32.mrb[10].mxu0 }
 0x129   :  { %v388_v11 = vsel %vm383_vm7, %v385_v1, %v387_v8  ;;  %v2966_v12 = vpop.f32.mrb[11].mxu0 }
 0x12a   :  { %v400_v13 = vadd.f32 %v2722_v48, %v388_v11  ;;  %v443_v48 = vshrl.u32 %v442_v46, 7 }
 0x12c   :  { %v407_v14 = vsel %vm401_vm6, %v400_v13, 0.0  ;;  %v3467_v50 = vsub.s32 0, %v443_v48 }
 0x12d   :  { %v408_v15 = vadd.f32 %v407_v14, %v406_v7 }
 0x12f   :  { %v409_v16 = vrot.slane %v408_v15, 4 }
 0x131   :  { %v410_v17 = vadd.f32 %v409_v16, %v408_v15  ;;  %v564_v15 = vsel %vm505_vm5, %v3444_v47, 0 }
 0x133   :  { %v411_v18 = vrot.slane %v410_v17, 2 }
 0x135   :  { %v412_v19 = vadd.f32 %v411_v18, %v410_v17 }
 0x137   :  { %v413_v20 = vrot.slane %v412_v19, 1 }
 0x139   :  { %v414_v21 = vadd.f32 %v413_v20, %v412_v19  ;;  %v2729_v19 = vld [vmem:[%s3438_s13 + $0x8] sm:$0xf] }
 0x13a   :  { %v628_v47 = vsel %vm505_vm5, %v2729_v19, 0 }
 0x13b   :  { %v415_v22 = vmul.f32 0.03125, %v414_v21 }
 0x13d   :  { %v416_v23 = vsub.f32 %v397_v53, %v415_v22  ;;  %v417_v24 = vsub.f32 %v398_v56, %v415_v22  ;;  %v418_v25 = vsub.f32 %v399_v4, %v415_v22  ;;  %v419_v26 = vsub.f32 %v400_v13, %v415_v22 }
 0x13f   :  { %v420_v27 = vmul.f32 %v416_v23, %v416_v23  ;;  %v421_v28 = vmul.f32 %v417_v24, %v417_v24  ;;  %v422_v29 = vmul.f32 %v418_v25, %v418_v25  ;;  %v423_v30 = vmul.f32 %v419_v26, %v419_v26 }
 0x141   :  { %v424_v31 = vsel %vm401_vm6, %v420_v27, 0.0  ;;  %v425_v32 = vsel %vm401_vm6, %v421_v28, 0.0  ;;  %v427_v34 = vsel %vm401_vm6, %v422_v29, 0.0  ;;  %v429_v36 = vsel %vm401_vm6, %v423_v30, 0.0 }
 0x142   :  { %v426_v33 = vadd.f32 %v425_v32, %v424_v31  ;;  %v2735_v32 = vld [vmem:[%s3438_s13 + $0x10] sm:$0xf] }
 0x144   :  { %v428_v35 = vadd.f32 %v427_v34, %v426_v33 }
 0x146   :  { %v430_v37 = vadd.f32 %v429_v36, %v428_v35 }
 0x148   :  { %v431_v38 = vrot.slane %v430_v37, 4 }
 0x14a   :  { %v432_v39 = vadd.f32 %v431_v38, %v430_v37  ;;  %v762_v37 = vsel %vm505_vm5, %v2735_v32, 0 }
 0x14c   :  { %v433_v40 = vrot.slane %v432_v39, 2 }
 0x14e   :  { %v434_v41 = vadd.f32 %v433_v40, %v432_v39 }
 0x150   :  { %v435_v42 = vrot.slane %v434_v41, 1 }
 0x152   :  { %v436_v43 = vadd.f32 %v435_v42, %v434_v41  ;;  %v3312_v41 = vld [vmem:[%s3509_s29 + $0x8] sm:$0xff]  }
 0x154   :  { %v437_v44 = vmul.f32 0.03125, %v436_v43 }
 0x156   :  { %v438_v45 = vadd.f32 1e-05, %v437_v44 }
 0x158   :  { %3326 = vrsqrt.f32 %v438_v45 }
 0x162   :  { %v3327_v51 = vpop.eup %3326 }
 0x163   :  { %v440_v52 = vmul.f32 %v3327_v51, %v128_v49 }
 0x165   :  { %v445_v53 = vrot.slane %v440_v52, %v3467_v50 }
 0x167   :  { %v447_v55 = vmul.f32 %v445_v53, %v416_v23  ;;  %v448_v56 = vmul.f32 %v445_v53, %v417_v24  ;;  %v449_v57 = vmul.f32 %v445_v53, %v418_v25  ;;  %v450_v58 = vmul.f32 %v445_v53, %v419_v26  ;;  %v2732_v25 = vld [vmem:[%s3438_s13 + $0xc] sm:$0xf]  ;;  %s2697_s13 = sld [smem:[%s3861_s0 + %s3358_s10]]  }
 0x168   :  { %v695_v30 = vsel %vm505_vm5, %v2732_v25, 0 }
 0x169   :  { %v457_v59 = vadd.f32 %v2723_v54, %v447_v55  ;;  %v458_v60 = vadd.f32 %v2723_v54, %v448_v56  ;;  %v459_v61 = vadd.f32 %v2723_v54, %v449_v57  ;;  %v460_v62 = vadd.f32 %v2723_v54, %v450_v58 }
 0x16b   :  { %v461_v63 = vmax.f32 %v457_v59, 0.0  ;;  %v462_v1 = vmax.f32 %v458_v60, 0.0  ;;  %v463_v2 = vmax.f32 %v459_v61, 0.0  ;;  %v464_v3 = vmax.f32 %v460_v62, 0.0 }
 0x16d   :  { %465 = vst.msk [vmem:[#allocation2] sm:$0xff] %vm401_vm6, %v461_v63  ;;  %466 = vst.msk [vmem:[#allocation2 + $0x8] sm:$0xff] %vm401_vm6, %v462_v1 }
 0x16e   :  { %467 = vst.msk [vmem:[#allocation2 + $0x10] sm:$0xff] %vm401_vm6, %v463_v2  ;;  %468 = vst.msk [vmem:[#allocation2 + $0x18] sm:$0xff] %vm401_vm6, %v464_v3 }
 0x174   :  { %v469_v4 = vld [vmem:[#allocation2] ss:$2 sm:$0xff]  ;;  %v473_v6 = vld [vmem:[#allocation2 + $0x1] ss:$2 sm:$0xff] }
 0x175   :  { %v471_v5 = vld [vmem:[#allocation2 + $0x10] ss:$2 sm:$0xff]  ;;  %v475_v7 = vld [vmem:[#allocation2 + $0x11] ss:$2 sm:$0xff]  ;;  %481 = vst.msk [vmem:[#allocation2] sm:$0xff] %vm401_vm6, %v3340_v0  ;;  %482 = vst.msk [vmem:[#allocation2 + $0x8] sm:$0xff] %vm401_vm6, %v3340_v0  ;;  %v476_v8 = vmax.f32 %v469_v4, %v473_v6 }
 0x176   :  { %483 = vst.msk [vmem:[#allocation2 + $0x10] sm:$0xff] %vm401_vm6, %v3340_v0  ;;  %v477_v9 = vmax.f32 %v471_v5, %v475_v7 }
 0x177   :  { %484 = vst.msk [vmem:[#allocation2 + $0x2] sm:$0xff] %vm401_vm6, %v476_v8 }
 0x178   :  { %485 = vst.msk [vmem:[#allocation2 + $0xe] sm:$0xff] %vm401_vm6, %v477_v9 }
 0x17e   :  { %v492_v10 = vld [vmem:[#allocation2 + $0x1] sm:$0xff] }
 0x17f   :  { %v493_v11 = vld [vmem:[#allocation2 + $0x9] sm:$0xff]  ;;  %v494_v12 = vld [vmem:[#allocation2 + $0x11] sm:$0xf]  ;;  %v486_v16 = vld [vmem:[#allocation2] sm:$0xff] }
 0x180   :  { %v495_v13 = vpack.c.bf16 %v493_v11, %v492_v10  ;;  %v496_v14 = vpack.c.bf16 %v494_v12, %v494_v12  ;;  %v487_v17 = vld [vmem:[#allocation2 + $0x8] sm:$0xff]  ;;  %v488_v20 = vld [vmem:[#allocation2 + $0x10] sm:$0xf]  ;;  %v750_v39 = vld [vmem:[#allocation2 + $0x14] sm:$0xf] }
 0x181   :  { %v489_v18 = vpack.c.bf16 %v487_v17, %v486_v16  ;;  %v614_v21 = vld [vmem:[#allocation2 + $0x2] sm:$0xff]  ;;  %v615_v22 = vld [vmem:[#allocation2 + $0xa] sm:$0xff]  ;;  %v490_v23 = vpack.c.bf16 %v488_v20, %v488_v20  ;;  %v616_v26 = vld [vmem:[#allocation2 + $0x12] sm:$0xf]  ;;  %v752_v40 = vpack.c.bf16 %v750_v39, %v750_v39 }
 0x182   :  { %2969 = vmatprep.mubr.msk.bf16.mxu1 %vm401_vm6, %v495_v13  ;;  %v617_v24 = vpack.c.bf16 %v615_v22, %v614_v21  ;;  %v681_v27 = vld [vmem:[#allocation2 + $0x3] sm:$0xff]  ;;  %v682_v28 = vld [vmem:[#allocation2 + $0xb] sm:$0xff]  ;;  %v618_v29 = vpack.c.bf16 %v616_v26, %v616_v26  ;;  %v683_v33 = vld [vmem:[#allocation2 + $0x13] sm:$0xf] }
 0x183   :  { %2970 = vmatmul.mubr.msk.bf16.vlgmr.msra.gmra.mrb[0].mxu1 %vm401_vm6, %v496_v14  ;;  %v684_v31 = vpack.c.bf16 %v682_v28, %v681_v27  ;;  %v748_v34 = vld [vmem:[#allocation2 + $0x4] sm:$0xff]  ;;  %v749_v35 = vld [vmem:[#allocation2 + $0xc] sm:$0xff]  ;;  %v685_v36 = vpack.c.bf16 %v683_v33, %v683_v33  ;;  %v2738_v12 = vld [vmem:[%s2687_s3] ss:$0 sm:$0xff]  ;;  %s3772_s3 = sld [smem:[%s3861_s0 + %s3363_s30]]  }
 0x184   :  { %2974 = vmatpush3.bf16.msra.mxu1 %v564_v15  ;;  %2975 = vmatprep.mubr.msk.bf16.mxu1 %vm401_vm6, %v489_v18  ;;  %v751_v38 = vpack.c.bf16 %v749_v35, %v748_v34 }
 0x185   :  { %3275 = vmatprep.subr.msk.bf16.mxu1 %vm505_vm5, %v2729_v19 }
 0x18b   :  { %2976 = vmatmul.mubr.msk.bf16.vlgmr.msra.gmra.mrb[4].mxu1 %vm401_vm6, %v490_v23 }
 0x18c   :  { %2980 = vmatpush3.bf16.msra.mxu1 %v628_v47  ;;  %2981 = vmatprep.mubr.msk.bf16.mxu1 %vm401_vm6, %v617_v24 }
 0x18d   :  { %3276 = vmatprep.subr.msk.bf16.mxu1 %vm505_vm5, %v2732_v25 }
 0x193   :  { %2982 = vmatmul.mubr.msk.bf16.vlgmr.msra.gmra.mrb[8].mxu1 %vm401_vm6, %v618_v29 }
 0x194   :  { %2986 = vmatpush3.bf16.msra.mxu1 %v695_v30  ;;  %2987 = vmatprep.mubr.msk.bf16.mxu1 %vm401_vm6, %v684_v31 }
 0x195   :  { %3277 = vmatprep.subr.msk.bf16.mxu1 %vm505_vm5, %v2735_v32 }
 0x19b   :  { %2988 = vmatmul.mubr.msk.bf16.vlgmr.msra.gmra.mrb[12].mxu1 %vm401_vm6, %v685_v36 }
 0x19c   :  { %2992 = vmatpush3.bf16.msra.mxu1 %v762_v37  ;;  %2993 = vmatprep.mubr.msk.bf16.mxu1 %vm401_vm6, %v751_v38 }
 0x19d   :  { %2997 = vmatprep.subr.bf16.mxu1 %v3340_v0 }
 0x1a3   :  { %2994 = vmatmul.mubr.msk.bf16.vlgmr.msra.gmra.mrb[16].mxu1 %vm401_vm6, %v752_v40 }
 0x1a4   :  { %2999 = vmatprep.mubr.msk.bf16.mxu1 %vm3342_vm1, %v3340_v0  ;;  %2998 = vmatpush3.bf16.msra.mxu1 %v3312_v41 }
 0x1a5   :  { %3011 = vmatprep.subr.bf16.mxu1 %v3340_v0 }
 0x256   :  { %v2971_v42 = vpop.f32.mrb[0].mxu1 }
 0x257   :  { %v543_v43 = vpop.f32.mrb[1].mxu1 }
 0x258   :  { %v2972_v44 = vpop.f32.mrb[2].mxu1 }
 0x259   :  { %v546_v45 = vpop.f32.mrb[3].mxu1 }
 0x25e   :  { %v2977_v46 = vpop.f32.mrb[4].mxu1 }
 0x25f   :  { %v609_v48 = vadd.f32 %v2977_v46, %v2971_v42  ;;  %v600_v49 = vpop.f32.mrb[5].mxu1 }
 0x260   :  { %v601_v51 = vadd.f32 %v600_v49, %v543_v43  ;;  %v2978_v52 = vpop.f32.mrb[6].mxu1  ;;  %v479_v43 = vld [vmem:[%s2688_s7] sm:$0x1]  ;;  %s2703_s7 = sld [smem:[%s3861_s0 + %s3364_s4]]  }
 0x261   :  { %v603_v53 = vpop.f32.mrb[7].mxu1 }
 0x262   :  { %v604_v54 = vadd.f32 %v603_v53, %v546_v45 }
 0x266   :  { %v2983_v55 = vpop.f32.mrb[8].mxu1 }
 0x267   :  { %v680_v56 = vadd.f32 %v2983_v55, %v609_v48  ;;  %v664_v57 = vpop.f32.mrb[9].mxu1  ;;  %v2739_v48 = vld [vmem:[%s2689_s11] ss:$0 sm:$0xff]  ;;  %s2704_s11 = sld [smem:[%s3861_s0 + %s3365_s8]]  }
 0x268   :  { %v678_v58 = vadd.f32 %v664_v57, %v601_v51  ;;  %v2984_v59 = vpop.f32.mrb[10].mxu1 }
 0x269   :  { %v667_v60 = vpop.f32.mrb[11].mxu1 }
 0x26a   :  { %v679_v61 = vadd.f32 %v667_v60, %v604_v54 }
 0x26e   :  { %v2989_v62 = vpop.f32.mrb[12].mxu1 }
 0x26f   :  { %v747_v63 = vadd.f32 %v2989_v62, %v680_v56  ;;  %v731_v1 = vpop.f32.mrb[13].mxu1  ;;  %v3313_v62 = vld [vmem:[%s3509_s29] sm:$0xff]  }
 0x270   :  { %v745_v2 = vadd.f32 %v731_v1, %v678_v58  ;;  %v2990_v3 = vpop.f32.mrb[14].mxu1 }
 0x271   :  { %v734_v4 = vpop.f32.mrb[15].mxu1 }
 0x272   :  { %v746_v5 = vadd.f32 %v734_v4, %v679_v61 }
 0x276   :  { %v2995_v6 = vpop.f32.mrb[16].mxu1 }
 0x277   :  { %v814_v7 = vadd.f32 %v2995_v6, %v747_v63  ;;  %v798_v8 = vpop.f32.mrb[17].mxu1 }
 0x278   :  { %v812_v9 = vadd.f32 %v798_v8, %v745_v2  ;;  %v2996_v10 = vpop.f32.mrb[18].mxu1 }
 0x279   :  { %v801_v11 = vpop.f32.mrb[19].mxu1  ;;  %v818_v14 = vrot.slane %v814_v7, 4 }
 0x27a   :  { %v813_v13 = vadd.f32 %v801_v11, %v746_v5  ;;  %v827_v16 = vadd.f32 %v2738_v12, %v812_v9  ;;  %v3314_v11 = vld [vmem:[%s3509_s29 + $0x10] sm:$0xff]   ;;  %s2701_s29 = sld [smem:[%s3861_s0 + %s3362_s26]]  }
 0x27c   :  { %v817_v15 = vrot.slane %v813_v13, 4  ;;  %v830_v19 = vsel %vm829_vm8, %v827_v16, 0.0 }
 0x27e   :  { %v819_v17 = vsel %vm505_vm5, %v817_v15, %v818_v14 }
 0x27f   :  { %v828_v18 = vadd.f32 %v2738_v12, %v819_v17 }
 0x281   :  { %v831_v20 = vsel %vm829_vm8, %v828_v18, 0.0 }
 0x282   :  { %v832_v21 = vadd.f32 %v831_v20, %v830_v19 }
 0x284   :  { %v833_v22 = vrot.slane %v832_v21, 4 }
 0x286   :  { %v834_v23 = vadd.f32 %v833_v22, %v832_v21 }
 0x288   :  { %v835_v47 = vrot.slane %v834_v23, 2 }
 0x28a   :  { %v836_v24 = vadd.f32 %v835_v47, %v834_v23 }
 0x28c   :  { %v837_v25 = vrot.slane %v836_v24, 1 }
 0x28e   :  { %v838_v26 = vadd.f32 %v837_v25, %v836_v24 }
 0x290   :  { %v839_v27 = vmul.f32 0.0625, %v838_v26  ;;  %v3315_v26 = vld [vmem:[%s3573_s15 + $0x10] sm:$0xff]  }
 0x291   :  { %3039 = vmatprep.subr.bf16.mxu0 %v3315_v26 }
 0x292   :  { %v840_v28 = vsub.f32 %v827_v16, %v839_v27  ;;  %v841_v29 = vsub.f32 %v828_v18, %v839_v27  ;;  %v3316_v27 = vld [vmem:[%s3573_s15 + $0x18] sm:$0xff]   ;;  %3040 = vmatpush3.bf16.msra.mxu0 %v3315_v26 }
 0x293   :  { %3041 = vmatprep.subr.bf16.mxu0 %v3316_v27 }
 0x294   :  { %v842_v30 = vmul.f32 %v840_v28, %v840_v28  ;;  %v843_v31 = vmul.f32 %v841_v29, %v841_v29 }
 0x296   :  { %v844_v32 = vsel %vm829_vm8, %v842_v30, 0.0  ;;  %v845_v33 = vsel %vm829_vm8, %v843_v31, 0.0  ;;  %3042 = vmatpush3.bf16.msra.mxu0 %v3316_v27 }
 0x297   :  { %v846_v34 = vadd.f32 %v845_v33, %v844_v32 }
 0x299   :  { %v847_v35 = vrot.slane %v846_v34, 4 }
 0x29b   :  { %v848_v36 = vadd.f32 %v847_v35, %v846_v34  ;;  %v3578_v34 = vld [vmem:[%s3573_s15] sm:$0xff]  }
 0x29c   :  { %3047 = vmatprep.subr.bf16.mxu0 %v3578_v34  ;;  %v2756_v35 = vld [vmem:[%s2691_s19] ss:$0 sm:$0xff]  ;;  %s2707_s19 = sld [smem:[%s3861_s0 + %s3367_s16]]  }
 0x29d   :  { %v849_v37 = vrot.slane %v848_v36, 2 }
 0x29f   :  { %v850_v38 = vadd.f32 %v849_v37, %v848_v36 }
 0x2a1   :  { %v851_v39 = vrot.slane %v850_v38, 1 }
 0x2a3   :  { %v852_v40 = vadd.f32 %v851_v39, %v850_v38 }
 0x2a5   :  { %v853_v41 = vmul.f32 0.0625, %v852_v40 }
 0x2a7   :  { %v854_v42 = vadd.f32 1e-05, %v853_v41 }
 0x2a9   :  { %3328 = vrsqrt.f32 %v854_v42 }
 0x2b3   :  { %v3329_v44 = vpop.eup %3328 }
 0x2b4   :  { %v856_v45 = vmul.f32 %v3329_v44, %v479_v43 }
 0x2b6   :  { %v861_v46 = vrot.slane %v856_v45, %v3467_v50 }
 0x2b8   :  { %v863_v49 = vmul.f32 %v861_v46, %v840_v28  ;;  %v864_v51 = vmul.f32 %v861_v46, %v841_v29 }
 0x2ba   :  { %v871_v52 = vadd.f32 %v2739_v48, %v863_v49  ;;  %v872_v53 = vadd.f32 %v2739_v48, %v864_v51 }
 0x2bc   :  { %v873_v54 = vmax.f32 %v871_v52, 0.0  ;;  %v874_v55 = vmax.f32 %v872_v53, 0.0 }
 0x2be   :  { %876 = vst [vmem:[#allocation2 + $0x10] ss:$2 sm:$0xff] %v874_v55  ;;  %878 = vst [vmem:[#allocation2 + $0x11] ss:$2 sm:$0xff] %v874_v55 }
 0x2bf   :  { %875 = vst [vmem:[#allocation2] ss:$2 sm:$0xff] %v873_v54  ;;  %877 = vst [vmem:[#allocation2 + $0x1] ss:$2 sm:$0xff] %v873_v54 }
 0x2c5   :  { %v881_v56 = vld [vmem:[#allocation2 + $0x10] sm:$0xff]  ;;  %v882_v59 = vld [vmem:[#allocation2 + $0x18] sm:$0xff] }
 0x2c6   :  { %v879_v57 = vld [vmem:[#allocation2] sm:$0xff]  ;;  %v880_v58 = vld [vmem:[#allocation2 + $0x8] sm:$0xff]  ;;  %888 = vst.msk [vmem:[#allocation2 + $0x10] sm:$0xff] %vm829_vm8, %v3340_v0  ;;  %889 = vst.msk [vmem:[#allocation2 + $0x18] sm:$0xff] %vm829_vm8, %v3340_v0 }
 0x2c7   :  { %886 = vst.msk [vmem:[#allocation2] sm:$0xff] %vm829_vm8, %v3340_v0  ;;  %887 = vst.msk [vmem:[#allocation2 + $0x8] sm:$0xff] %vm829_vm8, %v3340_v0 }
 0x2c8   :  { %892 = vst.msk [vmem:[#allocation2 + $0x1] sm:$0xff] %vm829_vm8, %v879_v57  ;;  %893 = vst.msk [vmem:[#allocation2 + $0x9] sm:$0xff] %vm829_vm8, %v880_v58 }
 0x2c9   :  { %894 = vst.msk [vmem:[#allocation2 + $0x13] sm:$0xff] %vm829_vm8, %v881_v56  ;;  %895 = vst.msk [vmem:[#allocation2 + $0x1b] sm:$0xff] %vm829_vm8, %v882_v59 }
 0x2cf   :  { %v906_v60 = vld [vmem:[#allocation2 + $0x1] sm:$0xff]  ;;  %v907_v61 = vld [vmem:[#allocation2 + $0x9] sm:$0xff] }
 0x2d0   :  { %v911_v63 = vpack.c.bf16 %v907_v61, %v906_v60  ;;  %v909_v1 = vld [vmem:[#allocation2 + $0x19] sm:$0xff]  ;;  %v910_v2 = vld [vmem:[#allocation2 + $0x21] sm:$0x3]  ;;  %v908_v6 = vld [vmem:[#allocation2 + $0x11] sm:$0xff] }
 0x2d1   :  { %v900_v3 = vld [vmem:[#allocation2 + $0x20] sm:$0x3]  ;;  %v1063_v5 = vld [vmem:[#allocation2 + $0x22] sm:$0x3]  ;;  %v912_v7 = vpack.c.bf16 %v909_v1, %v908_v6  ;;  %v913_v8 = vpack.c.bf16 %v910_v2, %v910_v2  ;;  %v897_v10 = vld [vmem:[#allocation2 + $0x8] sm:$0xff] }
 0x2d2   :  { %3000 = vmatmul.mubr.msk.bf16.vlgmr.msra.gmra.mrb[20].mxu1 %vm829_vm8, %v911_v63  ;;  %v1062_v4 = vld [vmem:[#allocation2 + $0x1a] sm:$0xff]  ;;  %v898_v13 = vld [vmem:[#allocation2 + $0x10] sm:$0xff]  ;;  %v903_v16 = vpack.c.bf16 %v900_v3, %v900_v3  ;;  %v1059_v17 = vld [vmem:[#allocation2 + $0x2] sm:$0xff]  ;;  %v1066_v22 = vpack.c.bf16 %v1063_v5, %v1063_v5 }
 0x2d3   :  { %3012 = vmatpush3.bf16.msra.mxu1 %v3313_v62  ;;  %3003 = vmatprep.mubr.msk.bf16.mxu1 %vm3342_vm1, %v3340_v0  ;;  %1553 = vst.msk [vmem:[#allocation2 + $0x20] sm:$0xff] %vm829_vm8, %v3340_v0  ;;  %v896_v9 = vld [vmem:[#allocation2] sm:$0xff]  ;;  %v899_v14 = vld [vmem:[#allocation2 + $0x18] sm:$0xff]  ;;  %v1060_v18 = vld [vmem:[#allocation2 + $0xa] sm:$0xff] }
 0x2d4   :  { %3025 = vmatprep.subr.bf16.mxu1 %v3340_v0  ;;  %v901_v12 = vpack.c.bf16 %v897_v10, %v896_v9  ;;  %v902_v15 = vpack.c.bf16 %v899_v14, %v898_v13  ;;  %v1064_v19 = vpack.c.bf16 %v1060_v18, %v1059_v17  ;;  %v1061_v20 = vld [vmem:[#allocation2 + $0x12] sm:$0xff] }
 0x2d5   :  { %v1065_v21 = vpack.c.bf16 %v1062_v4, %v1061_v20 }
 0x2da   :  { %3004 = vmatmul.mubr.msk.bf16.gmra.mrb[24].mxu1 %vm829_vm8, %v912_v7 }
 0x2db   :  { %3007 = vmatprep.mubr.msk.bf16.mxu1 %vm3342_vm1, %v3340_v0 }
 0x2e2   :  { %3008 = vmatmul.mubr.msk.bf16.gmra.mrb[28].mxu1 %vm829_vm8, %v913_v8 }
 0x2e3   :  { %3013 = vmatprep.mubr.msk.bf16.mxu1 %vm3342_vm1, %v3340_v0 }
 0x2ea   :  { %3014 = vmatmul.mubr.msk.bf16.vlgmr.msra.gmra.mrb[32].mxu1 %vm829_vm8, %v901_v12 }
 0x2eb   :  { %3026 = vmatpush3.bf16.msra.mxu1 %v3314_v11  ;;  %3017 = vmatprep.mubr.msk.bf16.mxu1 %vm3342_vm1, %v3340_v0 }
 0x2f2   :  { %3018 = vmatmul.mubr.msk.bf16.gmra.mrb[24].mxu1 %vm829_vm8, %v902_v15 }
 0x2f3   :  { %3021 = vmatprep.mubr.msk.bf16.mxu1 %vm3342_vm1, %v3340_v0 }
 0x2fa   :  { %3022 = vmatmul.mubr.msk.bf16.gmra.mrb[28].mxu1 %vm829_vm8, %v903_v16 }
 0x2fb   :  { %3027 = vmatprep.mubr.msk.bf16.mxu1 %vm3342_vm1, %v3340_v0 }
 0x302   :  { %3028 = vmatmul.mubr.msk.bf16.vlgmr.msra.gmra.mrb[36].mxu1 %vm829_vm8, %v1064_v19 }
 0x303   :  { %3031 = vmatprep.mubr.msk.bf16.mxu1 %vm3342_vm1, %v3340_v0 }
 0x30a   :  { %3032 = vmatmul.mubr.msk.bf16.gmra.mrb[24].mxu1 %vm829_vm8, %v1065_v21 }
 0x30b   :  { %3035 = vmatprep.mubr.msk.bf16.mxu1 %vm3342_vm1, %v3340_v0 }
 0x312   :  { %3036 = vmatmul.mubr.msk.bf16.gmra.mrb[28].mxu1 %vm829_vm8, %v1066_v22 }
 0x3a5   :  { %v966_v23 = vpop.f32.mrb[20].mxu1 }
 0x3a6   :  { %v3001_v47 = vpop.f32.mrb[21].mxu1 }
 0x3a7   :  { %v969_v24 = vpop.f32.mrb[22].mxu1 }
 0x3a8   :  { %v3002_v25 = vpop.f32.mrb[23].mxu1 }
 0x3bd   :  { %v1037_v28 = vpop.f32.mrb[32].mxu1 }
 0x3be   :  { %v1038_v29 = vadd.f32 %v1037_v28, %v966_v23  ;;  %v3015_v30 = vpop.f32.mrb[33].mxu1 }
 0x3bf   :  { %v1040_v31 = vpop.f32.mrb[34].mxu1 }
 0x3c0   :  { %v1041_v32 = vadd.f32 %v1040_v31, %v969_v24  ;;  %v3016_v33 = vpop.f32.mrb[35].mxu1 }
 0x3d5   :  { %v1119_v36 = vpop.f32.mrb[36].mxu1 }
 0x3d6   :  { %v1141_v37 = vadd.f32 %v1119_v36, %v1038_v29  ;;  %v3029_v38 = vpop.f32.mrb[37].mxu1 }
 0x3d7   :  { %v1122_v39 = vpop.f32.mrb[38].mxu1 }
 0x3d8   :  { %v1162_v40 = vadd.f32 %v2756_v35, %v1141_v37  ;;  %v1142_v41 = vadd.f32 %v1122_v39, %v1041_v32  ;;  %v3030_v42 = vpop.f32.mrb[39].mxu1  ;;  %v2757_v39 = vld [vmem:[%s2693_s27] ss:$0 sm:$0xff]  ;;  %s2709_s27 = sld [smem:[%s3861_s0 + %s3369_s24]]  }
 0x3da   :  { %v1163_v43 = vadd.f32 %v2756_v35, %v1142_v41  ;;  %v1167_v44 = vsel %vm1166_vm9, %v1162_v40, 0.0 }
 0x3dc   :  { %v1168_v45 = vsel %vm1166_vm9, %v1163_v43, 0.0 }
 0x3dd   :  { %v1169_v46 = vadd.f32 %v1168_v45, %v1167_v44  ;;  %v1127_v48 = vpop.f32.mrb[24].mxu1 }
 0x3de   :  { %v3033_v49 = vpop.f32.mrb[25].mxu1  ;;  %v1149_v52 = vrot.slane %v1127_v48, 2 }
 0x3df   :  { %v1130_v51 = vpop.f32.mrb[26].mxu1 }
 0x3e0   :  { %v1150_v53 = vrot.slane %v1130_v51, 2  ;;  %v3034_v54 = vpop.f32.mrb[27].mxu1 }
 0x3e2   :  { %v1151_v55 = vsel %vm383_vm7, %v1149_v52, %v1150_v53 }
 0x3e3   :  { %v1164_v56 = vadd.f32 %v2756_v35, %v1151_v55 }
 0x3e5   :  { %v1170_v57 = vsel %vm1166_vm9, %v1164_v56, 0.0  ;;  %v1135_v58 = vpop.f32.mrb[28].mxu1 }
 0x3e6   :  { %v1171_v59 = vadd.f32 %v1170_v57, %v1169_v46  ;;  %v1152_v60 = vrot.slane %v1135_v58, 2  ;;  %v3037_v61 = vpop.f32.mrb[29].mxu1 }
 0x3e7   :  { %v1138_v62 = vpop.f32.mrb[30].mxu1 }
 0x3e8   :  { %v1153_v63 = vsel %vm383_vm7, %v1150_v53, %v1152_v60  ;;  %v3038_v1 = vpop.f32.mrb[31].mxu1 }
 0x3e9   :  { %v1165_v2 = vadd.f32 %v2756_v35, %v1153_v63  ;;  %v884_v35 = vld [vmem:[%s2692_s23] sm:$0x1]  ;;  %s2708_s23 = sld [smem:[%s3861_s0 + %s3368_s20]]  }
 0x3eb   :  { %v1172_v3 = vsel %vm1166_vm9, %v1165_v2, 0.0 }
 0x3ec   :  { %v1173_v4 = vadd.f32 %v1172_v3, %v1171_v59 }
 0x3ee   :  { %v1174_v5 = vrot.slane %v1173_v4, 4 }
 0x3f0   :  { %v1175_v6 = vadd.f32 %v1174_v5, %v1173_v4  ;;  %v3318_v4 = vld [vmem:[%s3573_s15 + $0x8] sm:$0xff]  }
 0x3f2   :  { %v1176_v7 = vrot.slane %v1175_v6, 2 }
 0x3f4   :  { %v1177_v8 = vadd.f32 %v1176_v7, %v1175_v6  ;;  %v3319_v6 = vld [vmem:[%s3573_s15 + $0x20] sm:$0xff]  }
 0x3f6   :  { %v1178_v9 = vrot.slane %v1177_v8, 1 }
 0x3f8   :  { %v1179_v10 = vadd.f32 %v1178_v9, %v1177_v8 }
 0x3fa   :  { %v1180_v11 = vmul.f32 0.03125, %v1179_v10 }
 0x3fc   :  { %v1181_v12 = vsub.f32 %v1162_v40, %v1180_v11  ;;  %v1182_v13 = vsub.f32 %v1163_v43, %v1180_v11  ;;  %v1183_v14 = vsub.f32 %v1164_v56, %v1180_v11  ;;  %v1184_v15 = vsub.f32 %v1165_v2, %v1180_v11  ;;  %v3320_v11 = vld [vmem:[%s3573_s15 + $0x28] sm:$0xff]   ;;  %s2705_s15 = sld [smem:[%s3861_s0 + %s3366_s12]]  }
 0x3fe   :  { %v1185_v16 = vmul.f32 %v1181_v12, %v1181_v12  ;;  %v1186_v17 = vmul.f32 %v1182_v13, %v1182_v13  ;;  %v1187_v18 = vmul.f32 %v1183_v14, %v1183_v14  ;;  %v1188_v19 = vmul.f32 %v1184_v15, %v1184_v15 }
 0x400   :  { %v1189_v20 = vsel %vm1166_vm9, %v1185_v16, 0.0  ;;  %v1190_v21 = vsel %vm1166_vm9, %v1186_v17, 0.0  ;;  %v1192_v23 = vsel %vm1166_vm9, %v1187_v18, 0.0  ;;  %v1194_v24 = vsel %vm1166_vm9, %v1188_v19, 0.0 }
 0x401   :  { %v1191_v22 = vadd.f32 %v1190_v21, %v1189_v20 }
 0x403   :  { %v1193_v47 = vadd.f32 %v1192_v23, %v1191_v22 }
 0x405   :  { %v1195_v25 = vadd.f32 %v1194_v24, %v1193_v47 }
 0x407   :  { %v1196_v26 = vrot.slane %v1195_v25, 4 }
 0x409   :  { %v1197_v27 = vadd.f32 %v1196_v26, %v1195_v25 }
 0x40b   :  { %v1198_v28 = vrot.slane %v1197_v27, 2 }
 0x40d   :  { %v1199_v29 = vadd.f32 %v1198_v28, %v1197_v27 }
 0x40f   :  { %v1200_v30 = vrot.slane %v1199_v29, 1 }
 0x411   :  { %v1201_v31 = vadd.f32 %v1200_v30, %v1199_v29 }
 0x413   :  { %v1202_v32 = vmul.f32 0.03125, %v1201_v31  ;;  %v2778_v31 = vld [vmem:[%s2695_s5] ss:$0 sm:$0xff] }
 0x415   :  { %v1203_v33 = vadd.f32 1e-05, %v1202_v32 }
 0x417   :  { %3330 = vrsqrt.f32 %v1203_v33 }
 0x421   :  { %v3331_v36 = vpop.eup %3330 }
 0x422   :  { %v1205_v37 = vmul.f32 %v3331_v36, %v884_v35 }
 0x424   :  { %v1210_v38 = vrot.slane %v1205_v37, %v3467_v50 }
 0x426   :  { %v1212_v40 = vmul.f32 %v1210_v38, %v1181_v12  ;;  %v1213_v41 = vmul.f32 %v1210_v38, %v1182_v13  ;;  %v1214_v42 = vmul.f32 %v1210_v38, %v1183_v14  ;;  %v1215_v43 = vmul.f32 %v1210_v38, %v1184_v15  ;;  %v3321_v14 = vld [vmem:[%s3628_s1 + $0x8] sm:$0xff]  }
 0x428   :  { %v1222_v44 = vadd.f32 %v2757_v39, %v1212_v40  ;;  %v1223_v45 = vadd.f32 %v2757_v39, %v1213_v41  ;;  %v1224_v46 = vadd.f32 %v2757_v39, %v1214_v42  ;;  %v1225_v48 = vadd.f32 %v2757_v39, %v1215_v43 }
 0x42a   :  { %v1226_v49 = vmax.f32 %v1222_v44, 0.0  ;;  %v1227_v51 = vmax.f32 %v1223_v45, 0.0  ;;  %v1228_v52 = vmax.f32 %v1224_v46, 0.0  ;;  %v1229_v53 = vmax.f32 %v1225_v48, 0.0 }
 0x42c   :  { %1230 = vst.msk [vmem:[#allocation2] sm:$0xff] %vm1166_vm9, %v1226_v49  ;;  %1231 = vst.msk [vmem:[#allocation2 + $0x8] sm:$0xff] %vm1166_vm9, %v1227_v51 }
 0x42d   :  { %1232 = vst.msk [vmem:[#allocation2 + $0x10] sm:$0xff] %vm1166_vm9, %v1228_v52  ;;  %1233 = vst.msk [vmem:[#allocation2 + $0x18] sm:$0xff] %vm1166_vm9, %v1229_v53 }
 0x433   :  { %v1234_v54 = vld [vmem:[#allocation2] ss:$2 sm:$0xff]  ;;  %v1236_v56 = vld [vmem:[#allocation2 + $0x1] ss:$2 sm:$0xff] }
 0x434   :  { %v1235_v55 = vld [vmem:[#allocation2 + $0x10] ss:$2 sm:$0xff]  ;;  %v1237_v57 = vld [vmem:[#allocation2 + $0x11] ss:$2 sm:$0xff]  ;;  %1243 = vst.msk [vmem:[#allocation2] sm:$0xff] %vm1166_vm9, %v3340_v0  ;;  %1244 = vst.msk [vmem:[#allocation2 + $0x8] sm:$0xff] %vm1166_vm9, %v3340_v0  ;;  %v1238_v58 = vmax.f32 %v1234_v54, %v1236_v56 }
 0x435   :  { %v1239_v59 = vmax.f32 %v1235_v55, %v1237_v57  ;;  %1246 = vst.msk [vmem:[#allocation2 + $0x10] sm:$0xf] %vm1245_vm10, %v3340_v0 }
 0x436   :  { %1247 = vst.msk [vmem:[#allocation2 + $0x1] sm:$0xff] %vm1166_vm9, %v1238_v58 }
 0x437   :  { %1248 = vst.msk [vmem:[#allocation2 + $0xb] sm:$0xff] %vm1166_vm9, %v1239_v59 }
 0x43d   :  { %v1258_v60 = vld [vmem:[#allocation2 + $0x1] sm:$0xff] }
 0x43e   :  { %v1249_v61 = vld [vmem:[#allocation2] sm:$0xff]  ;;  %v1259_v62 = vld [vmem:[#allocation2 + $0x9] sm:$0xff]  ;;  %v1260_v63 = vld [vmem:[#allocation2 + $0x11] sm:$0x3] }
 0x43f   :  { %v1250_v1 = vld [vmem:[#allocation2 + $0x8] sm:$0xff]  ;;  %v1261_v2 = vpack.c.bf16 %v1259_v62, %v1258_v60  ;;  %v1262_v3 = vpack.c.bf16 %v1260_v63, %v1260_v63  ;;  %v1251_v7 = vld [vmem:[#allocation2 + $0x10] sm:$0x3]  ;;  %v1402_v13 = vld [vmem:[#allocation2 + $0x12] sm:$0x3] }
 0x440   :  { %v1252_v5 = vpack.c.bf16 %v1250_v1, %v1249_v61  ;;  %v1400_v8 = vld [vmem:[#allocation2 + $0x2] sm:$0xff]  ;;  %v1401_v9 = vld [vmem:[#allocation2 + $0xa] sm:$0xff]  ;;  %v1253_v10 = vpack.c.bf16 %v1251_v7, %v1251_v7  ;;  %v2779_v7 = vld [vmem:[%s2697_s13] ss:$0 sm:$0xff] }
 0x441   :  { %3043 = vmatprep.mubr.msk.bf16.mxu0 %vm1166_vm9, %v1261_v2  ;;  %v1403_v12 = vpack.c.bf16 %v1401_v9, %v1400_v8 }
 0x442   :  { %3044 = vmatmul.mubr.msk.bf16.vlgmr.msra.gmra.mrb[20].mxu0 %vm1166_vm9, %v1262_v3  ;;  %v1241_v3 = vld [vmem:[%s2696_s9] sm:$0x1] }
 0x443   :  { %3048 = vmatpush3.bf16.msra.mxu0 %v3578_v34  ;;  %3051 = vmatprep.mubr.msk.bf16.mxu0 %vm1166_vm9, %v1252_v5  ;;  %v1404_v34 = vpack.c.bf16 %v1402_v13, %v1402_v13 }
 0x444   :  { %3049 = vmatprep.subr.bf16.mxu0 %v3318_v4 }
 0x447   :  { %3050 = vmatpush3.bf16.msra.mxu0 %v3318_v4 }
 0x448   :  { %3055 = vmatprep.subr.bf16.mxu0 %v3319_v6 }
 0x44a   :  { %3052 = vmatmul.mubr.msk.bf16.vlgmr.msra.gmra.mrb[24].mxu0 %vm1166_vm9, %v1253_v10 }
 0x44b   :  { %3056 = vmatpush3.bf16.msra.mxu0 %v3319_v6  ;;  %3059 = vmatprep.mubr.msk.bf16.mxu0 %vm1166_vm9, %v1403_v12 }
 0x44c   :  { %3057 = vmatprep.subr.bf16.mxu0 %v3320_v11 }
 0x44f   :  { %3058 = vmatpush3.bf16.msra.mxu0 %v3320_v11 }
 0x450   :  { %3063 = vmatprep.subr.bf16.mxu0 %v3340_v0 }
 0x452   :  { %3060 = vmatmul.mubr.msk.bf16.vlgmr.msra.gmra.mrb[28].mxu0 %vm1166_vm9, %v1404_v34 }
 0x453   :  { %3065 = vmatprep.mubr.msk.bf16.mxu0 %vm3342_vm1, %v3340_v0  ;;  %3064 = vmatpush3.bf16.msra.mxu0 %v3321_v14 }
 0x454   :  { %3077 = vmatprep.subr.bf16.mxu0 %v3340_v0 }
 0x515   :  { %v3045_v15 = vpop.f32.mrb[20].mxu0 }
 0x516   :  { %v1320_v16 = vpop.f32.mrb[21].mxu0 }
 0x517   :  { %v3046_v17 = vpop.f32.mrb[22].mxu0 }
 0x518   :  { %v1323_v18 = vpop.f32.mrb[23].mxu0 }
 0x51d   :  { %v3053_v19 = vpop.f32.mrb[24].mxu0 }
 0x51e   :  { %v1395_v20 = vadd.f32 %v3053_v19, %v3045_v15  ;;  %v1386_v21 = vpop.f32.mrb[25].mxu0  ;;  %v3322_v19 = vld [vmem:[%s3628_s1] sm:$0xff]  }
 0x51f   :  { %v1387_v22 = vadd.f32 %v1386_v21, %v1320_v16  ;;  %v3054_v23 = vpop.f32.mrb[26].mxu0 }
 0x520   :  { %v1389_v47 = vpop.f32.mrb[27].mxu0 }
 0x521   :  { %v1390_v24 = vadd.f32 %v1389_v47, %v1323_v18 }
 0x525   :  { %v3061_v25 = vpop.f32.mrb[28].mxu0 }
 0x526   :  { %v1478_v26 = vadd.f32 %v3061_v25, %v1395_v20  ;;  %v1462_v27 = vpop.f32.mrb[29].mxu0 }
 0x527   :  { %v1476_v28 = vadd.f32 %v1462_v27, %v1387_v22  ;;  %v3062_v29 = vpop.f32.mrb[30].mxu0 }
 0x528   :  { %v1465_v30 = vpop.f32.mrb[31].mxu0  ;;  %v1482_v33 = vrot.slane %v1478_v26, 2 }
 0x529   :  { %v1477_v32 = vadd.f32 %v1465_v30, %v1390_v24  ;;  %v1491_v36 = vadd.f32 %v2778_v31, %v1476_v28 }
 0x52b   :  { %v1481_v35 = vrot.slane %v1477_v32, 2  ;;  %v1493_v39 = vsel %vm829_vm8, %v1491_v36, 0.0 }
 0x52d   :  { %v1483_v37 = vsel %vm383_vm7, %v1481_v35, %v1482_v33  ;;  %v3323_v33 = vld [vmem:[%s3628_s1 + $0x10] sm:$0xff]  }
 0x52e   :  { %v1492_v38 = vadd.f32 %v2778_v31, %v1483_v37 }
 0x530   :  { %v1494_v40 = vsel %vm829_vm8, %v1492_v38, 0.0 }
 0x531   :  { %v1495_v41 = vadd.f32 %v1494_v40, %v1493_v39 }
 0x533   :  { %v1496_v42 = vrot.slane %v1495_v41, 4 }
 0x535   :  { %v1497_v43 = vadd.f32 %v1496_v42, %v1495_v41  ;;  %v3324_v42 = vld [vmem:[%s3628_s1 + $0x18] sm:$0xff]  }
 0x537   :  { %v1498_v44 = vrot.slane %v1497_v43, 2 }
 0x539   :  { %v1499_v45 = vadd.f32 %v1498_v44, %v1497_v43 }
 0x53b   :  { %v1500_v46 = vrot.slane %v1499_v45, 1 }
 0x53d   :  { %v1501_v48 = vadd.f32 %v1500_v46, %v1499_v45 }
 0x53f   :  { %v1502_v49 = vmul.f32 0.0625, %v1501_v48 }
 0x541   :  { %v1503_v51 = vsub.f32 %v1491_v36, %v1502_v49  ;;  %v1504_v52 = vsub.f32 %v1492_v38, %v1502_v49 }
 0x543   :  { %v1505_v53 = vmul.f32 %v1503_v51, %v1503_v51  ;;  %v1506_v54 = vmul.f32 %v1504_v52, %v1504_v52 }
 0x545   :  { %v1507_v55 = vsel %vm829_vm8, %v1505_v53, 0.0  ;;  %v1508_v56 = vsel %vm829_vm8, %v1506_v54, 0.0 }
 0x546   :  { %v1509_v57 = vadd.f32 %v1508_v56, %v1507_v55 }
 0x548   :  { %v1510_v58 = vrot.slane %v1509_v57, 4 }
 0x54a   :  { %v1511_v59 = vadd.f32 %v1510_v58, %v1509_v57 }
 0x54c   :  { %v1512_v60 = vrot.slane %v1511_v59, 2 }
 0x54e   :  { %v1513_v61 = vadd.f32 %v1512_v60, %v1511_v59 }
 0x550   :  { %v1514_v62 = vrot.slane %v1513_v61, 1 }
 0x552   :  { %v1515_v63 = vadd.f32 %v1514_v62, %v1513_v61 }
 0x554   :  { %v1516_v1 = vmul.f32 0.0625, %v1515_v63 }
 0x556   :  { %v1517_v2 = vadd.f32 1e-05, %v1516_v1 }
 0x558   :  { %3332 = vrsqrt.f32 %v1517_v2 }
 0x562   :  { %v3333_v4 = vpop.eup %3332 }
 0x563   :  { %v1519_v5 = vmul.f32 %v3333_v4, %v1241_v3 }
 0x565   :  { %v1524_v6 = vrot.slane %v1519_v5, %v3467_v50 }
 0x567   :  { %v1526_v8 = vmul.f32 %v1524_v6, %v1503_v51  ;;  %v1527_v9 = vmul.f32 %v1524_v6, %v1504_v52  ;;  %v3325_v51 = vld [vmem:[%s3628_s1 + $0x20] sm:$0xff]   ;;  %s2710_s1 = sld [smem:[%s3861_s0 + %s3370_s28]]  }
 0x569   :  { %v1534_v10 = vadd.f32 %v2779_v7, %v1526_v8  ;;  %v1535_v11 = vadd.f32 %v2779_v7, %v1527_v9 }
 0x56b   :  { %v1536_v12 = vmax.f32 %v1534_v10, 0.0  ;;  %v1537_v13 = vmax.f32 %v1535_v11, 0.0 }
 0x56d   :  { %1539 = vst [vmem:[#allocation2 + $0x10] ss:$2 sm:$0xff] %v1537_v13  ;;  %1541 = vst [vmem:[#allocation2 + $0x11] ss:$2 sm:$0xff] %v1537_v13 }
 0x56e   :  { %1538 = vst [vmem:[#allocation2] ss:$2 sm:$0xff] %v1536_v12  ;;  %1540 = vst [vmem:[#allocation2 + $0x1] ss:$2 sm:$0xff] %v1536_v12 }
 0x574   :  { %v1544_v15 = vld [vmem:[#allocation2 + $0x10] sm:$0xff]  ;;  %v1545_v16 = vld [vmem:[#allocation2 + $0x18] sm:$0xff] }
 0x575   :  { %v1542_v34 = vld [vmem:[#allocation2] sm:$0xff]  ;;  %v1543_v14 = vld [vmem:[#allocation2 + $0x8] sm:$0xff]  ;;  %1551 = vst.msk [vmem:[#allocation2 + $0x10] sm:$0xff] %vm829_vm8, %v3340_v0  ;;  %1552 = vst.msk [vmem:[#allocation2 + $0x18] sm:$0xff] %vm829_vm8, %v3340_v0 }
 0x576   :  { %1549 = vst.msk [vmem:[#allocation2] sm:$0xff] %vm829_vm8, %v3340_v0  ;;  %1550 = vst.msk [vmem:[#allocation2 + $0x8] sm:$0xff] %vm829_vm8, %v3340_v0 }
 0x577   :  { %1554 = vst.msk [vmem:[#allocation2 + $0x2] sm:$0xff] %vm829_vm8, %v1542_v34  ;;  %1555 = vst.msk [vmem:[#allocation2 + $0xa] sm:$0xff] %vm829_vm8, %v1543_v14 }
 0x578   :  { %1556 = vst.msk [vmem:[#allocation2 + $0x16] sm:$0xff] %vm829_vm8, %v1544_v15  ;;  %1557 = vst.msk [vmem:[#allocation2 + $0x1e] sm:$0xff] %vm829_vm8, %v1545_v16  ;;  %v2810_v15 = vld [vmem:[%s3714_s17 + $0x4] sm:$0xf] }
 0x579   :  { %3278 = vmatprep.subr.msk.bf16.mxu1 %vm505_vm5, %v2810_v15  ;;  %v2104_v16 = vsel %vm505_vm5, %v2810_v15, 0 }
 0x57a   :  { %3134 = vmatpush3.bf16.msra.mxu1 %v2104_v16 }
 0x57e   :  { %v1568_v17 = vld [vmem:[#allocation2 + $0x1] sm:$0xff]  ;;  %v1569_v18 = vld [vmem:[#allocation2 + $0x9] sm:$0xff] }
 0x57f   :  { %v1573_v20 = vpack.c.bf16 %v1569_v18, %v1568_v17  ;;  %v1570_v21 = vld [vmem:[#allocation2 + $0x11] sm:$0xff]  ;;  %v1571_v22 = vld [vmem:[#allocation2 + $0x19] sm:$0xff]  ;;  %v1572_v23 = vld [vmem:[#allocation2 + $0x21] sm:$0xf] }
 0x580   :  { %v1562_v47 = vld [vmem:[#allocation2 + $0x20] sm:$0xf]  ;;  %v1574_v29 = vpack.c.bf16 %v1571_v22, %v1570_v21  ;;  %v1575_v30 = vpack.c.bf16 %v1572_v23, %v1572_v23  ;;  %v1559_v32 = vld [vmem:[#allocation2 + $0x8] sm:$0xff]  ;;  %v1560_v36 = vld [vmem:[#allocation2 + $0x10] sm:$0xff] }
 0x581   :  { %3066 = vmatmul.mubr.msk.bf16.vlgmr.msra.gmra.mrb[32].mxu0 %vm829_vm8, %v1573_v20  ;;  %v1724_v24 = vld [vmem:[#allocation2 + $0x1a] sm:$0xff]  ;;  %v1725_v25 = vld [vmem:[#allocation2 + $0x22] sm:$0xf]  ;;  %v1565_v39 = vpack.c.bf16 %v1562_v47, %v1562_v47  ;;  %v1722_v41 = vld [vmem:[#allocation2 + $0xa] sm:$0xff] }
 0x582   :  { %3078 = vmatpush3.bf16.msra.mxu0 %v3322_v19  ;;  %3069 = vmatprep.mubr.msk.bf16.mxu0 %vm3342_vm1, %v3340_v0  ;;  %v1811_v26 = vld [vmem:[#allocation2 + $0x1b] sm:$0xff]  ;;  %v1812_v27 = vld [vmem:[#allocation2 + $0x23] sm:$0xf]  ;;  %v1723_v44 = vld [vmem:[#allocation2 + $0x12] sm:$0xff]  ;;  %v1728_v46 = vpack.c.bf16 %v1725_v25, %v1725_v25 }
 0x583   :  { %3091 = vmatprep.subr.bf16.mxu0 %v3340_v0  ;;  %v1898_v28 = vld [vmem:[#allocation2 + $0x1c] sm:$0xff]  ;;  %v1727_v45 = vpack.c.bf16 %v1724_v24, %v1723_v44  ;;  %v1809_v49 = vld [vmem:[#allocation2 + $0xb] sm:$0xff]  ;;  %v1810_v53 = vld [vmem:[#allocation2 + $0x13] sm:$0xff]  ;;  %v1815_v55 = vpack.c.bf16 %v1812_v27, %v1812_v27 }
 0x584   :  { %2352 = vst.msk [vmem:[#allocation2 + $0x20] sm:$0xf] %vm135_vm2, %v3340_v0  ;;  %v1558_v31 = vld [vmem:[#allocation2] sm:$0xff]  ;;  %v1561_v37 = vld [vmem:[#allocation2 + $0x18] sm:$0xff]  ;;  %v1814_v54 = vpack.c.bf16 %v1811_v26, %v1810_v53  ;;  %v1896_v57 = vld [vmem:[#allocation2 + $0xc] sm:$0xff] }
 0x585   :  { %v1563_v35 = vpack.c.bf16 %v1559_v32, %v1558_v31  ;;  %v1564_v38 = vpack.c.bf16 %v1561_v37, %v1560_v36  ;;  %v1721_v40 = vld [vmem:[#allocation2 + $0x2] sm:$0xff]  ;;  %v1897_v59 = vld [vmem:[#allocation2 + $0x14] sm:$0xff]  ;;  %v2808_v47 = vld [vmem:[%s2699_s21] ss:$0 sm:$0xff] }
 0x586   :  { %v1726_v43 = vpack.c.bf16 %v1722_v41, %v1721_v40  ;;  %v1808_v48 = vld [vmem:[#allocation2 + $0x3] sm:$0xff]  ;;  %v1901_v60 = vpack.c.bf16 %v1898_v28, %v1897_v59 }
 0x587   :  { %v1813_v52 = vpack.c.bf16 %v1809_v49, %v1808_v48  ;;  %v1895_v56 = vld [vmem:[#allocation2 + $0x4] sm:$0xff]  ;;  %v3720_v23 = vld [vmem:[%s3714_s17] sm:$0xf] }
 0x588   :  { %v1900_v58 = vpack.c.bf16 %v1896_v57, %v1895_v56  ;;  %v1899_v61 = vld [vmem:[#allocation2 + $0x24] sm:$0xf]  ;;  %3279 = vmatprep.subr.msk.bf16.mxu1 %vm505_vm5, %v3720_v23 }
 0x589   :  { %3070 = vmatmul.mubr.msk.bf16.gmra.mrb[36].mxu0 %vm829_vm8, %v1574_v29  ;;  %v1902_v62 = vpack.c.bf16 %v1899_v61, %v1899_v61 }
 0x58a   :  { %3073 = vmatprep.mubr.msk.bf16.mxu0 %vm3342_vm1, %v3340_v0 }
 0x591   :  { %3074 = vmatmul.mubr.msk.bf16.gmra.mrb[40].mxu0 %vm829_vm8, %v1575_v30 }
 0x592   :  { %3079 = vmatprep.mubr.msk.bf16.mxu0 %vm3342_vm1, %v3340_v0 }
 0x599   :  { %3080 = vmatmul.mubr.msk.bf16.vlgmr.msra.gmra.mrb[44].mxu0 %vm829_vm8, %v1563_v35 }
 0x59a   :  { %3092 = vmatpush3.bf16.msra.mxu0 %v3323_v33  ;;  %3083 = vmatprep.mubr.msk.bf16.mxu0 %vm3342_vm1, %v3340_v0 }
 0x59b   :  { %3105 = vmatprep.subr.bf16.mxu0 %v3340_v0 }
 0x5a1   :  { %3084 = vmatmul.mubr.msk.bf16.gmra.mrb[36].mxu0 %vm829_vm8, %v1564_v38 }
 0x5a2   :  { %3087 = vmatprep.mubr.msk.bf16.mxu0 %vm3342_vm1, %v3340_v0 }
 0x5a9   :  { %3088 = vmatmul.mubr.msk.bf16.gmra.mrb[40].mxu0 %vm829_vm8, %v1565_v39 }
 0x5aa   :  { %3093 = vmatprep.mubr.msk.bf16.mxu0 %vm3342_vm1, %v3340_v0 }
 0x5b1   :  { %3094 = vmatmul.mubr.msk.bf16.vlgmr.msra.gmra.mrb[48].mxu0 %vm829_vm8, %v1726_v43 }
 0x5b2   :  { %3106 = vmatpush3.bf16.msra.mxu0 %v3324_v42  ;;  %3097 = vmatprep.mubr.msk.bf16.mxu0 %vm3342_vm1, %v3340_v0 }
 0x5b3   :  { %3119 = vmatprep.subr.bf16.mxu0 %v3340_v0 }
 0x5b9   :  { %3098 = vmatmul.mubr.msk.bf16.gmra.mrb[36].mxu0 %vm829_vm8, %v1727_v45 }
 0x5ba   :  { %3101 = vmatprep.mubr.msk.bf16.mxu0 %vm3342_vm1, %v3340_v0 }
 0x5c1   :  { %3102 = vmatmul.mubr.msk.bf16.gmra.mrb[40].mxu0 %vm829_vm8, %v1728_v46 }
 0x5c2   :  { %3107 = vmatprep.mubr.msk.bf16.mxu0 %vm3342_vm1, %v3340_v0 }
 0x5c9   :  { %3108 = vmatmul.mubr.msk.bf16.vlgmr.msra.gmra.mrb[52].mxu0 %vm829_vm8, %v1813_v52 }
 0x5ca   :  { %3120 = vmatpush3.bf16.msra.mxu0 %v3325_v51  ;;  %3111 = vmatprep.mubr.msk.bf16.mxu0 %vm3342_vm1, %v3340_v0 }
 0x5d1   :  { %3112 = vmatmul.mubr.msk.bf16.gmra.mrb[36].mxu0 %vm829_vm8, %v1814_v54 }
 0x5d2   :  { %3115 = vmatprep.mubr.msk.bf16.mxu0 %vm3342_vm1, %v3340_v0 }
 0x5d9   :  { %3116 = vmatmul.mubr.msk.bf16.gmra.mrb[40].mxu0 %vm829_vm8, %v1815_v55 }
 0x5da   :  { %3121 = vmatprep.mubr.msk.bf16.mxu0 %vm3342_vm1, %v3340_v0 }
 0x5e1   :  { %3122 = vmatmul.mubr.msk.bf16.vlgmr.msra.gmra.mrb[56].mxu0 %vm829_vm8, %v1900_v58 }
 0x5e2   :  { %3125 = vmatprep.mubr.msk.bf16.mxu0 %vm3342_vm1, %v3340_v0 }
 0x5e9   :  { %3126 = vmatmul.mubr.msk.bf16.gmra.mrb[36].mxu0 %vm829_vm8, %v1901_v60 }
 0x5ea   :  { %3129 = vmatprep.mubr.msk.bf16.mxu0 %vm3342_vm1, %v3340_v0 }
 0x5f1   :  { %3130 = vmatmul.mubr.msk.bf16.gmra.mrb[40].mxu0 %vm829_vm8, %v1902_v62 }
 0x654   :  { %v1628_v63 = vpop.f32.mrb[32].mxu0 }
 0x655   :  { %v3067_v1 = vpop.f32.mrb[33].mxu0 }
 0x656   :  { %v1631_v2 = vpop.f32.mrb[34].mxu0 }
 0x657   :  { %v3068_v3 = vpop.f32.mrb[35].mxu0 }
 0x66c   :  { %v1699_v4 = vpop.f32.mrb[44].mxu0 }
 0x66d   :  { %v1700_v5 = vadd.f32 %v1699_v4, %v1628_v63  ;;  %v3081_v6 = vpop.f32.mrb[45].mxu0 }
 0x66e   :  { %v1702_v7 = vpop.f32.mrb[46].mxu0 }
 0x66f   :  { %v1703_v8 = vadd.f32 %v1702_v7, %v1631_v2  ;;  %v3082_v9 = vpop.f32.mrb[47].mxu0 }
 0x684   :  { %v1781_v10 = vpop.f32.mrb[48].mxu0 }
 0x685   :  { %v1803_v11 = vadd.f32 %v1781_v10, %v1700_v5  ;;  %v3095_v12 = vpop.f32.mrb[49].mxu0 }
 0x686   :  { %v1784_v13 = vpop.f32.mrb[50].mxu0 }
 0x687   :  { %v1804_v34 = vadd.f32 %v1784_v13, %v1703_v8  ;;  %v3096_v14 = vpop.f32.mrb[51].mxu0 }
 0x69c   :  { %v1868_v17 = vpop.f32.mrb[52].mxu0 }
 0x69d   :  { %v1890_v18 = vadd.f32 %v1868_v17, %v1803_v11  ;;  %v3109_v19 = vpop.f32.mrb[53].mxu0 }
 0x69e   :  { %v1871_v20 = vpop.f32.mrb[54].mxu0 }
 0x69f   :  { %v1891_v21 = vadd.f32 %v1871_v20, %v1804_v34  ;;  %v3110_v22 = vpop.f32.mrb[55].mxu0 }
 0x6b4   :  { %v1955_v24 = vpop.f32.mrb[56].mxu0 }
 0x6b5   :  { %v1977_v25 = vadd.f32 %v1955_v24, %v1890_v18  ;;  %v3123_v26 = vpop.f32.mrb[57].mxu0 }
 0x6b6   :  { %v1958_v27 = vpop.f32.mrb[58].mxu0 }
 0x6b7   :  { %v1998_v28 = vadd.f32 %v2808_v47, %v1977_v25  ;;  %v1978_v29 = vadd.f32 %v1958_v27, %v1891_v21  ;;  %v3124_v30 = vpop.f32.mrb[59].mxu0  ;;  %v2809_v27 = vld [vmem:[%s2701_s29] ss:$0 sm:$0xff] }
 0x6b9   :  { %v1999_v31 = vadd.f32 %v2808_v47, %v1978_v29  ;;  %v2002_v32 = vsel %vm401_vm6, %v1998_v28, 0.0 }
 0x6bb   :  { %v2003_v33 = vsel %vm401_vm6, %v1999_v31, 0.0 }
 0x6bc   :  { %v2004_v35 = vadd.f32 %v2003_v33, %v2002_v32  ;;  %v1963_v36 = vpop.f32.mrb[36].mxu0 }
 0x6bd   :  { %v3127_v37 = vpop.f32.mrb[37].mxu0  ;;  %v1985_v39 = vrot.slane %v1963_v36, 4 }
 0x6be   :  { %v1966_v38 = vpop.f32.mrb[38].mxu0 }
 0x6bf   :  { %v1986_v40 = vrot.slane %v1966_v38, 4  ;;  %v3128_v41 = vpop.f32.mrb[39].mxu0 }
 0x6c1   :  { %v1987_v42 = vsel %vm505_vm5, %v1985_v39, %v1986_v40 }
 0x6c2   :  { %v2000_v43 = vadd.f32 %v2808_v47, %v1987_v42 }
 0x6c4   :  { %v2005_v44 = vsel %vm401_vm6, %v2000_v43, 0.0  ;;  %v1971_v45 = vpop.f32.mrb[40].mxu0 }
 0x6c5   :  { %v2006_v46 = vadd.f32 %v2005_v44, %v2004_v35  ;;  %v1988_v48 = vrot.slane %v1971_v45, 4  ;;  %v3131_v49 = vpop.f32.mrb[41].mxu0 }
 0x6c6   :  { %v1974_v51 = vpop.f32.mrb[42].mxu0 }
 0x6c7   :  { %v1989_v52 = vsel %vm505_vm5, %v1986_v40, %v1988_v48  ;;  %v3132_v53 = vpop.f32.mrb[43].mxu0 }
 0x6c8   :  { %v2001_v54 = vadd.f32 %v2808_v47, %v1989_v52  ;;  %v1547_v47 = vld [vmem:[%s2700_s25] sm:$0x1] }
 0x6ca   :  { %v2007_v55 = vsel %vm401_vm6, %v2001_v54, 0.0 }
 0x6cb   :  { %v2008_v56 = vadd.f32 %v2007_v55, %v2006_v46 }
 0x6cd   :  { %v2009_v57 = vrot.slane %v2008_v56, 4 }
 0x6cf   :  { %v2010_v58 = vadd.f32 %v2009_v57, %v2008_v56  ;;  %v2161_v56 = vsel %vm505_vm5, %v3720_v23, 0 }
 0x6d1   :  { %v2011_v59 = vrot.slane %v2010_v58, 2 }
 0x6d3   :  { %v2012_v60 = vadd.f32 %v2011_v59, %v2010_v58  ;;  %v2815_v58 = vld [vmem:[%s3714_s17 + $0x8] sm:$0xf] }
 0x6d5   :  { %v2013_v61 = vrot.slane %v2012_v60, 1 }
 0x6d7   :  { %v2014_v62 = vadd.f32 %v2013_v61, %v2012_v60 }
 0x6d9   :  { %v2015_v63 = vmul.f32 0.03125, %v2014_v62 }
 0x6db   :  { %v2016_v1 = vsub.f32 %v1998_v28, %v2015_v63  ;;  %v2017_v2 = vsub.f32 %v1999_v31, %v2015_v63  ;;  %v2018_v3 = vsub.f32 %v2000_v43, %v2015_v63  ;;  %v2019_v4 = vsub.f32 %v2001_v54, %v2015_v63 }
 0x6dc   :  { %v2225_v63 = vsel %vm505_vm5, %v2815_v58, 0 }
 0x6dd   :  { %v2020_v5 = vmul.f32 %v2016_v1, %v2016_v1  ;;  %v2021_v6 = vmul.f32 %v2017_v2, %v2017_v2  ;;  %v2022_v7 = vmul.f32 %v2018_v3, %v2018_v3  ;;  %v2023_v8 = vmul.f32 %v2019_v4, %v2019_v4 }
 0x6df   :  { %v2024_v9 = vsel %vm401_vm6, %v2020_v5, 0.0  ;;  %v2025_v10 = vsel %vm401_vm6, %v2021_v6, 0.0  ;;  %v2027_v12 = vsel %vm401_vm6, %v2022_v7, 0.0  ;;  %v2029_v34 = vsel %vm401_vm6, %v2023_v8, 0.0 }
 0x6e0   :  { %v2026_v11 = vadd.f32 %v2025_v10, %v2024_v9 }
 0x6e2   :  { %v2028_v13 = vadd.f32 %v2027_v12, %v2026_v11 }
 0x6e4   :  { %v2030_v14 = vadd.f32 %v2029_v34, %v2028_v13 }
 0x6e6   :  { %v2031_v15 = vrot.slane %v2030_v14, 4 }
 0x6e8   :  { %v2032_v16 = vadd.f32 %v2031_v15, %v2030_v14 }
 0x6ea   :  { %v2033_v17 = vrot.slane %v2032_v16, 2 }
 0x6ec   :  { %v2034_v18 = vadd.f32 %v2033_v17, %v2032_v16 }
 0x6ee   :  { %v2035_v19 = vrot.slane %v2034_v18, 1 }
 0x6f0   :  { %v2036_v20 = vadd.f32 %v2035_v19, %v2034_v18 }
 0x6f2   :  { %v2037_v21 = vmul.f32 0.03125, %v2036_v20 }
 0x6f4   :  { %v2038_v22 = vadd.f32 1e-05, %v2037_v21  ;;  %v2818_v21 = vld [vmem:[%s2703_s7] ss:$0 sm:$0xff] }
 0x6f6   :  { %3334 = vrsqrt.f32 %v2038_v22 }
 0x700   :  { %v3335_v24 = vpop.eup %3334 }
 0x701   :  { %v2040_v25 = vmul.f32 %v3335_v24, %v1547_v47 }
 0x703   :  { %v2045_v26 = vrot.slane %v2040_v25, %v3467_v50 }
 0x705   :  { %v2047_v28 = vmul.f32 %v2045_v26, %v2016_v1  ;;  %v2048_v29 = vmul.f32 %v2045_v26, %v2017_v2  ;;  %v2049_v30 = vmul.f32 %v2045_v26, %v2018_v3  ;;  %v2050_v31 = vmul.f32 %v2045_v26, %v2019_v4  ;;  %v2820_v3 = vld [vmem:[%s3772_s3 + $0x2] sm:$0x3] }
 0x706   :  { %v2386_v4 = vsel %vm169_vm3, %v2820_v3, 0 }
 0x707   :  { %v2057_v32 = vadd.f32 %v2809_v27, %v2047_v28  ;;  %v2058_v33 = vadd.f32 %v2809_v27, %v2048_v29  ;;  %v2059_v35 = vadd.f32 %v2809_v27, %v2049_v30  ;;  %v2060_v36 = vadd.f32 %v2809_v27, %v2050_v31 }
 0x709   :  { %v2061_v37 = vmax.f32 %v2057_v32, 0.0  ;;  %v2062_v38 = vmax.f32 %v2058_v33, 0.0  ;;  %v2063_v39 = vmax.f32 %v2059_v35, 0.0  ;;  %v2064_v40 = vmax.f32 %v2060_v36, 0.0 }
 0x70b   :  { %2065 = vst.msk [vmem:[#allocation2] sm:$0xff] %vm401_vm6, %v2061_v37  ;;  %2067 = vst.msk [vmem:[#allocation2 + $0x10] sm:$0xff] %vm401_vm6, %v2063_v39 }
 0x70c   :  { %2068 = vst.msk [vmem:[#allocation2 + $0x18] sm:$0xff] %vm401_vm6, %v2064_v40  ;;  %2066 = vst.msk [vmem:[#allocation2 + $0x8] sm:$0xff] %vm401_vm6, %v2062_v38 }
 0x713   :  { %v2070_v41 = vld [vmem:[#allocation2 + $0x10] ss:$2 sm:$0xff]  ;;  %v2072_v42 = vld [vmem:[#allocation2 + $0x11] ss:$2 sm:$0xff]  ;;  %v2069_v43 = vld [vmem:[#allocation2] ss:$2 sm:$0xff] }
 0x714   :  { %v2074_v44 = vmax.f32 %v2070_v41, %v2072_v42  ;;  %v2071_v45 = vld [vmem:[#allocation2 + $0x1] ss:$2 sm:$0xff]  ;;  %2081 = vst.msk [vmem:[#allocation2 + $0x10] sm:$0xf] %vm2080_vm11, %v3340_v0 }
 0x715   :  { %v2073_v46 = vmax.f32 %v2069_v43, %v2071_v45  ;;  %2078 = vst.msk [vmem:[#allocation2] sm:$0xff] %vm401_vm6, %v3340_v0  ;;  %2079 = vst.msk [vmem:[#allocation2 + $0x8] sm:$0xff] %vm401_vm6, %v3340_v0 }
 0x716   :  { %2083 = vst.msk [vmem:[#allocation2 + $0xb] sm:$0xff] %vm401_vm6, %v2074_v44 }
 0x717   :  { %2082 = vst.msk [vmem:[#allocation2 + $0x1] sm:$0xff] %vm401_vm6, %v2073_v46 }
 0x71d   :  { %v2091_v48 = vld [vmem:[#allocation2 + $0x9] sm:$0xff]  ;;  %v2092_v49 = vld [vmem:[#allocation2 + $0x11] sm:$0x3] }
 0x71e   :  { %v2090_v51 = vld [vmem:[#allocation2 + $0x1] sm:$0xff]  ;;  %v2094_v52 = vpack.c.bf16 %v2092_v49, %v2092_v49  ;;  %v2086_v59 = vld [vmem:[#allocation2 + $0x10] sm:$0x3]  ;;  %v2213_v23 = vld [vmem:[#allocation2 + $0x12] sm:$0x3] }
 0x71f   :  { %v2084_v53 = vld [vmem:[#allocation2] sm:$0xff]  ;;  %v2085_v54 = vld [vmem:[#allocation2 + $0x8] sm:$0xff]  ;;  %v2093_v55 = vpack.c.bf16 %v2091_v48, %v2090_v51  ;;  %v2088_v62 = vpack.c.bf16 %v2086_v59, %v2086_v59  ;;  %v2215_v2 = vpack.c.bf16 %v2213_v23, %v2213_v23 }
 0x720   :  { %v2087_v57 = vpack.c.bf16 %v2085_v54, %v2084_v53  ;;  %v2211_v60 = vld [vmem:[#allocation2 + $0x2] sm:$0xff]  ;;  %v2212_v61 = vld [vmem:[#allocation2 + $0xa] sm:$0xff] }
 0x721   :  { %3135 = vmatprep.mubr.msk.bf16.mxu1 %vm401_vm6, %v2093_v55  ;;  %v2214_v1 = vpack.c.bf16 %v2212_v61, %v2211_v60  ;;  %v2819_v60 = vld [vmem:[%s2705_s15] ss:$0 sm:$0xff] }
 0x722   :  { %3136 = vmatmul.mubr.msk.bf16.vlgmr.msra.gmra.mrb[40].mxu1 %vm401_vm6, %v2094_v52 }
 0x723   :  { %3140 = vmatpush3.bf16.msra.mxu1 %v2161_v56  ;;  %3141 = vmatprep.mubr.msk.bf16.mxu1 %vm401_vm6, %v2087_v57  ;;  %v2076_v56 = vld [vmem:[%s2704_s11] sm:$0x1] }
 0x724   :  { %3280 = vmatprep.subr.msk.bf16.mxu1 %vm505_vm5, %v2815_v58 }
 0x72a   :  { %3142 = vmatmul.mubr.msk.bf16.vlgmr.msra.gmra.mrb[44].mxu1 %vm401_vm6, %v2088_v62 }
 0x72b   :  { %3146 = vmatpush3.bf16.msra.mxu1 %v2225_v63  ;;  %3147 = vmatprep.mubr.msk.bf16.mxu1 %vm401_vm6, %v2214_v1 }
 0x72c   :  { %3151 = vmatprep.subr.bf16.mxu1 %v3340_v0 }
 0x732   :  { %3148 = vmatmul.mubr.msk.bf16.vlgmr.msra.gmra.mrb[48].mxu1 %vm401_vm6, %v2215_v2 }
 0x733   :  { %3153 = vmatprep.mubr.msk.bf16.mxu1 %vm3342_vm1, %v3340_v0  ;;  %3152 = vmatpush3.bf16.msra.mxu1 %v2386_v4 }
 0x734   :  { %3165 = vmatprep.subr.bf16.mxu1 %v3340_v0 }
 0x7f5   :  { %v3137_v5 = vpop.f32.mrb[40].mxu1 }
 0x7f6   :  { %v2140_v6 = vpop.f32.mrb[41].mxu1 }
 0x7f7   :  { %v3138_v7 = vpop.f32.mrb[42].mxu1 }
 0x7f8   :  { %v2143_v8 = vpop.f32.mrb[43].mxu1  ;;  %v2365_v7 = vld [vmem:[%s3772_s3] sm:$0x3] }
 0x7fd   :  { %v3143_v9 = vpop.f32.mrb[44].mxu1 }
 0x7fe   :  { %v2206_v10 = vadd.f32 %v3143_v9, %v3137_v5  ;;  %v2197_v11 = vpop.f32.mrb[45].mxu1 }
 0x7ff   :  { %v2198_v12 = vadd.f32 %v2197_v11, %v2140_v6  ;;  %v3144_v13 = vpop.f32.mrb[46].mxu1  ;;  %v2454_v11 = vsel %vm169_vm3, %v2365_v7, 0 }
 0x800   :  { %v2200_v34 = vpop.f32.mrb[47].mxu1 }
 0x801   :  { %v2201_v14 = vadd.f32 %v2200_v34, %v2143_v8 }
 0x805   :  { %v3149_v15 = vpop.f32.mrb[48].mxu1 }
 0x806   :  { %v2277_v16 = vadd.f32 %v3149_v15, %v2206_v10  ;;  %v2261_v17 = vpop.f32.mrb[49].mxu1 }
 0x807   :  { %v2275_v18 = vadd.f32 %v2261_v17, %v2198_v12  ;;  %v3150_v19 = vpop.f32.mrb[50].mxu1 }
 0x808   :  { %v2264_v20 = vpop.f32.mrb[51].mxu1  ;;  %v2281_v47 = vrot.slane %v2277_v16, 2 }
 0x809   :  { %v2276_v22 = vadd.f32 %v2264_v20, %v2201_v14  ;;  %v2290_v25 = vadd.f32 %v2818_v21, %v2275_v18  ;;  %v2827_v18 = vld [vmem:[%s3772_s3 + $0x4] sm:$0x3] }
 0x80a   :  { %v2532_v20 = vsel %vm169_vm3, %v2827_v18, 0 }
 0x80b   :  { %v2280_v24 = vrot.slane %v2276_v22, 2  ;;  %v2292_v28 = vsel %vm130_vm0, %v2290_v25, 0.0 }
 0x80d   :  { %v2282_v26 = vsel %vm383_vm7, %v2280_v24, %v2281_v47 }
 0x80e   :  { %v2291_v27 = vadd.f32 %v2818_v21, %v2282_v26 }
 0x810   :  { %v2293_v29 = vsel %vm130_vm0, %v2291_v27, 0.0 }
 0x811   :  { %v2294_v30 = vadd.f32 %v2293_v29, %v2292_v28 }
 0x813   :  { %v2295_v31 = vrot.slane %v2294_v30, 4 }
 0x815   :  { %v2296_v32 = vadd.f32 %v2295_v31, %v2294_v30 }
 0x817   :  { %v2297_v33 = vrot.slane %v2296_v32, 2 }
 0x819   :  { %v2298_v35 = vadd.f32 %v2297_v33, %v2296_v32 }
 0x81b   :  { %v2299_v36 = vrot.slane %v2298_v35, 1 }
 0x81d   :  { %v2300_v37 = vadd.f32 %v2299_v36, %v2298_v35 }
 0x81f   :  { %v2301_v38 = vmul.f32 0.0625, %v2300_v37 }
 0x821   :  { %v2302_v39 = vsub.f32 %v2290_v25, %v2301_v38  ;;  %v2303_v40 = vsub.f32 %v2291_v27, %v2301_v38 }
 0x823   :  { %v2304_v41 = vmul.f32 %v2302_v39, %v2302_v39  ;;  %v2305_v42 = vmul.f32 %v2303_v40, %v2303_v40 }
 0x825   :  { %v2306_v43 = vsel %vm130_vm0, %v2304_v41, 0.0  ;;  %v2307_v44 = vsel %vm130_vm0, %v2305_v42, 0.0 }
 0x826   :  { %v2308_v45 = vadd.f32 %v2307_v44, %v2306_v43 }
 0x828   :  { %v2309_v46 = vrot.slane %v2308_v45, 4 }
 0x82a   :  { %v2310_v48 = vadd.f32 %v2309_v46, %v2308_v45 }
 0x82c   :  { %v2311_v49 = vrot.slane %v2310_v48, 2 }
 0x82e   :  { %v2312_v51 = vadd.f32 %v2311_v49, %v2310_v48 }
 0x830   :  { %v2313_v52 = vrot.slane %v2312_v51, 1 }
 0x832   :  { %v2314_v53 = vadd.f32 %v2313_v52, %v2312_v51 }
 0x834   :  { %v2315_v54 = vmul.f32 0.0625, %v2314_v53 }
 0x836   :  { %v2316_v55 = vadd.f32 1e-05, %v2315_v54 }
 0x838   :  { %3336 = vrsqrt.f32 %v2316_v55 }
 0x842   :  { %v3337_v57 = vpop.eup %3336 }
 0x843   :  { %v2318_v58 = vmul.f32 %v3337_v57, %v2076_v56 }
 0x845   :  { %v2323_v59 = vrot.slane %v2318_v58, %v3467_v50 }
 0x847   :  { %v2325_v61 = vmul.f32 %v2323_v59, %v2302_v39  ;;  %v2326_v62 = vmul.f32 %v2323_v59, %v2303_v40 }
 0x849   :  { %v2333_v63 = vadd.f32 %v2819_v60, %v2325_v61  ;;  %v2334_v1 = vadd.f32 %v2819_v60, %v2326_v62 }
 0x84b   :  { %v2335_v23 = vmax.f32 %v2333_v63, 0.0  ;;  %v2336_v2 = vmax.f32 %v2334_v1, 0.0 }
 0x84d   :  { %2337 = vst [vmem:[#allocation2] ss:$2 sm:$0xff] %v2335_v23  ;;  %2338 = vst [vmem:[#allocation2 + $0x10] ss:$2 sm:$0xff] %v2336_v2 }
 0x84e   :  { %2339 = vst [vmem:[#allocation2 + $0x1] ss:$2 sm:$0xff] %v2335_v23  ;;  %2340 = vst [vmem:[#allocation2 + $0x11] ss:$2 sm:$0xff] %v2336_v2 }
 0x855   :  { %v2341_v3 = vld [vmem:[#allocation2] sm:$0xff]  ;;  %v2342_v4 = vld [vmem:[#allocation2 + $0x8] sm:$0xff]  ;;  %v2343_v5 = vld [vmem:[#allocation2 + $0x10] sm:$0xff] }
 0x856   :  { %2348 = vst.msk [vmem:[#allocation2] sm:$0xff] %vm130_vm0, %v3340_v0  ;;  %2349 = vst.msk [vmem:[#allocation2 + $0x8] sm:$0xff] %vm130_vm0, %v3340_v0  ;;  %v2344_v6 = vld [vmem:[#allocation2 + $0x18] sm:$0xff] }
 0x857   :  { %2350 = vst.msk [vmem:[#allocation2 + $0x10] sm:$0xff] %vm130_vm0, %v3340_v0  ;;  %2353 = vst.msk [vmem:[#allocation2 + $0x1] sm:$0xff] %vm130_vm0, %v2341_v3 }
 0x858   :  { %2354 = vst.msk [vmem:[#allocation2 + $0x9] sm:$0xff] %vm130_vm0, %v2342_v4  ;;  %2351 = vst.msk [vmem:[#allocation2 + $0x18] sm:$0xff] %vm130_vm0, %v3340_v0 }
 0x859   :  { %2355 = vst.msk [vmem:[#allocation2 + $0x13] sm:$0xff] %vm130_vm0, %v2343_v5  ;;  %2356 = vst.msk [vmem:[#allocation2 + $0x1b] sm:$0xff] %vm130_vm0, %v2344_v6 }
 0x85e   :  { %v2366_v8 = vld [vmem:[#allocation2 + $0x1] sm:$0xff] }
 0x85f   :  { %v2367_v9 = vld [vmem:[#allocation2 + $0x9] sm:$0xff]  ;;  %v2357_v16 = vld [vmem:[#allocation2] sm:$0xff] }
 0x860   :  { %v2371_v10 = vpack.c.bf16 %v2367_v9, %v2366_v8  ;;  %v2368_v12 = vld [vmem:[#allocation2 + $0x11] sm:$0xff]  ;;  %v2369_v13 = vld [vmem:[#allocation2 + $0x19] sm:$0xff]  ;;  %v2370_v14 = vld [vmem:[#allocation2 + $0x21] sm:$0x3] }
 0x861   :  { %v2372_v34 = vpack.c.bf16 %v2369_v13, %v2368_v12  ;;  %v2373_v15 = vpack.c.bf16 %v2370_v14, %v2370_v14  ;;  %v2358_v17 = vld [vmem:[#allocation2 + $0x8] sm:$0xff]  ;;  %v2359_v21 = vld [vmem:[#allocation2 + $0x10] sm:$0xff]  ;;  %v2360_v22 = vld [vmem:[#allocation2 + $0x18] sm:$0xff] }
 0x862   :  { %3154 = vmatmul.mubr.msk.bf16.vlgmr.msra.gmra.mrb[52].mxu1 %vm130_vm0, %v2371_v10  ;;  %v2362_v19 = vpack.c.bf16 %v2358_v17, %v2357_v16  ;;  %v2363_v47 = vpack.c.bf16 %v2360_v22, %v2359_v21  ;;  %v2361_v24 = vld [vmem:[#allocation2 + $0x20] sm:$0x3]  ;;  %v2512_v26 = vld [vmem:[#allocation2 + $0x2] sm:$0xff]  ;;  %v2513_v27 = vld [vmem:[#allocation2 + $0xa] sm:$0xff] }
 0x863   :  { %3166 = vmatpush3.bf16.msra.mxu1 %v2454_v11  ;;  %3157 = vmatprep.mubr.msk.bf16.mxu1 %vm3342_vm1, %v3340_v0  ;;  %v2364_v25 = vpack.c.bf16 %v2361_v24, %v2361_v24  ;;  %v2517_v28 = vpack.c.bf16 %v2513_v27, %v2512_v26  ;;  %v2514_v29 = vld [vmem:[#allocation2 + $0x12] sm:$0xff]  ;;  %v2515_v30 = vld [vmem:[#allocation2 + $0x1a] sm:$0xff]  ;;  %v2516_v32 = vld [vmem:[#allocation2 + $0x22] sm:$0x3] }
 0x864   :  { %3179 = vmatprep.subr.bf16.mxu1 %v3340_v0  ;;  %v2518_v31 = vpack.c.bf16 %v2515_v30, %v2514_v29  ;;  %v2519_v33 = vpack.c.bf16 %v2516_v32, %v2516_v32 }
 0x86a   :  { %3158 = vmatmul.mubr.msk.bf16.gmra.mrb[56].mxu1 %vm130_vm0, %v2372_v34 }
 0x86b   :  { %3161 = vmatprep.mubr.msk.bf16.mxu1 %vm3342_vm1, %v3340_v0 }
 0x872   :  { %3162 = vmatmul.mubr.msk.bf16.gmra.mrb[60].mxu1 %vm130_vm0, %v2373_v15 }
 0x873   :  { %3167 = vmatprep.mubr.msk.bf16.mxu1 %vm3342_vm1, %v3340_v0 }
 0x87a   :  { %3168 = vmatmul.mubr.msk.bf16.vlgmr.msra.gmra.mrb[64].mxu1 %vm130_vm0, %v2362_v19 }
 0x87b   :  { %3180 = vmatpush3.bf16.msra.mxu1 %v2532_v20  ;;  %3171 = vmatprep.mubr.msk.bf16.mxu1 %vm3342_vm1, %v3340_v0 }
 0x882   :  { %3172 = vmatmul.mubr.msk.bf16.gmra.mrb[56].mxu1 %vm130_vm0, %v2363_v47 }
 0x883   :  { %3175 = vmatprep.mubr.msk.bf16.mxu1 %vm3342_vm1, %v3340_v0 }
 0x88a   :  { %3176 = vmatmul.mubr.msk.bf16.gmra.mrb[60].mxu1 %vm130_vm0, %v2364_v25 }
 0x88b   :  { %3181 = vmatprep.mubr.msk.bf16.mxu1 %vm3342_vm1, %v3340_v0 }
 0x892   :  { %3182 = vmatmul.mubr.msk.bf16.vlgmr.msra.gmra.mrb[68].mxu1 %vm130_vm0, %v2517_v28 }
 0x893   :  { %3185 = vmatprep.mubr.msk.bf16.mxu1 %vm3342_vm1, %v3340_v0 }
 0x89a   :  { %3186 = vmatmul.mubr.msk.bf16.gmra.mrb[56].mxu1 %vm130_vm0, %v2518_v31 }
 0x89b   :  { %3189 = vmatprep.mubr.msk.bf16.mxu1 %vm3342_vm1, %v3340_v0  ;;  %v2831_v0 = vld [vmem:[%s2707_s19] ss:$0 sm:$0xff] }
 0x8a2   :  { %3190 = vmatmul.mubr.msk.bf16.gmra.mrb[60].mxu1 %vm130_vm0, %v2519_v33 }
 0x935   :  { %v2422_v35 = vpop.f32.mrb[52].mxu1 }
 0x936   :  { %v3155_v36 = vpop.f32.mrb[53].mxu1 }
 0x937   :  { %v2425_v37 = vpop.f32.mrb[54].mxu1 }
 0x938   :  { %v3156_v38 = vpop.f32.mrb[55].mxu1 }
 0x94d   :  { %v2490_v39 = vpop.f32.mrb[64].mxu1 }
 0x94e   :  { %v2491_v40 = vadd.f32 %v2490_v39, %v2422_v35  ;;  %v3169_v41 = vpop.f32.mrb[65].mxu1 }
 0x94f   :  { %v2493_v42 = vpop.f32.mrb[66].mxu1 }
 0x950   :  { %v2494_v43 = vadd.f32 %v2493_v42, %v2425_v37  ;;  %v3170_v44 = vpop.f32.mrb[67].mxu1 }
 0x965   :  { %v2568_v45 = vpop.f32.mrb[68].mxu1 }
 0x966   :  { %v2590_v46 = vadd.f32 %v2568_v45, %v2491_v40  ;;  %v3183_v48 = vpop.f32.mrb[69].mxu1 }
 0x967   :  { %v2571_v49 = vpop.f32.mrb[70].mxu1 }
 0x968   :  { %v2611_v51 = vadd.f32 %v2831_v0, %v2590_v46  ;;  %v2591_v52 = vadd.f32 %v2571_v49, %v2494_v43  ;;  %v3184_v53 = vpop.f32.mrb[71].mxu1  ;;  %v2346_v43 = vld [vmem:[%s2708_s23] sm:$0x1] }
 0x969   :  { %v2832_v46 = vld [vmem:[%s2709_s27] ss:$0 sm:$0xff] }
 0x96a   :  { %v2612_v54 = vadd.f32 %v2831_v0, %v2591_v52  ;;  %v2615_v55 = vsel %vm130_vm0, %v2611_v51, 0.0 }
 0x96c   :  { %v2616_v56 = vsel %vm130_vm0, %v2612_v54, 0.0 }
 0x96d   :  { %v2617_v57 = vadd.f32 %v2616_v56, %v2615_v55  ;;  %v2576_v58 = vpop.f32.mrb[56].mxu1 }
 0x96e   :  { %v3187_v59 = vpop.f32.mrb[57].mxu1  ;;  %v2598_v61 = vrot.slane %v2576_v58, 2 }
 0x96f   :  { %v2579_v60 = vpop.f32.mrb[58].mxu1 }
 0x970   :  { %v2599_v62 = vrot.slane %v2579_v60, 2  ;;  %v3188_v63 = vpop.f32.mrb[59].mxu1 }
 0x972   :  { %v2600_v1 = vsel %vm383_vm7, %v2598_v61, %v2599_v62 }
 0x973   :  { %v2613_v23 = vadd.f32 %v2831_v0, %v2600_v1 }
 0x975   :  { %v2618_v2 = vsel %vm130_vm0, %v2613_v23, 0.0  ;;  %v2584_v3 = vpop.f32.mrb[60].mxu1 }
 0x976   :  { %v2619_v4 = vadd.f32 %v2618_v2, %v2617_v57  ;;  %v2601_v5 = vrot.slane %v2584_v3, 2  ;;  %v3191_v6 = vpop.f32.mrb[61].mxu1 }
 0x977   :  { %v2587_v7 = vpop.f32.mrb[62].mxu1 }
 0x978   :  { %v2602_v8 = vsel %vm383_vm7, %v2599_v62, %v2601_v5  ;;  %v3192_v9 = vpop.f32.mrb[63].mxu1 }
 0x979   :  { %v2614_v10 = vadd.f32 %v2831_v0, %v2602_v8 }
 0x97b   :  { %v2620_v11 = vsel %vm130_vm0, %v2614_v10, 0.0 }
 0x97c   :  { %v2621_v12 = vadd.f32 %v2620_v11, %v2619_v4 }
 0x97e   :  { %v2622_v13 = vrot.slane %v2621_v12, 4 }
 0x980   :  { %v2623_v34 = vadd.f32 %v2622_v13, %v2621_v12 }
 0x982   :  { %v2624_v14 = vrot.slane %v2623_v34, 2 }
 0x984   :  { %v2625_v15 = vadd.f32 %v2624_v14, %v2623_v34 }
 0x986   :  { %v2626_v16 = vrot.slane %v2625_v15, 1 }
 0x988   :  { %v2627_v17 = vadd.f32 %v2626_v16, %v2625_v15 }
 0x98a   :  { %v2628_v18 = vmul.f32 0.03125, %v2627_v17 }
 0x98c   :  { %v2629_v19 = vsub.f32 %v2611_v51, %v2628_v18  ;;  %v2630_v20 = vsub.f32 %v2612_v54, %v2628_v18  ;;  %v2631_v21 = vsub.f32 %v2613_v23, %v2628_v18  ;;  %v2632_v22 = vsub.f32 %v2614_v10, %v2628_v18 }
 0x98e   :  { %v2633_v47 = vmul.f32 %v2629_v19, %v2629_v19  ;;  %v2634_v24 = vmul.f32 %v2630_v20, %v2630_v20  ;;  %v2635_v25 = vmul.f32 %v2631_v21, %v2631_v21  ;;  %v2636_v26 = vmul.f32 %v2632_v22, %v2632_v22 }
 0x990   :  { %v2637_v27 = vsel %vm130_vm0, %v2633_v47, 0.0  ;;  %v2638_v28 = vsel %vm130_vm0, %v2634_v24, 0.0  ;;  %v2640_v30 = vsel %vm130_vm0, %v2635_v25, 0.0  ;;  %v2642_v32 = vsel %vm130_vm0, %v2636_v26, 0.0 }
 0x991   :  { %v2639_v29 = vadd.f32 %v2638_v28, %v2637_v27 }
 0x993   :  { %v2641_v31 = vadd.f32 %v2640_v30, %v2639_v29 }
 0x995   :  { %v2643_v33 = vadd.f32 %v2642_v32, %v2641_v31 }
 0x997   :  { %v2644_v35 = vrot.slane %v2643_v33, 4 }
 0x999   :  { %v2645_v36 = vadd.f32 %v2644_v35, %v2643_v33 }
 0x99b   :  { %v2646_v37 = vrot.slane %v2645_v36, 2 }
 0x99d   :  { %v2647_v38 = vadd.f32 %v2646_v37, %v2645_v36 }
 0x99f   :  { %v2648_v39 = vrot.slane %v2647_v38, 1 }
 0x9a1   :  { %v2649_v40 = vadd.f32 %v2648_v39, %v2647_v38 }
 0x9a3   :  { %v2650_v41 = vmul.f32 0.03125, %v2649_v40 }
 0x9a5   :  { %v2651_v42 = vadd.f32 1e-05, %v2650_v41 }
 0x9a7   :  { %3338 = vrsqrt.f32 %v2651_v42 }
 0x9b1   :  { %v3339_v44 = vpop.eup %3338 }
 0x9b2   :  { %v2653_v0 = vmul.f32 %v3339_v44, %v2346_v43 }
 0x9b4   :  { %v2658_v45 = vrot.slane %v2653_v0, %v3467_v50 }
 0x9b6   :  { %v2660_v48 = vmul.f32 %v2658_v45, %v2629_v19  ;;  %v2661_v49 = vmul.f32 %v2658_v45, %v2630_v20  ;;  %v2662_v51 = vmul.f32 %v2658_v45, %v2631_v21  ;;  %v2663_v52 = vmul.f32 %v2658_v45, %v2632_v22 }
 0x9b8   :  { %v2670_v53 = vadd.f32 %v2832_v46, %v2660_v48  ;;  %v2671_v54 = vadd.f32 %v2832_v46, %v2661_v49  ;;  %v2672_v55 = vadd.f32 %v2832_v46, %v2662_v51  ;;  %v2673_v56 = vadd.f32 %v2832_v46, %v2663_v52 }
 0x9ba   :  { %2674 = vst.msk [vmem:[%s2710_s1] sm:$0xff] %vm130_vm0, %v2670_v53  ;;  %2675 = vst.msk [vmem:[%s2710_s1 + $0x8] sm:$0xff] %vm130_vm0, %v2671_v54 }
 0x9bb   :  { %2676 = vst.msk [vmem:[%s2710_s1 + $0x10] sm:$0xff] %vm130_vm0, %v2672_v55  ;;  %2677 = vst.msk [vmem:[%s2710_s1 + $0x18] sm:$0xff] %vm130_vm0, %v2673_v56 }

</bundles_post_ra>
